<compile_context>
chip_gen: v7x
topology: tpu7x:2x2x1
jax: 0.10.0
libtpu: 0.0.40
codegen_flags: <defaults>
</compile_context>

<pallas_src>
import functools
import math

import jax
import jax.numpy as jnp
from jax.experimental import pallas as pl
from jax.experimental.pallas import tpu as pltpu


def transformer_layer_kernel(
    # inputs
    xq_ref,                       # (1, TQ, D) f32 : query-row tile of src
    xkv_ref,                      # (1, S,  D) f32 : full sequence (for K/V)
    wq_ref, wk_ref, wv_ref,       # (H, D, hd) compute dtype (scale folded in wq)
    bq_ref, bk_ref, bv_ref,       # (H, 1, hd) f32
    wo_ref,                       # (H, hd, D) compute dtype
    bo_ref,                       # (1, D) f32
    w1_ref, b1_ref,               # (D, F) cdtype, (1, F) f32
    w2_ref, b2_ref,               # (F, D) cdtype, (1, D) f32
    g1_ref, beta1_ref,            # (1, D) f32
    g2_ref, beta2_ref,            # (1, D) f32
    # output
    o_ref,                        # (1, TQ, D)
    # scratch (persists across the seq-tile grid axis)
    k_scratch, v_scratch,         # (H, S, hd) compute dtype
    *, nhead: int, eps: float,
):
    cd = k_scratch.dtype

    # ---- K/V projection for the whole sequence: once per batch element ----
    @pl.when(pl.program_id(1) == 0)
    def _project_kv():
        xs = xkv_ref[0].astype(cd)                          # (S, D)
        for h in range(nhead):                              # leading-dim indexing only
            k_h = jnp.dot(xs, wk_ref[h],
                          preferred_element_type=jnp.float32) + bk_ref[h]
            v_h = jnp.dot(xs, wv_ref[h],
                          preferred_element_type=jnp.float32) + bv_ref[h]
            k_scratch[h] = k_h.astype(cd)
            v_scratch[h] = v_h.astype(cd)

    # ---- Q projection for this row tile (1/sqrt(hd) already folded in) ----
    x = xq_ref[0]                                            # (TQ, D) f32
    xc = x.astype(cd)
    q3 = jnp.stack(
        [jnp.dot(xc, wq_ref[h], preferred_element_type=jnp.float32) + bq_ref[h]
         for h in range(nhead)],
        axis=0).astype(cd)                                   # (H, TQ, hd)

    k3 = k_scratch[...]                                      # (H, S, hd)
    v3 = v_scratch[...]

    # ---- head-batched attention ----
    s = jnp.einsum("hqd,hkd->hqk", q3, k3,
                   preferred_element_type=jnp.float32)       # (H, TQ, S) f32
    s = s - jnp.max(s, axis=-1, keepdims=True)
    p = jnp.exp(s)
    p = p * pl.reciprocal(jnp.sum(p, axis=-1, keepdims=True), approx=True)
    ctx = jnp.einsum("hqk,hkd->hqd", p.astype(cd), v3,
                     preferred_element_type=jnp.float32)     # (H, TQ, hd)

    # heads -> d_model concat fused with out-projection: sum_h ctx_h @ Wo_h
    attn = jnp.einsum("hqd,hdo->hqo", ctx.astype(cd), wo_ref[...],
                      preferred_element_type=jnp.float32)
    attn = jnp.sum(attn, axis=0) + bo_ref[...]               # (TQ, D) f32

    # ---- residual + LayerNorm 1 (f32) ----
    y = x + attn
    mu = jnp.mean(y, axis=-1, keepdims=True)
    yc = y - mu
    var = jnp.mean(yc * yc, axis=-1, keepdims=True)
    y = yc * jax.lax.rsqrt(var + eps) * g1_ref[...] + beta1_ref[...]

    # ---- feed-forward: linear1 -> CELU(alpha=1) -> linear2 ----
    h1 = jnp.dot(y.astype(cd), w1_ref[...],
                 preferred_element_type=jnp.float32) + b1_ref[...]
    act = jnp.where(h1 > 0.0, h1, jnp.exp(jnp.minimum(h1, 0.0)) - 1.0)
    h2 = jnp.dot(act.astype(cd), w2_ref[...],
                 preferred_element_type=jnp.float32) + b2_ref[...]

    # ---- residual + LayerNorm 2 (f32) ----
    z = y + h2
    mu2 = jnp.mean(z, axis=-1, keepdims=True)
    zc = z - mu2
    var2 = jnp.mean(zc * zc, axis=-1, keepdims=True)
    z = zc * jax.lax.rsqrt(var2 + eps) * g2_ref[...] + beta2_ref[...]

    o_ref[0] = z.astype(o_ref.dtype)


def transformer_layer(src, params, *, nhead, eps=1e-5,
                      compute_dtype=jnp.bfloat16, block_q=256):
    B, S, D = src.shape
    F = params["w1"].shape[0]
    assert D % nhead == 0
    hd = D // nhead
    cd = jnp.dtype(compute_dtype)
    f32 = jnp.float32

    # query-row tile: sublane-aligned divisor of S, else the full sequence
    if block_q >= S or S % block_q != 0 or block_q % 8 != 0:
        block_q = S
    n_q = S // block_q

    # ---- weight prep: transposes / head splits / scaling hoisted out of kernel ----
    scale = 1.0 / math.sqrt(hd)

    def split_heads_in(w):        # (D_out, D_in) -> (H, D_in, hd)
        return jnp.transpose(w.reshape(nhead, hd, D), (0, 2, 1))

    wq_h = split_heads_in(params["wq"] * scale).astype(cd)
    wk_h = split_heads_in(params["wk"]).astype(cd)
    wv_h = split_heads_in(params["wv"]).astype(cd)
    bq_h = (params["bq"][0] * scale).reshape(nhead, 1, hd).astype(f32)
    bk_h = params["bk"][0].reshape(nhead, 1, hd).astype(f32)
    bv_h = params["bv"][0].reshape(nhead, 1, hd).astype(f32)
    wo_h = jnp.transpose(params["wo"].reshape(D, nhead, hd), (1, 2, 0)).astype(cd)
    w1_t = params["w1"].T.astype(cd)                          # (D, F)
    w2_t = params["w2"].T.astype(cd)                          # (F, D)
    bo, b1, b2 = (params[k].astype(f32) for k in ("bo", "b1", "b2"))
    g1, beta1, g2, beta2 = (params[k].astype(f32)
                            for k in ("g1", "beta1", "g2", "beta2"))

    operands = (src, src, wq_h, wk_h, wv_h, bq_h, bk_h, bv_h, wo_h, bo,
                w1_t, b1, w2_t, b2, g1, beta1, g2, beta2)

    # ---- scheduler / memory hints ----
    flops = 2 * B * S * D * (4 * D + 2 * F) + 4 * B * nhead * S * S * hd
    transcendentals = B * S * (nhead * S + F)
    itemsize = cd.itemsize
    weight_bytes = (4 * D * D + 2 * D * F) * itemsize
    cost = pl.CostEstimate(flops=int(flops),
                           transcendentals=int(transcendentals),
                           bytes_accessed=int(2 * B * S * D * 4 + weight_bytes))

    kv_scratch_bytes = 2 * nhead * S * max(hd, 128) * itemsize
    act_bytes = (S * D + 3 * block_q * D + block_q * F + nhead * block_q * S) * 4
    vmem_limit = int(min(
        64 << 20,
        max(32 << 20,
            2 * weight_bytes + kv_scratch_bytes + 4 * act_bytes + (4 << 20))))

    kernel = functools.partial(transformer_layer_kernel, nhead=nhead, eps=eps)

    def build(single_buffer_weights):
        def const_spec(shape):
            n = len(shape)
            idx = lambda b, q: (0,) * n
            if single_buffer_weights:
                # block index never changes across the grid -> no double buffer
                return pl.BlockSpec(shape, idx, pipeline_mode=pl.Buffered(1))
            return pl.BlockSpec(shape, idx)

        in_specs = [
            pl.BlockSpec((1, block_q, D), lambda b, q: (b, q, 0)),   # src (q rows)
            pl.BlockSpec((1, S, D), lambda b, q: (b, 0, 0)),         # src (full, K/V)
            const_spec((nhead, D, hd)), const_spec((nhead, D, hd)),
            const_spec((nhead, D, hd)),
            const_spec((nhead, 1, hd)), const_spec((nhead, 1, hd)),
            const_spec((nhead, 1, hd)),
            const_spec((nhead, hd, D)), const_spec((1, D)),
            const_spec((D, F)), const_spec((1, F)),
            const_spec((F, D)), const_spec((1, D)),
            const_spec((1, D)), const_spec((1, D)),
            const_spec((1, D)), const_spec((1, D)),
        ]
        grid_spec = pltpu.PrefetchScalarGridSpec(
            num_scalar_prefetch=0,
            grid=(B, n_q),
            in_specs=in_specs,
            out_specs=pl.BlockSpec((1, block_q, D), lambda b, q: (b, q, 0)),
            scratch_shapes=[pltpu.VMEM((nhead, S, hd), cd),
                            pltpu.VMEM((nhead, S, hd), cd)],
        )
        return pl.pallas_call(
            kernel,
            out_shape=jax.ShapeDtypeStruct((B, S, D), src.dtype),
            grid_spec=grid_spec,
            compiler_params=pltpu.CompilerParams(
                dimension_semantics=("parallel", "arbitrary"),
                vmem_limit_bytes=vmem_limit),
            cost_estimate=cost,
        )

    try:
        return build(single_buffer_weights=True)(*operands)
    except Exception:
        # pl.Buffered(1) single-buffered weights not supported on this
        # jax/backend combo: fall back to default double buffering.
        return build(single_buffer_weights=False)(*operands)


def reference(src, p, nhead, eps=1e-5):
    """Pure-JAX reference mirroring PyTorch TransformerLayer.forward."""
    B, S, D = src.shape
    hd = D // nhead

    def attn_one(x):
        q = x @ p["wq"].T + p["bq"][0]
        k = x @ p["wk"].T + p["bk"][0]
        v = x @ p["wv"].T + p["bv"][0]
        q = q.reshape(S, nhead, hd).transpose(1, 0, 2)
        k = k.reshape(S, nhead, hd).transpose(1, 0, 2)
        v = v.reshape(S, nhead, hd).transpose(1, 0, 2)
        s = jnp.einsum("hqd,hkd->hqk", q, k) / jnp.sqrt(jnp.float32(hd))
        w = jax.nn.softmax(s, axis=-1)
        o = jnp.einsum("hqk,hkd->hqd", w, v).transpose(1, 0, 2).reshape(S, D)
        return o @ p["wo"].T + p["bo"][0]

    def ln(x, g, b):
        mu = x.mean(-1, keepdims=True)
        var = jnp.square(x - mu).mean(-1, keepdims=True)
        return (x - mu) / jnp.sqrt(var + eps) * g + b

    y = src + jax.vmap(attn_one)(src)
    y = ln(y, p["g1"][0], p["beta1"][0])
    h1 = y @ p["w1"].T + p["b1"][0]
    act = jax.nn.celu(h1, alpha=1.0)
    z = y + act @ p["w2"].T + p["b2"][0]
    return ln(z, p["g2"][0], p["beta2"][0])


def init_params(key, d_model, nhead, ff_mult=4):
    F = ff_mult * d_model
    ks = jax.random.split(key, 12)
    n = lambda k, shape, s=0.05: (s * jax.random.normal(k, shape)).astype(jnp.float32)
    return {
        "wq": n(ks[0], (d_model, d_model)),
        "wk": n(ks[1], (d_model, d_model)),
        "wv": n(ks[2], (d_model, d_model)),
        "bq": n(ks[3], (1, d_model)),
        "bk": n(ks[4], (1, d_model)),
        "bv": n(ks[5], (1, d_model)),
        "wo": n(ks[6], (d_model, d_model)),
        "bo": n(ks[7], (1, d_model)),
        "w1": n(ks[8], (F, d_model)),
        "b1": n(ks[9], (1, F)),
        "w2": n(ks[10], (d_model, F)),
        "b2": n(ks[11], (1, d_model)),
        "g1": jnp.ones((1, d_model), jnp.float32),
        "beta1": jnp.zeros((1, d_model), jnp.float32),
        "g2": jnp.ones((1, d_model), jnp.float32),
        "beta2": jnp.zeros((1, d_model), jnp.float32),
    }


if __name__ == "__main__":
    B, S, D, NHEAD = 2, 16, 32, 4          # d_model=32, nhead=4, dim_ff=128
    key = jax.random.PRNGKey(0)
    k_src, k_par = jax.random.split(key)
    src = jax.random.normal(k_src, (B, S, D), dtype=jnp.float32)
    params = init_params(k_par, D, NHEAD)

    ref = reference(src, params, NHEAD)

    # f32 matmul path, 2 query tiles per batch element (exercises the
    # K/V-once-per-batch scratch reuse across the seq-tile grid axis).
    out_f32 = jax.block_until_ready(
        transformer_layer(src, params, nhead=NHEAD,
                          compute_dtype=jnp.float32, block_q=8))
    assert out_f32.shape == (B, S, D)
    err_f32 = float(jnp.max(jnp.abs(out_f32 - ref)))
    assert err_f32 < 5e-3, f"f32 kernel mismatch vs reference: {err_f32}"

    # bf16 matmul operands (recommended fast path on v6e/v7x), f32 accumulation.
    out_bf16 = jax.block_until_ready(
        transformer_layer(src, params, nhead=NHEAD,
                          compute_dtype=jnp.bfloat16, block_q=8))
    err_bf16 = float(jnp.max(jnp.abs(out_bf16 - ref)))
    assert err_bf16 < 5e-2, f"bf16 kernel mismatch vs reference: {err_bf16}"

    print("KERNEL_OK")
</pallas_src>

<mosaic_0001>
module attributes {stable_mosaic.version = 11 : i64} {
  func.func @transformer_layer_kernel(%arg0: i32, %arg1: i32, %arg2: memref<1x8x32xf32, #tpu.memory_space<vmem>>, %arg3: memref<1x16x32xf32, #tpu.memory_space<vmem>>, %arg4: memref<4x32x8xf32, #tpu.memory_space<vmem>>, %arg5: memref<4x32x8xf32, #tpu.memory_space<vmem>>, %arg6: memref<4x32x8xf32, #tpu.memory_space<vmem>>, %arg7: memref<4x1x8xf32, #tpu.memory_space<vmem>>, %arg8: memref<4x1x8xf32, #tpu.memory_space<vmem>>, %arg9: memref<4x1x8xf32, #tpu.memory_space<vmem>>, %arg10: memref<4x8x32xf32, #tpu.memory_space<vmem>>, %arg11: memref<1x32xf32, #tpu.memory_space<vmem>>, %arg12: memref<32x128xf32, #tpu.memory_space<vmem>>, %arg13: memref<1x128xf32, #tpu.memory_space<vmem>>, %arg14: memref<128x32xf32, #tpu.memory_space<vmem>>, %arg15: memref<1x32xf32, #tpu.memory_space<vmem>>, %arg16: memref<1x32xf32, #tpu.memory_space<vmem>>, %arg17: memref<1x32xf32, #tpu.memory_space<vmem>>, %arg18: memref<1x32xf32, #tpu.memory_space<vmem>>, %arg19: memref<1x32xf32, #tpu.memory_space<vmem>>, %arg20: memref<1x8x32xf32, #tpu.memory_space<vmem>>, %arg21: memref<4x16x8xf32, #tpu.memory_space<vmem>>, %arg22: memref<4x16x8xf32, #tpu.memory_space<vmem>>) attributes {dimension_semantics = [#tpu.dimension_semantics<parallel>, #tpu.dimension_semantics<arbitrary>], iteration_bounds = array<i64: 2, 2>, scalar_prefetch = 0 : i64, scratch_operands = 2 : i64, tpu.core_type = #tpu.core_type<tc>, window_params = [{transform_indices = @transform_0, window_bounds = array<i64: 1, 8, 32>}, {transform_indices = @transform_1, window_bounds = array<i64: 1, 16, 32>}, {pipeline_mode = #tpu.pipeline_mode<synchronous>, transform_indices = @transform_2, window_bounds = array<i64: 4, 32, 8>}, {pipeline_mode = #tpu.pipeline_mode<synchronous>, transform_indices = @transform_3, window_bounds = array<i64: 4, 32, 8>}, {pipeline_mode = #tpu.pipeline_mode<synchronous>, transform_indices = @transform_4, window_bounds = array<i64: 4, 32, 8>}, {pipeline_mode = #tpu.pipeline_mode<synchronous>, transform_indices = @transform_5, window_bounds = array<i64: 4, 1, 8>}, {pipeline_mode = #tpu.pipeline_mode<synchronous>, transform_indices = @transform_6, window_bounds = array<i64: 4, 1, 8>}, {pipeline_mode = #tpu.pipeline_mode<synchronous>, transform_indices = @transform_7, window_bounds = array<i64: 4, 1, 8>}, {pipeline_mode = #tpu.pipeline_mode<synchronous>, transform_indices = @transform_8, window_bounds = array<i64: 4, 8, 32>}, {pipeline_mode = #tpu.pipeline_mode<synchronous>, transform_indices = @transform_9, window_bounds = array<i64: 1, 32>}, {pipeline_mode = #tpu.pipeline_mode<synchronous>, transform_indices = @transform_10, window_bounds = array<i64: 32, 128>}, {pipeline_mode = #tpu.pipeline_mode<synchronous>, transform_indices = @transform_11, window_bounds = array<i64: 1, 128>}, {pipeline_mode = #tpu.pipeline_mode<synchronous>, transform_indices = @transform_12, window_bounds = array<i64: 128, 32>}, {pipeline_mode = #tpu.pipeline_mode<synchronous>, transform_indices = @transform_13, window_bounds = array<i64: 1, 32>}, {pipeline_mode = #tpu.pipeline_mode<synchronous>, transform_indices = @transform_14, window_bounds = array<i64: 1, 32>}, {pipeline_mode = #tpu.pipeline_mode<synchronous>, transform_indices = @transform_15, window_bounds = array<i64: 1, 32>}, {pipeline_mode = #tpu.pipeline_mode<synchronous>, transform_indices = @transform_16, window_bounds = array<i64: 1, 32>}, {pipeline_mode = #tpu.pipeline_mode<synchronous>, transform_indices = @transform_17, window_bounds = array<i64: 1, 32>}, {transform_indices = @transform_18, window_bounds = array<i64: 1, 8, 32>}]} {
    %c0_i32 = arith.constant 0 : i32
    %0 = arith.cmpi eq, %arg1, %c0_i32 : i32
    %1 = arith.extui %0 : i1 to i32
    %c0_i32_0 = arith.constant 0 : i32
    %2 = arith.cmpi ne, %1, %c0_i32_0 : i32
    scf.if %2 {
      %c0_78 = arith.constant 0 : index
      %c0_79 = arith.constant 0 : index
      %c0_80 = arith.constant 0 : index
      %125 = vector.load %arg3[%c0_78, %c0_79, %c0_80] : memref<1x16x32xf32, #tpu.memory_space<vmem>>, vector<1x16x32xf32>
      %126 = vector.shape_cast %125 : vector<1x16x32xf32> to vector<16x32xf32>
      %c0_81 = arith.constant 0 : index
      %c0_82 = arith.constant 0 : index
      %c0_83 = arith.constant 0 : index
      %127 = vector.load %arg5[%c0_81, %c0_82, %c0_83] : memref<4x32x8xf32, #tpu.memory_space<vmem>>, vector<1x32x8xf32>
      %128 = vector.shape_cast %127 : vector<1x32x8xf32> to vector<32x8xf32>
      %cst_84 = arith.constant dense<0.000000e+00> : vector<16x8xf32>
      %129 = tpu.matmul %126, %128, %cst_84 {dimension_numbers = #tpu.dot_dimension_numbers<[1], [0], [0], [1], [0, 0, 1, 1], [], []>} : vector<16x32xf32>, vector<32x8xf32>, vector<16x8xf32> -> vector<16x8xf32>
      %c0_85 = arith.constant 0 : index
      %c0_86 = arith.constant 0 : index
      %c0_87 = arith.constant 0 : index
      %130 = vector.load %arg8[%c0_85, %c0_86, %c0_87] : memref<4x1x8xf32, #tpu.memory_space<vmem>>, vector<1x1x8xf32>
      %131 = vector.shape_cast %130 : vector<1x1x8xf32> to vector<1x8xf32>
      %132 = vector.broadcast %131 : vector<1x8xf32> to vector<16x8xf32>
      %133 = arith.addf %129, %132 : vector<16x8xf32>
      %c0_88 = arith.constant 0 : index
      %c0_89 = arith.constant 0 : index
      %c0_90 = arith.constant 0 : index
      %134 = vector.load %arg6[%c0_88, %c0_89, %c0_90] : memref<4x32x8xf32, #tpu.memory_space<vmem>>, vector<1x32x8xf32>
      %135 = vector.shape_cast %134 : vector<1x32x8xf32> to vector<32x8xf32>
      %cst_91 = arith.constant dense<0.000000e+00> : vector<16x8xf32>
      %136 = tpu.matmul %126, %135, %cst_91 {dimension_numbers = #tpu.dot_dimension_numbers<[1], [0], [0], [1], [0, 0, 1, 1], [], []>} : vector<16x32xf32>, vector<32x8xf32>, vector<16x8xf32> -> vector<16x8xf32>
      %c0_92 = arith.constant 0 : index
      %c0_93 = arith.constant 0 : index
      %c0_94 = arith.constant 0 : index
      %137 = vector.load %arg9[%c0_92, %c0_93, %c0_94] : memref<4x1x8xf32, #tpu.memory_space<vmem>>, vector<1x1x8xf32>
      %138 = vector.shape_cast %137 : vector<1x1x8xf32> to vector<1x8xf32>
      %139 = vector.broadcast %138 : vector<1x8xf32> to vector<16x8xf32>
      %140 = arith.addf %136, %139 : vector<16x8xf32>
      %c0_95 = arith.constant 0 : index
      %c0_96 = arith.constant 0 : index
      %c0_97 = arith.constant 0 : index
      %141 = vector.load %arg21[%c0_95, %c0_96, %c0_97] : memref<4x16x8xf32, #tpu.memory_space<vmem>>, vector<1x16x8xf32>
      %142 = vector.shape_cast %141 : vector<1x16x8xf32> to vector<16x8xf32>
      %143 = vector.shape_cast %133 : vector<16x8xf32> to vector<1x16x8xf32>
      tpu.vector_store %arg21[%c0_95, %c0_96, %c0_97], %143 {strides = array<i32>} : memref<4x16x8xf32, #tpu.memory_space<vmem>>, vector<1x16x8xf32>,
      %c0_98 = arith.constant 0 : index
      %c0_99 = arith.constant 0 : index
      %c0_100 = arith.constant 0 : index
      %144 = vector.load %arg22[%c0_98, %c0_99, %c0_100] : memref<4x16x8xf32, #tpu.memory_space<vmem>>, vector<1x16x8xf32>
      %145 = vector.shape_cast %144 : vector<1x16x8xf32> to vector<16x8xf32>
      %146 = vector.shape_cast %140 : vector<16x8xf32> to vector<1x16x8xf32>
      tpu.vector_store %arg22[%c0_98, %c0_99, %c0_100], %146 {strides = array<i32>} : memref<4x16x8xf32, #tpu.memory_space<vmem>>, vector<1x16x8xf32>,
      %c1_101 = arith.constant 1 : index
      %c0_102 = arith.constant 0 : index
      %c0_103 = arith.constant 0 : index
      %147 = vector.load %arg5[%c1_101, %c0_102, %c0_103] : memref<4x32x8xf32, #tpu.memory_space<vmem>>, vector<1x32x8xf32>
      %148 = vector.shape_cast %147 : vector<1x32x8xf32> to vector<32x8xf32>
      %cst_104 = arith.constant dense<0.000000e+00> : vector<16x8xf32>
      %149 = tpu.matmul %126, %148, %cst_104 {dimension_numbers = #tpu.dot_dimension_numbers<[1], [0], [0], [1], [0, 0, 1, 1], [], []>} : vector<16x32xf32>, vector<32x8xf32>, vector<16x8xf32> -> vector<16x8xf32>
      %c1_105 = arith.constant 1 : index
      %c0_106 = arith.constant 0 : index
      %c0_107 = arith.constant 0 : index
      %150 = vector.load %arg8[%c1_105, %c0_106, %c0_107] : memref<4x1x8xf32, #tpu.memory_space<vmem>>, vector<1x1x8xf32>
      %151 = vector.shape_cast %150 : vector<1x1x8xf32> to vector<1x8xf32>
      %152 = vector.broadcast %151 : vector<1x8xf32> to vector<16x8xf32>
      %153 = arith.addf %149, %152 : vector<16x8xf32>
      %c1_108 = arith.constant 1 : index
      %c0_109 = arith.constant 0 : index
      %c0_110 = arith.constant 0 : index
      %154 = vector.load %arg6[%c1_108, %c0_109, %c0_110] : memref<4x32x8xf32, #tpu.memory_space<vmem>>, vector<1x32x8xf32>
      %155 = vector.shape_cast %154 : vector<1x32x8xf32> to vector<32x8xf32>
      %cst_111 = arith.constant dense<0.000000e+00> : vector<16x8xf32>
      %156 = tpu.matmul %126, %155, %cst_111 {dimension_numbers = #tpu.dot_dimension_numbers<[1], [0], [0], [1], [0, 0, 1, 1], [], []>} : vector<16x32xf32>, vector<32x8xf32>, vector<16x8xf32> -> vector<16x8xf32>
      %c1_112 = arith.constant 1 : index
      %c0_113 = arith.constant 0 : index
      %c0_114 = arith.constant 0 : index
      %157 = vector.load %arg9[%c1_112, %c0_113, %c0_114] : memref<4x1x8xf32, #tpu.memory_space<vmem>>, vector<1x1x8xf32>
      %158 = vector.shape_cast %157 : vector<1x1x8xf32> to vector<1x8xf32>
      %159 = vector.broadcast %158 : vector<1x8xf32> to vector<16x8xf32>
      %160 = arith.addf %156, %159 : vector<16x8xf32>
      %c1_115 = arith.constant 1 : index
      %c0_116 = arith.constant 0 : index
      %c0_117 = arith.constant 0 : index
      %161 = vector.load %arg21[%c1_115, %c0_116, %c0_117] : memref<4x16x8xf32, #tpu.memory_space<vmem>>, vector<1x16x8xf32>
      %162 = vector.shape_cast %161 : vector<1x16x8xf32> to vector<16x8xf32>
      %163 = vector.shape_cast %153 : vector<16x8xf32> to vector<1x16x8xf32>
      tpu.vector_store %arg21[%c1_115, %c0_116, %c0_117], %163 {strides = array<i32>} : memref<4x16x8xf32, #tpu.memory_space<vmem>>, vector<1x16x8xf32>,
      %c1_118 = arith.constant 1 : index
      %c0_119 = arith.constant 0 : index
      %c0_120 = arith.constant 0 : index
      %164 = vector.load %arg22[%c1_118, %c0_119, %c0_120] : memref<4x16x8xf32, #tpu.memory_space<vmem>>, vector<1x16x8xf32>
      %165 = vector.shape_cast %164 : vector<1x16x8xf32> to vector<16x8xf32>
      %166 = vector.shape_cast %160 : vector<16x8xf32> to vector<1x16x8xf32>
      tpu.vector_store %arg22[%c1_118, %c0_119, %c0_120], %166 {strides = array<i32>} : memref<4x16x8xf32, #tpu.memory_space<vmem>>, vector<1x16x8xf32>,
      %c2_121 = arith.constant 2 : index
      %c0_122 = arith.constant 0 : index
      %c0_123 = arith.constant 0 : index
      %167 = vector.load %arg5[%c2_121, %c0_122, %c0_123] : memref<4x32x8xf32, #tpu.memory_space<vmem>>, vector<1x32x8xf32>
      %168 = vector.shape_cast %167 : vector<1x32x8xf32> to vector<32x8xf32>
      %cst_124 = arith.constant dense<0.000000e+00> : vector<16x8xf32>
      %169 = tpu.matmul %126, %168, %cst_124 {dimension_numbers = #tpu.dot_dimension_numbers<[1], [0], [0], [1], [0, 0, 1, 1], [], []>} : vector<16x32xf32>, vector<32x8xf32>, vector<16x8xf32> -> vector<16x8xf32>
      %c2_125 = arith.constant 2 : index
      %c0_126 = arith.constant 0 : index
      %c0_127 = arith.constant 0 : index
      %170 = vector.load %arg8[%c2_125, %c0_126, %c0_127] : memref<4x1x8xf32, #tpu.memory_space<vmem>>, vector<1x1x8xf32>
      %171 = vector.shape_cast %170 : vector<1x1x8xf32> to vector<1x8xf32>
      %172 = vector.broadcast %171 : vector<1x8xf32> to vector<16x8xf32>
      %173 = arith.addf %169, %172 : vector<16x8xf32>
      %c2_128 = arith.constant 2 : index
      %c0_129 = arith.constant 0 : index
      %c0_130 = arith.constant 0 : index
      %174 = vector.load %arg6[%c2_128, %c0_129, %c0_130] : memref<4x32x8xf32, #tpu.memory_space<vmem>>, vector<1x32x8xf32>
      %175 = vector.shape_cast %174 : vector<1x32x8xf32> to vector<32x8xf32>
      %cst_131 = arith.constant dense<0.000000e+00> : vector<16x8xf32>
      %176 = tpu.matmul %126, %175, %cst_131 {dimension_numbers = #tpu.dot_dimension_numbers<[1], [0], [0], [1], [0, 0, 1, 1], [], []>} : vector<16x32xf32>, vector<32x8xf32>, vector<16x8xf32> -> vector<16x8xf32>
      %c2_132 = arith.constant 2 : index
      %c0_133 = arith.constant 0 : index
      %c0_134 = arith.constant 0 : index
      %177 = vector.load %arg9[%c2_132, %c0_133, %c0_134] : memref<4x1x8xf32, #tpu.memory_space<vmem>>, vector<1x1x8xf32>
      %178 = vector.shape_cast %177 : vector<1x1x8xf32> to vector<1x8xf32>
      %179 = vector.broadcast %178 : vector<1x8xf32> to vector<16x8xf32>
      %180 = arith.addf %176, %179 : vector<16x8xf32>
      %c2_135 = arith.constant 2 : index
      %c0_136 = arith.constant 0 : index
      %c0_137 = arith.constant 0 : index
      %181 = vector.load %arg21[%c2_135, %c0_136, %c0_137] : memref<4x16x8xf32, #tpu.memory_space<vmem>>, vector<1x16x8xf32>
      %182 = vector.shape_cast %181 : vector<1x16x8xf32> to vector<16x8xf32>
      %183 = vector.shape_cast %173 : vector<16x8xf32> to vector<1x16x8xf32>
      tpu.vector_store %arg21[%c2_135, %c0_136, %c0_137], %183 {strides = array<i32>} : memref<4x16x8xf32, #tpu.memory_space<vmem>>, vector<1x16x8xf32>,
      %c2_138 = arith.constant 2 : index
      %c0_139 = arith.constant 0 : index
      %c0_140 = arith.constant 0 : index
      %184 = vector.load %arg22[%c2_138, %c0_139, %c0_140] : memref<4x16x8xf32, #tpu.memory_space<vmem>>, vector<1x16x8xf32>
      %185 = vector.shape_cast %184 : vector<1x16x8xf32> to vector<16x8xf32>
      %186 = vector.shape_cast %180 : vector<16x8xf32> to vector<1x16x8xf32>
      tpu.vector_store %arg22[%c2_138, %c0_139, %c0_140], %186 {strides = array<i32>} : memref<4x16x8xf32, #tpu.memory_space<vmem>>, vector<1x16x8xf32>,
      %c3_141 = arith.constant 3 : index
      %c0_142 = arith.constant 0 : index
      %c0_143 = arith.constant 0 : index
      %187 = vector.load %arg5[%c3_141, %c0_142, %c0_143] : memref<4x32x8xf32, #tpu.memory_space<vmem>>, vector<1x32x8xf32>
      %188 = vector.shape_cast %187 : vector<1x32x8xf32> to vector<32x8xf32>
      %cst_144 = arith.constant dense<0.000000e+00> : vector<16x8xf32>
      %189 = tpu.matmul %126, %188, %cst_144 {dimension_numbers = #tpu.dot_dimension_numbers<[1], [0], [0], [1], [0, 0, 1, 1], [], []>} : vector<16x32xf32>, vector<32x8xf32>, vector<16x8xf32> -> vector<16x8xf32>
      %c3_145 = arith.constant 3 : index
      %c0_146 = arith.constant 0 : index
      %c0_147 = arith.constant 0 : index
      %190 = vector.load %arg8[%c3_145, %c0_146, %c0_147] : memref<4x1x8xf32, #tpu.memory_space<vmem>>, vector<1x1x8xf32>
      %191 = vector.shape_cast %190 : vector<1x1x8xf32> to vector<1x8xf32>
      %192 = vector.broadcast %191 : vector<1x8xf32> to vector<16x8xf32>
      %193 = arith.addf %189, %192 : vector<16x8xf32>
      %c3_148 = arith.constant 3 : index
      %c0_149 = arith.constant 0 : index
      %c0_150 = arith.constant 0 : index
      %194 = vector.load %arg6[%c3_148, %c0_149, %c0_150] : memref<4x32x8xf32, #tpu.memory_space<vmem>>, vector<1x32x8xf32>
      %195 = vector.shape_cast %194 : vector<1x32x8xf32> to vector<32x8xf32>
      %cst_151 = arith.constant dense<0.000000e+00> : vector<16x8xf32>
      %196 = tpu.matmul %126, %195, %cst_151 {dimension_numbers = #tpu.dot_dimension_numbers<[1], [0], [0], [1], [0, 0, 1, 1], [], []>} : vector<16x32xf32>, vector<32x8xf32>, vector<16x8xf32> -> vector<16x8xf32>
      %c3_152 = arith.constant 3 : index
      %c0_153 = arith.constant 0 : index
      %c0_154 = arith.constant 0 : index
      %197 = vector.load %arg9[%c3_152, %c0_153, %c0_154] : memref<4x1x8xf32, #tpu.memory_space<vmem>>, vector<1x1x8xf32>
      %198 = vector.shape_cast %197 : vector<1x1x8xf32> to vector<1x8xf32>
      %199 = vector.broadcast %198 : vector<1x8xf32> to vector<16x8xf32>
      %200 = arith.addf %196, %199 : vector<16x8xf32>
      %c3_155 = arith.constant 3 : index
      %c0_156 = arith.constant 0 : index
      %c0_157 = arith.constant 0 : index
      %201 = vector.load %arg21[%c3_155, %c0_156, %c0_157] : memref<4x16x8xf32, #tpu.memory_space<vmem>>, vector<1x16x8xf32>
      %202 = vector.shape_cast %201 : vector<1x16x8xf32> to vector<16x8xf32>
      %203 = vector.shape_cast %193 : vector<16x8xf32> to vector<1x16x8xf32>
      tpu.vector_store %arg21[%c3_155, %c0_156, %c0_157], %203 {strides = array<i32>} : memref<4x16x8xf32, #tpu.memory_space<vmem>>, vector<1x16x8xf32>,
      %c3_158 = arith.constant 3 : index
      %c0_159 = arith.constant 0 : index
      %c0_160 = arith.constant 0 : index
      %204 = vector.load %arg22[%c3_158, %c0_159, %c0_160] : memref<4x16x8xf32, #tpu.memory_space<vmem>>, vector<1x16x8xf32>
      %205 = vector.shape_cast %204 : vector<1x16x8xf32> to vector<16x8xf32>
      %206 = vector.shape_cast %200 : vector<16x8xf32> to vector<1x16x8xf32>
      tpu.vector_store %arg22[%c3_158, %c0_159, %c0_160], %206 {strides = array<i32>} : memref<4x16x8xf32, #tpu.memory_space<vmem>>, vector<1x16x8xf32>,
    } else {
    }
    %c0 = arith.constant 0 : index
    %c0_1 = arith.constant 0 : index
    %c0_2 = arith.constant 0 : index
    %3 = vector.load %arg2[%c0, %c0_1, %c0_2] : memref<1x8x32xf32, #tpu.memory_space<vmem>>, vector<1x8x32xf32>
    %4 = vector.shape_cast %3 : vector<1x8x32xf32> to vector<8x32xf32>
    %c0_3 = arith.constant 0 : index
    %c0_4 = arith.constant 0 : index
    %c0_5 = arith.constant 0 : index
    %5 = vector.load %arg4[%c0_3, %c0_4, %c0_5] : memref<4x32x8xf32, #tpu.memory_space<vmem>>, vector<1x32x8xf32>
    %6 = vector.shape_cast %5 : vector<1x32x8xf32> to vector<32x8xf32>
    %cst = arith.constant dense<0.000000e+00> : vector<8x8xf32>
    %7 = tpu.matmul %4, %6, %cst {dimension_numbers = #tpu.dot_dimension_numbers<[1], [0], [0], [1], [0, 0, 1, 1], [], []>} : vector<8x32xf32>, vector<32x8xf32>, vector<8x8xf32> -> vector<8x8xf32>
    %c0_6 = arith.constant 0 : index
    %c0_7 = arith.constant 0 : index
    %c0_8 = arith.constant 0 : index
    %8 = vector.load %arg7[%c0_6, %c0_7, %c0_8] : memref<4x1x8xf32, #tpu.memory_space<vmem>>, vector<1x1x8xf32>
    %9 = vector.shape_cast %8 : vector<1x1x8xf32> to vector<1x8xf32>
    %10 = vector.broadcast %9 : vector<1x8xf32> to vector<8x8xf32>
    %11 = arith.addf %7, %10 : vector<8x8xf32>
    %c1 = arith.constant 1 : index
    %c0_9 = arith.constant 0 : index
    %c0_10 = arith.constant 0 : index
    %12 = vector.load %arg4[%c1, %c0_9, %c0_10] : memref<4x32x8xf32, #tpu.memory_space<vmem>>, vector<1x32x8xf32>
    %13 = vector.shape_cast %12 : vector<1x32x8xf32> to vector<32x8xf32>
    %cst_11 = arith.constant dense<0.000000e+00> : vector<8x8xf32>
    %14 = tpu.matmul %4, %13, %cst_11 {dimension_numbers = #tpu.dot_dimension_numbers<[1], [0], [0], [1], [0, 0, 1, 1], [], []>} : vector<8x32xf32>, vector<32x8xf32>, vector<8x8xf32> -> vector<8x8xf32>
    %c1_12 = arith.constant 1 : index
    %c0_13 = arith.constant 0 : index
    %c0_14 = arith.constant 0 : index
    %15 = vector.load %arg7[%c1_12, %c0_13, %c0_14] : memref<4x1x8xf32, #tpu.memory_space<vmem>>, vector<1x1x8xf32>
    %16 = vector.shape_cast %15 : vector<1x1x8xf32> to vector<1x8xf32>
    %17 = vector.broadcast %16 : vector<1x8xf32> to vector<8x8xf32>
    %18 = arith.addf %14, %17 : vector<8x8xf32>
    %c2 = arith.constant 2 : index
    %c0_15 = arith.constant 0 : index
    %c0_16 = arith.constant 0 : index
    %19 = vector.load %arg4[%c2, %c0_15, %c0_16] : memref<4x32x8xf32, #tpu.memory_space<vmem>>, vector<1x32x8xf32>
    %20 = vector.shape_cast %19 : vector<1x32x8xf32> to vector<32x8xf32>
    %cst_17 = arith.constant dense<0.000000e+00> : vector<8x8xf32>
    %21 = tpu.matmul %4, %20, %cst_17 {dimension_numbers = #tpu.dot_dimension_numbers<[1], [0], [0], [1], [0, 0, 1, 1], [], []>} : vector<8x32xf32>, vector<32x8xf32>, vector<8x8xf32> -> vector<8x8xf32>
    %c2_18 = arith.constant 2 : index
    %c0_19 = arith.constant 0 : index
    %c0_20 = arith.constant 0 : index
    %22 = vector.load %arg7[%c2_18, %c0_19, %c0_20] : memref<4x1x8xf32, #tpu.memory_space<vmem>>, vector<1x1x8xf32>
    %23 = vector.shape_cast %22 : vector<1x1x8xf32> to vector<1x8xf32>
    %24 = vector.broadcast %23 : vector<1x8xf32> to vector<8x8xf32>
    %25 = arith.addf %21, %24 : vector<8x8xf32>
    %c3 = arith.constant 3 : index
    %c0_21 = arith.constant 0 : index
    %c0_22 = arith.constant 0 : index
    %26 = vector.load %arg4[%c3, %c0_21, %c0_22] : memref<4x32x8xf32, #tpu.memory_space<vmem>>, vector<1x32x8xf32>
    %27 = vector.shape_cast %26 : vector<1x32x8xf32> to vector<32x8xf32>
    %cst_23 = arith.constant dense<0.000000e+00> : vector<8x8xf32>
    %28 = tpu.matmul %4, %27, %cst_23 {dimension_numbers = #tpu.dot_dimension_numbers<[1], [0], [0], [1], [0, 0, 1, 1], [], []>} : vector<8x32xf32>, vector<32x8xf32>, vector<8x8xf32> -> vector<8x8xf32>
    %c3_24 = arith.constant 3 : index
    %c0_25 = arith.constant 0 : index
    %c0_26 = arith.constant 0 : index
    %29 = vector.load %arg7[%c3_24, %c0_25, %c0_26] : memref<4x1x8xf32, #tpu.memory_space<vmem>>, vector<1x1x8xf32>
    %30 = vector.shape_cast %29 : vector<1x1x8xf32> to vector<1x8xf32>
    %31 = vector.broadcast %30 : vector<1x8xf32> to vector<8x8xf32>
    %32 = arith.addf %28, %31 : vector<8x8xf32>
    %33 = vector.shape_cast %11 : vector<8x8xf32> to vector<1x8x8xf32>
    %34 = vector.shape_cast %18 : vector<8x8xf32> to vector<1x8x8xf32>
    %35 = vector.shape_cast %25 : vector<8x8xf32> to vector<1x8x8xf32>
    %36 = vector.shape_cast %32 : vector<8x8xf32> to vector<1x8x8xf32>
    %37 = tpu.concatenate %33, %34, %35, %36 in 0 : vector<1x8x8xf32>, vector<1x8x8xf32>, vector<1x8x8xf32>, vector<1x8x8xf32> -> vector<4x8x8xf32>
    %c0_27 = arith.constant 0 : index
    %c0_28 = arith.constant 0 : index
    %c0_29 = arith.constant 0 : index
    %38 = vector.load %arg21[%c0_27, %c0_28, %c0_29] : memref<4x16x8xf32, #tpu.memory_space<vmem>>, vector<4x16x8xf32>
    %c0_30 = arith.constant 0 : index
    %c0_31 = arith.constant 0 : index
    %c0_32 = arith.constant 0 : index
    %39 = vector.load %arg22[%c0_30, %c0_31, %c0_32] : memref<4x16x8xf32, #tpu.memory_space<vmem>>, vector<4x16x8xf32>
    "tpu.trace_start"() <{level = 10 : i32, message = "hqd,hkd->hqk"}> : () -> ()
    %cst_33 = arith.constant dense<0.000000e+00> : vector<4x8x16xf32>
    %40 = tpu.matmul %37, %38, %cst_33 {dimension_numbers = #tpu.dot_dimension_numbers<[2], [2], [1], [1], [0, 0, 0, 1, 1, 1], [0], [0]>} : vector<4x8x8xf32>, vector<4x16x8xf32>, vector<4x8x16xf32> -> vector<4x8x16xf32>
    "tpu.trace_stop"() : () -> ()
    %cst_34 = arith.constant dense<0xFF800000> : vector<4x8xf32>
    %41 = vector.multi_reduction <maximumf>, %40, %cst_34 [2] : vector<4x8x16xf32> to vector<4x8xf32>
    %42 = vector.shape_cast %41 : vector<4x8xf32> to vector<4x8x1xf32>
    %43 = vector.broadcast %42 : vector<4x8x1xf32> to vector<4x8x16xf32>
    %44 = arith.subf %40, %43 : vector<4x8x16xf32>
    %45 = math.exp %44 : vector<4x8x16xf32>
    %cst_35 = arith.constant dense<0.000000e+00> : vector<4x8xf32>
    %46 = vector.multi_reduction <add>, %45, %cst_35 [2] : vector<4x8x16xf32> to vector<4x8xf32>
    %47 = vector.shape_cast %46 : vector<4x8xf32> to vector<4x8x1xf32>
    %48 = tpu.reciprocal %47 {approx = true} : vector<4x8x1xf32> -> vector<4x8x1xf32>
    %49 = vector.broadcast %48 : vector<4x8x1xf32> to vector<4x8x16xf32>
    %50 = arith.mulf %45, %49 : vector<4x8x16xf32>
    "tpu.trace_start"() <{level = 10 : i32, message = "hqk,hkd->hqd"}> : () -> ()
    %cst_36 = arith.constant dense<0.000000e+00> : vector<4x8x8xf32>
    %51 = tpu.matmul %50, %39, %cst_36 {dimension_numbers = #tpu.dot_dimension_numbers<[2], [1], [1], [2], [0, 0, 0, 1, 1, 2], [0], [0]>} : vector<4x8x16xf32>, vector<4x16x8xf32>, vector<4x8x8xf32> -> vector<4x8x8xf32>
    "tpu.trace_stop"() : () -> ()
    %c0_37 = arith.constant 0 : index
    %c0_38 = arith.constant 0 : index
    %c0_39 = arith.constant 0 : index
    %52 = vector.load %arg10[%c0_37, %c0_38, %c0_39] : memref<4x8x32xf32, #tpu.memory_space<vmem>>, vector<4x8x32xf32>
    "tpu.trace_start"() <{level = 10 : i32, message = "hqd,hdo->hqo"}> : () -> ()
    %cst_40 = arith.constant dense<0.000000e+00> : vector<4x8x32xf32>
    %53 = tpu.matmul %51, %52, %cst_40 {dimension_numbers = #tpu.dot_dimension_numbers<[2], [1], [1], [2], [0, 0, 0, 1, 1, 2], [0], [0]>} : vector<4x8x8xf32>, vector<4x8x32xf32>, vector<4x8x32xf32> -> vector<4x8x32xf32>
    "tpu.trace_stop"() : () -> ()
    %cst_41 = arith.constant dense<0.000000e+00> : vector<8x32xf32>
    %54 = vector.multi_reduction <add>, %53, %cst_41 [0] : vector<4x8x32xf32> to vector<8x32xf32>
    %c0_42 = arith.constant 0 : index
    %c0_43 = arith.constant 0 : index
    %55 = vector.load %arg11[%c0_42, %c0_43] : memref<1x32xf32, #tpu.memory_space<vmem>>, vector<1x32xf32>
    %56 = vector.broadcast %55 : vector<1x32xf32> to vector<8x32xf32>
    %57 = arith.addf %54, %56 : vector<8x32xf32>
    %58 = arith.addf %4, %57 : vector<8x32xf32>
    %cst_44 = arith.constant dense<0.000000e+00> : vector<8xf32>
    %59 = vector.multi_reduction <add>, %58, %cst_44 [1] : vector<8x32xf32> to vector<8xf32>
    %60 = vector.shape_cast %59 : vector<8xf32> to vector<8x1xf32>
    %cst_45 = arith.constant 3.200000e+01 : f32
    %61 = vector.broadcast %cst_45 : f32 to vector<8x1xf32>
    %62 = arith.divf %60, %61 : vector<8x1xf32>
    %63 = vector.broadcast %62 : vector<8x1xf32> to vector<8x32xf32>
    %64 = arith.subf %58, %63 : vector<8x32xf32>
    %65 = arith.mulf %64, %64 : vector<8x32xf32>
    %cst_46 = arith.constant dense<0.000000e+00> : vector<8xf32>
    %66 = vector.multi_reduction <add>, %65, %cst_46 [1] : vector<8x32xf32> to vector<8xf32>
    %67 = vector.shape_cast %66 : vector<8xf32> to vector<8x1xf32>
    %cst_47 = arith.constant 3.200000e+01 : f32
    %68 = vector.broadcast %cst_47 : f32 to vector<8x1xf32>
    %69 = arith.divf %67, %68 : vector<8x1xf32>
    %cst_48 = arith.constant 9.99999974E-6 : f32
    %70 = vector.broadcast %cst_48 : f32 to vector<8x1xf32>
    %71 = arith.addf %69, %70 : vector<8x1xf32>
    %72 = math.rsqrt %71 : vector<8x1xf32>
    %73 = vector.broadcast %72 : vector<8x1xf32> to vector<8x32xf32>
    %74 = arith.mulf %64, %73 : vector<8x32xf32>
    %c0_49 = arith.constant 0 : index
    %c0_50 = arith.constant 0 : index
    %75 = vector.load %arg16[%c0_49, %c0_50] : memref<1x32xf32, #tpu.memory_space<vmem>>, vector<1x32xf32>
    %76 = vector.broadcast %75 : vector<1x32xf32> to vector<8x32xf32>
    %77 = arith.mulf %74, %76 : vector<8x32xf32>
    %c0_51 = arith.constant 0 : index
    %c0_52 = arith.constant 0 : index
    %78 = vector.load %arg17[%c0_51, %c0_52] : memref<1x32xf32, #tpu.memory_space<vmem>>, vector<1x32xf32>
    %79 = vector.broadcast %78 : vector<1x32xf32> to vector<8x32xf32>
    %80 = arith.addf %77, %79 : vector<8x32xf32>
    %c0_53 = arith.constant 0 : index
    %c0_54 = arith.constant 0 : index
    %81 = vector.load %arg12[%c0_53, %c0_54] : memref<32x128xf32, #tpu.memory_space<vmem>>, vector<32x128xf32>
    %cst_55 = arith.constant dense<0.000000e+00> : vector<8x128xf32>
    %82 = tpu.matmul %80, %81, %cst_55 {dimension_numbers = #tpu.dot_dimension_numbers<[1], [0], [0], [1], [0, 0, 1, 1], [], []>} : vector<8x32xf32>, vector<32x128xf32>, vector<8x128xf32> -> vector<8x128xf32>
    %c0_56 = arith.constant 0 : index
    %c0_57 = arith.constant 0 : index
    %83 = vector.load %arg13[%c0_56, %c0_57] : memref<1x128xf32, #tpu.memory_space<vmem>>, vector<1x128xf32>
    %84 = vector.broadcast %83 : vector<1x128xf32> to vector<8x128xf32>
    %85 = arith.addf %82, %84 : vector<8x128xf32>
    %cst_58 = arith.constant 0.000000e+00 : f32
    %86 = vector.broadcast %cst_58 : f32 to vector<8x128xf32>
    %87 = arith.cmpf ogt, %85, %86 : vector<8x128xf32>
    %cst_59 = arith.constant 0.000000e+00 : f32
    %88 = vector.broadcast %cst_59 : f32 to vector<8x128xf32>
    %89 = arith.minimumf %85, %88 : vector<8x128xf32>
    %90 = math.exp %89 : vector<8x128xf32>
    %cst_60 = arith.constant 1.000000e+00 : f32
    %91 = vector.broadcast %cst_60 : f32 to vector<8x128xf32>
    %92 = arith.subf %90, %91 : vector<8x128xf32>
    %93 = arith.select %87, %85, %92 : vector<8x128xi1>, vector<8x128xf32>
    %c0_61 = arith.constant 0 : index
    %c0_62 = arith.constant 0 : index
    %94 = vector.load %arg14[%c0_61, %c0_62] : memref<128x32xf32, #tpu.memory_space<vmem>>, vector<128x32xf32>
    %cst_63 = arith.constant dense<0.000000e+00> : vector<8x32xf32>
    %95 = tpu.matmul %93, %94, %cst_63 {dimension_numbers = #tpu.dot_dimension_numbers<[1], [0], [0], [1], [0, 0, 1, 1], [], []>} : vector<8x128xf32>, vector<128x32xf32>, vector<8x32xf32> -> vector<8x32xf32>
    %c0_64 = arith.constant 0 : index
    %c0_65 = arith.constant 0 : index
    %96 = vector.load %arg15[%c0_64, %c0_65] : memref<1x32xf32, #tpu.memory_space<vmem>>, vector<1x32xf32>
    %97 = vector.broadcast %96 : vector<1x32xf32> to vector<8x32xf32>
    %98 = arith.addf %95, %97 : vector<8x32xf32>
    %99 = arith.addf %80, %98 : vector<8x32xf32>
    %cst_66 = arith.constant dense<0.000000e+00> : vector<8xf32>
    %100 = vector.multi_reduction <add>, %99, %cst_66 [1] : vector<8x32xf32> to vector<8xf32>
    %101 = vector.shape_cast %100 : vector<8xf32> to vector<8x1xf32>
    %cst_67 = arith.constant 3.200000e+01 : f32
    %102 = vector.broadcast %cst_67 : f32 to vector<8x1xf32>
    %103 = arith.divf %101, %102 : vector<8x1xf32>
    %104 = vector.broadcast %103 : vector<8x1xf32> to vector<8x32xf32>
    %105 = arith.subf %99, %104 : vector<8x32xf32>
    %106 = arith.mulf %105, %105 : vector<8x32xf32>
    %cst_68 = arith.constant dense<0.000000e+00> : vector<8xf32>
    %107 = vector.multi_reduction <add>, %106, %cst_68 [1] : vector<8x32xf32> to vector<8xf32>
    %108 = vector.shape_cast %107 : vector<8xf32> to vector<8x1xf32>
    %cst_69 = arith.constant 3.200000e+01 : f32
    %109 = vector.broadcast %cst_69 : f32 to vector<8x1xf32>
    %110 = arith.divf %108, %109 : vector<8x1xf32>
    %cst_70 = arith.constant 9.99999974E-6 : f32
    %111 = vector.broadcast %cst_70 : f32 to vector<8x1xf32>
    %112 = arith.addf %110, %111 : vector<8x1xf32>
    %113 = math.rsqrt %112 : vector<8x1xf32>
    %114 = vector.broadcast %113 : vector<8x1xf32> to vector<8x32xf32>
    %115 = arith.mulf %105, %114 : vector<8x32xf32>
    %c0_71 = arith.constant 0 : index
    %c0_72 = arith.constant 0 : index
    %116 = vector.load %arg18[%c0_71, %c0_72] : memref<1x32xf32, #tpu.memory_space<vmem>>, vector<1x32xf32>
    %117 = vector.broadcast %116 : vector<1x32xf32> to vector<8x32xf32>
    %118 = arith.mulf %115, %117 : vector<8x32xf32>
    %c0_73 = arith.constant 0 : index
    %c0_74 = arith.constant 0 : index
    %119 = vector.load %arg19[%c0_73, %c0_74] : memref<1x32xf32, #tpu.memory_space<vmem>>, vector<1x32xf32>
    %120 = vector.broadcast %119 : vector<1x32xf32> to vector<8x32xf32>
    %121 = arith.addf %118, %120 : vector<8x32xf32>
    %c0_75 = arith.constant 0 : index
    %c0_76 = arith.constant 0 : index
    %c0_77 = arith.constant 0 : index
    %122 = vector.load %arg20[%c0_75, %c0_76, %c0_77] : memref<1x8x32xf32, #tpu.memory_space<vmem>>, vector<1x8x32xf32>
    %123 = vector.shape_cast %122 : vector<1x8x32xf32> to vector<8x32xf32>
    %124 = vector.shape_cast %121 : vector<8x32xf32> to vector<1x8x32xf32>
    tpu.vector_store %arg20[%c0_75, %c0_76, %c0_77], %124 {strides = array<i32>} : memref<1x8x32xf32, #tpu.memory_space<vmem>>, vector<1x8x32xf32>,
    return
  }
  func.func @transform_0(%arg0: i32, %arg1: i32) -> (i32, i32, i32) {
    %c0_i32 = arith.constant 0 : i32
    %c0_i32_0 = arith.constant 0 : i32
    return %arg0, %arg1, %c0_i32 : i32, i32, i32
  }
  func.func @transform_1(%arg0: i32, %arg1: i32) -> (i32, i32, i32) {
    %c0_i32 = arith.constant 0 : i32
    %c0_i32_0 = arith.constant 0 : i32
    %c0_i32_1 = arith.constant 0 : i32
    return %arg0, %c0_i32, %c0_i32_0 : i32, i32, i32
  }
  func.func @transform_2(%arg0: i32, %arg1: i32) -> (i32, i32, i32) {
    %c0_i32 = arith.constant 0 : i32
    %c0_i32_0 = arith.constant 0 : i32
    %c0_i32_1 = arith.constant 0 : i32
    %c0_i32_2 = arith.constant 0 : i32
    return %c0_i32, %c0_i32_0, %c0_i32_1 : i32, i32, i32
  }
  func.func @transform_3(%arg0: i32, %arg1: i32) -> (i32, i32, i32) {
    %c0_i32 = arith.constant 0 : i32
    %c0_i32_0 = arith.constant 0 : i32
    %c0_i32_1 = arith.constant 0 : i32
    %c0_i32_2 = arith.constant 0 : i32
    return %c0_i32, %c0_i32_0, %c0_i32_1 : i32, i32, i32
  }
  func.func @transform_4(%arg0: i32, %arg1: i32) -> (i32, i32, i32) {
    %c0_i32 = arith.constant 0 : i32
    %c0_i32_0 = arith.constant 0 : i32
    %c0_i32_1 = arith.constant 0 : i32
    %c0_i32_2 = arith.constant 0 : i32
    return %c0_i32, %c0_i32_0, %c0_i32_1 : i32, i32, i32
  }
  func.func @transform_5(%arg0: i32, %arg1: i32) -> (i32, i32, i32) {
    %c0_i32 = arith.constant 0 : i32
    %c0_i32_0 = arith.constant 0 : i32
    %c0_i32_1 = arith.constant 0 : i32
    %c0_i32_2 = arith.constant 0 : i32
    return %c0_i32, %c0_i32_0, %c0_i32_1 : i32, i32, i32
  }
  func.func @transform_6(%arg0: i32, %arg1: i32) -> (i32, i32, i32) {
    %c0_i32 = arith.constant 0 : i32
    %c0_i32_0 = arith.constant 0 : i32
    %c0_i32_1 = arith.constant 0 : i32
    %c0_i32_2 = arith.constant 0 : i32
    return %c0_i32, %c0_i32_0, %c0_i32_1 : i32, i32, i32
  }
  func.func @transform_7(%arg0: i32, %arg1: i32) -> (i32, i32, i32) {
    %c0_i32 = arith.constant 0 : i32
    %c0_i32_0 = arith.constant 0 : i32
    %c0_i32_1 = arith.constant 0 : i32
    %c0_i32_2 = arith.constant 0 : i32
    return %c0_i32, %c0_i32_0, %c0_i32_1 : i32, i32, i32
  }
  func.func @transform_8(%arg0: i32, %arg1: i32) -> (i32, i32, i32) {
    %c0_i32 = arith.constant 0 : i32
    %c0_i32_0 = arith.constant 0 : i32
    %c0_i32_1 = arith.constant 0 : i32
    %c0_i32_2 = arith.constant 0 : i32
    return %c0_i32, %c0_i32_0, %c0_i32_1 : i32, i32, i32
  }
  func.func @transform_9(%arg0: i32, %arg1: i32) -> (i32, i32) {
    %c0_i32 = arith.constant 0 : i32
    %c0_i32_0 = arith.constant 0 : i32
    %c0_i32_1 = arith.constant 0 : i32
    return %c0_i32, %c0_i32_0 : i32, i32
  }
  func.func @transform_10(%arg0: i32, %arg1: i32) -> (i32, i32) {
    %c0_i32 = arith.constant 0 : i32
    %c0_i32_0 = arith.constant 0 : i32
    %c0_i32_1 = arith.constant 0 : i32
    return %c0_i32, %c0_i32_0 : i32, i32
  }
  func.func @transform_11(%arg0: i32, %arg1: i32) -> (i32, i32) {
    %c0_i32 = arith.constant 0 : i32
    %c0_i32_0 = arith.constant 0 : i32
    %c0_i32_1 = arith.constant 0 : i32
    return %c0_i32, %c0_i32_0 : i32, i32
  }
  func.func @transform_12(%arg0: i32, %arg1: i32) -> (i32, i32) {
    %c0_i32 = arith.constant 0 : i32
    %c0_i32_0 = arith.constant 0 : i32
    %c0_i32_1 = arith.constant 0 : i32
    return %c0_i32, %c0_i32_0 : i32, i32
  }
  func.func @transform_13(%arg0: i32, %arg1: i32) -> (i32, i32) {
    %c0_i32 = arith.constant 0 : i32
    %c0_i32_0 = arith.constant 0 : i32
    %c0_i32_1 = arith.constant 0 : i32
    return %c0_i32, %c0_i32_0 : i32, i32
  }
  func.func @transform_14(%arg0: i32, %arg1: i32) -> (i32, i32) {
    %c0_i32 = arith.constant 0 : i32
    %c0_i32_0 = arith.constant 0 : i32
    %c0_i32_1 = arith.constant 0 : i32
    return %c0_i32, %c0_i32_0 : i32, i32
  }
  func.func @transform_15(%arg0: i32, %arg1: i32) -> (i32, i32) {
    %c0_i32 = arith.constant 0 : i32
    %c0_i32_0 = arith.constant 0 : i32
    %c0_i32_1 = arith.constant 0 : i32
    return %c0_i32, %c0_i32_0 : i32, i32
  }
  func.func @transform_16(%arg0: i32, %arg1: i32) -> (i32, i32) {
    %c0_i32 = arith.constant 0 : i32
    %c0_i32_0 = arith.constant 0 : i32
    %c0_i32_1 = arith.constant 0 : i32
    return %c0_i32, %c0_i32_0 : i32, i32
  }
  func.func @transform_17(%arg0: i32, %arg1: i32) -> (i32, i32) {
    %c0_i32 = arith.constant 0 : i32
    %c0_i32_0 = arith.constant 0 : i32
    %c0_i32_1 = arith.constant 0 : i32
    return %c0_i32, %c0_i32_0 : i32, i32
  }
  func.func @transform_18(%arg0: i32, %arg1: i32) -> (i32, i32, i32) {
    %c0_i32 = arith.constant 0 : i32
    %c0_i32_0 = arith.constant 0 : i32
    return %arg0, %arg1, %c0_i32 : i32, i32, i32
  }
}

module attributes {stable_mosaic.version = 11 : i64} {
  func.func @transformer_layer_kernel(%arg0: i32, %arg1: i32, %arg2: memref<1x8x32xf32, #tpu.memory_space<vmem>>, %arg3: memref<1x16x32xf32, #tpu.memory_space<vmem>>, %arg4: memref<4x32x8xf32, #tpu.memory_space<vmem>>, %arg5: memref<4x32x8xf32, #tpu.memory_space<vmem>>, %arg6: memref<4x32x8xf32, #tpu.memory_space<vmem>>, %arg7: memref<4x1x8xf32, #tpu.memory_space<vmem>>, %arg8: memref<4x1x8xf32, #tpu.memory_space<vmem>>, %arg9: memref<4x1x8xf32, #tpu.memory_space<vmem>>, %arg10: memref<4x8x32xf32, #tpu.memory_space<vmem>>, %arg11: memref<1x32xf32, #tpu.memory_space<vmem>>, %arg12: memref<32x128xf32, #tpu.memory_space<vmem>>, %arg13: memref<1x128xf32, #tpu.memory_space<vmem>>, %arg14: memref<128x32xf32, #tpu.memory_space<vmem>>, %arg15: memref<1x32xf32, #tpu.memory_space<vmem>>, %arg16: memref<1x32xf32, #tpu.memory_space<vmem>>, %arg17: memref<1x32xf32, #tpu.memory_space<vmem>>, %arg18: memref<1x32xf32, #tpu.memory_space<vmem>>, %arg19: memref<1x32xf32, #tpu.memory_space<vmem>>, %arg20: memref<1x8x32xf32, #tpu.memory_space<vmem>>, %arg21: memref<4x16x8xf32, #tpu.memory_space<vmem>>, %arg22: memref<4x16x8xf32, #tpu.memory_space<vmem>>) attributes {dimension_semantics = [#tpu.dimension_semantics<parallel>, #tpu.dimension_semantics<arbitrary>], iteration_bounds = array<i64: 2, 2>, scalar_prefetch = 0 : i64, scratch_operands = 2 : i64, tpu.core_type = #tpu.core_type<tc>, window_params = [{transform_indices = @transform_0, window_bounds = array<i64: 1, 8, 32>}, {transform_indices = @transform_1, window_bounds = array<i64: 1, 16, 32>}, {pipeline_mode = #tpu.pipeline_mode<synchronous>, transform_indices = @transform_2, window_bounds = array<i64: 4, 32, 8>}, {pipeline_mode = #tpu.pipeline_mode<synchronous>, transform_indices = @transform_3, window_bounds = array<i64: 4, 32, 8>}, {pipeline_mode = #tpu.pipeline_mode<synchronous>, transform_indices = @transform_4, window_bounds = array<i64: 4, 32, 8>}, {pipeline_mode = #tpu.pipeline_mode<synchronous>, transform_indices = @transform_5, window_bounds = array<i64: 4, 1, 8>}, {pipeline_mode = #tpu.pipeline_mode<synchronous>, transform_indices = @transform_6, window_bounds = array<i64: 4, 1, 8>}, {pipeline_mode = #tpu.pipeline_mode<synchronous>, transform_indices = @transform_7, window_bounds = array<i64: 4, 1, 8>}, {pipeline_mode = #tpu.pipeline_mode<synchronous>, transform_indices = @transform_8, window_bounds = array<i64: 4, 8, 32>}, {pipeline_mode = #tpu.pipeline_mode<synchronous>, transform_indices = @transform_9, window_bounds = array<i64: 1, 32>}, {pipeline_mode = #tpu.pipeline_mode<synchronous>, transform_indices = @transform_10, window_bounds = array<i64: 32, 128>}, {pipeline_mode = #tpu.pipeline_mode<synchronous>, transform_indices = @transform_11, window_bounds = array<i64: 1, 128>}, {pipeline_mode = #tpu.pipeline_mode<synchronous>, transform_indices = @transform_12, window_bounds = array<i64: 128, 32>}, {pipeline_mode = #tpu.pipeline_mode<synchronous>, transform_indices = @transform_13, window_bounds = array<i64: 1, 32>}, {pipeline_mode = #tpu.pipeline_mode<synchronous>, transform_indices = @transform_14, window_bounds = array<i64: 1, 32>}, {pipeline_mode = #tpu.pipeline_mode<synchronous>, transform_indices = @transform_15, window_bounds = array<i64: 1, 32>}, {pipeline_mode = #tpu.pipeline_mode<synchronous>, transform_indices = @transform_16, window_bounds = array<i64: 1, 32>}, {pipeline_mode = #tpu.pipeline_mode<synchronous>, transform_indices = @transform_17, window_bounds = array<i64: 1, 32>}, {transform_indices = @transform_18, window_bounds = array<i64: 1, 8, 32>}]} {
    %c0_i32 = arith.constant 0 : i32
    %0 = arith.cmpi eq, %arg1, %c0_i32 : i32
    %1 = arith.extui %0 : i1 to i32
    %c0_i32_0 = arith.constant 0 : i32
    %2 = arith.cmpi ne, %1, %c0_i32_0 : i32
    scf.if %2 {
      %c0_78 = arith.constant 0 : index
      %c0_79 = arith.constant 0 : index
      %c0_80 = arith.constant 0 : index
      %125 = vector.load %arg3[%c0_78, %c0_79, %c0_80] : memref<1x16x32xf32, #tpu.memory_space<vmem>>, vector<1x16x32xf32>
      %126 = vector.shape_cast %125 : vector<1x16x32xf32> to vector<16x32xf32>
      %c0_81 = arith.constant 0 : index
      %c0_82 = arith.constant 0 : index
      %c0_83 = arith.constant 0 : index
      %127 = vector.load %arg5[%c0_81, %c0_82, %c0_83] : memref<4x32x8xf32, #tpu.memory_space<vmem>>, vector<1x32x8xf32>
      %128 = vector.shape_cast %127 : vector<1x32x8xf32> to vector<32x8xf32>
      %cst_84 = arith.constant dense<0.000000e+00> : vector<16x8xf32>
      %129 = tpu.matmul %126, %128, %cst_84 {dimension_numbers = #tpu.dot_dimension_numbers<[1], [0], [0], [1], [0, 0, 1, 1], [], []>} : vector<16x32xf32>, vector<32x8xf32>, vector<16x8xf32> -> vector<16x8xf32>
      %c0_85 = arith.constant 0 : index
      %c0_86 = arith.constant 0 : index
      %c0_87 = arith.constant 0 : index
      %130 = vector.load %arg8[%c0_85, %c0_86, %c0_87] : memref<4x1x8xf32, #tpu.memory_space<vmem>>, vector<1x1x8xf32>
      %131 = vector.shape_cast %130 : vector<1x1x8xf32> to vector<1x8xf32>
      %132 = vector.broadcast %131 : vector<1x8xf32> to vector<16x8xf32>
      %133 = arith.addf %129, %132 : vector<16x8xf32>
      %c0_88 = arith.constant 0 : index
      %c0_89 = arith.constant 0 : index
      %c0_90 = arith.constant 0 : index
      %134 = vector.load %arg6[%c0_88, %c0_89, %c0_90] : memref<4x32x8xf32, #tpu.memory_space<vmem>>, vector<1x32x8xf32>
      %135 = vector.shape_cast %134 : vector<1x32x8xf32> to vector<32x8xf32>
      %cst_91 = arith.constant dense<0.000000e+00> : vector<16x8xf32>
      %136 = tpu.matmul %126, %135, %cst_91 {dimension_numbers = #tpu.dot_dimension_numbers<[1], [0], [0], [1], [0, 0, 1, 1], [], []>} : vector<16x32xf32>, vector<32x8xf32>, vector<16x8xf32> -> vector<16x8xf32>
      %c0_92 = arith.constant 0 : index
      %c0_93 = arith.constant 0 : index
      %c0_94 = arith.constant 0 : index
      %137 = vector.load %arg9[%c0_92, %c0_93, %c0_94] : memref<4x1x8xf32, #tpu.memory_space<vmem>>, vector<1x1x8xf32>
      %138 = vector.shape_cast %137 : vector<1x1x8xf32> to vector<1x8xf32>
      %139 = vector.broadcast %138 : vector<1x8xf32> to vector<16x8xf32>
      %140 = arith.addf %136, %139 : vector<16x8xf32>
      %c0_95 = arith.constant 0 : index
      %c0_96 = arith.constant 0 : index
      %c0_97 = arith.constant 0 : index
      %141 = vector.load %arg21[%c0_95, %c0_96, %c0_97] : memref<4x16x8xf32, #tpu.memory_space<vmem>>, vector<1x16x8xf32>
      %142 = vector.shape_cast %141 : vector<1x16x8xf32> to vector<16x8xf32>
      %143 = vector.shape_cast %133 : vector<16x8xf32> to vector<1x16x8xf32>
      tpu.vector_store %arg21[%c0_95, %c0_96, %c0_97], %143 {strides = array<i32>} : memref<4x16x8xf32, #tpu.memory_space<vmem>>, vector<1x16x8xf32>,
      %c0_98 = arith.constant 0 : index
      %c0_99 = arith.constant 0 : index
      %c0_100 = arith.constant 0 : index
      %144 = vector.load %arg22[%c0_98, %c0_99, %c0_100] : memref<4x16x8xf32, #tpu.memory_space<vmem>>, vector<1x16x8xf32>
      %145 = vector.shape_cast %144 : vector<1x16x8xf32> to vector<16x8xf32>
      %146 = vector.shape_cast %140 : vector<16x8xf32> to vector<1x16x8xf32>
      tpu.vector_store %arg22[%c0_98, %c0_99, %c0_100], %146 {strides = array<i32>} : memref<4x16x8xf32, #tpu.memory_space<vmem>>, vector<1x16x8xf32>,
      %c1_101 = arith.constant 1 : index
      %c0_102 = arith.constant 0 : index
      %c0_103 = arith.constant 0 : index
      %147 = vector.load %arg5[%c1_101, %c0_102, %c0_103] : memref<4x32x8xf32, #tpu.memory_space<vmem>>, vector<1x32x8xf32>
      %148 = vector.shape_cast %147 : vector<1x32x8xf32> to vector<32x8xf32>
      %cst_104 = arith.constant dense<0.000000e+00> : vector<16x8xf32>
      %149 = tpu.matmul %126, %148, %cst_104 {dimension_numbers = #tpu.dot_dimension_numbers<[1], [0], [0], [1], [0, 0, 1, 1], [], []>} : vector<16x32xf32>, vector<32x8xf32>, vector<16x8xf32> -> vector<16x8xf32>
      %c1_105 = arith.constant 1 : index
      %c0_106 = arith.constant 0 : index
      %c0_107 = arith.constant 0 : index
      %150 = vector.load %arg8[%c1_105, %c0_106, %c0_107] : memref<4x1x8xf32, #tpu.memory_space<vmem>>, vector<1x1x8xf32>
      %151 = vector.shape_cast %150 : vector<1x1x8xf32> to vector<1x8xf32>
      %152 = vector.broadcast %151 : vector<1x8xf32> to vector<16x8xf32>
      %153 = arith.addf %149, %152 : vector<16x8xf32>
      %c1_108 = arith.constant 1 : index
      %c0_109 = arith.constant 0 : index
      %c0_110 = arith.constant 0 : index
      %154 = vector.load %arg6[%c1_108, %c0_109, %c0_110] : memref<4x32x8xf32, #tpu.memory_space<vmem>>, vector<1x32x8xf32>
      %155 = vector.shape_cast %154 : vector<1x32x8xf32> to vector<32x8xf32>
      %cst_111 = arith.constant dense<0.000000e+00> : vector<16x8xf32>
      %156 = tpu.matmul %126, %155, %cst_111 {dimension_numbers = #tpu.dot_dimension_numbers<[1], [0], [0], [1], [0, 0, 1, 1], [], []>} : vector<16x32xf32>, vector<32x8xf32>, vector<16x8xf32> -> vector<16x8xf32>
      %c1_112 = arith.constant 1 : index
      %c0_113 = arith.constant 0 : index
      %c0_114 = arith.constant 0 : index
      %157 = vector.load %arg9[%c1_112, %c0_113, %c0_114] : memref<4x1x8xf32, #tpu.memory_space<vmem>>, vector<1x1x8xf32>
      %158 = vector.shape_cast %157 : vector<1x1x8xf32> to vector<1x8xf32>
      %159 = vector.broadcast %158 : vector<1x8xf32> to vector<16x8xf32>
      %160 = arith.addf %156, %159 : vector<16x8xf32>
      %c1_115 = arith.constant 1 : index
      %c0_116 = arith.constant 0 : index
      %c0_117 = arith.constant 0 : index
      %161 = vector.load %arg21[%c1_115, %c0_116, %c0_117] : memref<4x16x8xf32, #tpu.memory_space<vmem>>, vector<1x16x8xf32>
      %162 = vector.shape_cast %161 : vector<1x16x8xf32> to vector<16x8xf32>
      %163 = vector.shape_cast %153 : vector<16x8xf32> to vector<1x16x8xf32>
      tpu.vector_store %arg21[%c1_115, %c0_116, %c0_117], %163 {strides = array<i32>} : memref<4x16x8xf32, #tpu.memory_space<vmem>>, vector<1x16x8xf32>,
      %c1_118 = arith.constant 1 : index
      %c0_119 = arith.constant 0 : index
      %c0_120 = arith.constant 0 : index
      %164 = vector.load %arg22[%c1_118, %c0_119, %c0_120] : memref<4x16x8xf32, #tpu.memory_space<vmem>>, vector<1x16x8xf32>
      %165 = vector.shape_cast %164 : vector<1x16x8xf32> to vector<16x8xf32>
      %166 = vector.shape_cast %160 : vector<16x8xf32> to vector<1x16x8xf32>
      tpu.vector_store %arg22[%c1_118, %c0_119, %c0_120], %166 {strides = array<i32>} : memref<4x16x8xf32, #tpu.memory_space<vmem>>, vector<1x16x8xf32>,
      %c2_121 = arith.constant 2 : index
      %c0_122 = arith.constant 0 : index
      %c0_123 = arith.constant 0 : index
      %167 = vector.load %arg5[%c2_121, %c0_122, %c0_123] : memref<4x32x8xf32, #tpu.memory_space<vmem>>, vector<1x32x8xf32>
      %168 = vector.shape_cast %167 : vector<1x32x8xf32> to vector<32x8xf32>
      %cst_124 = arith.constant dense<0.000000e+00> : vector<16x8xf32>
      %169 = tpu.matmul %126, %168, %cst_124 {dimension_numbers = #tpu.dot_dimension_numbers<[1], [0], [0], [1], [0, 0, 1, 1], [], []>} : vector<16x32xf32>, vector<32x8xf32>, vector<16x8xf32> -> vector<16x8xf32>
      %c2_125 = arith.constant 2 : index
      %c0_126 = arith.constant 0 : index
      %c0_127 = arith.constant 0 : index
      %170 = vector.load %arg8[%c2_125, %c0_126, %c0_127] : memref<4x1x8xf32, #tpu.memory_space<vmem>>, vector<1x1x8xf32>
      %171 = vector.shape_cast %170 : vector<1x1x8xf32> to vector<1x8xf32>
      %172 = vector.broadcast %171 : vector<1x8xf32> to vector<16x8xf32>
      %173 = arith.addf %169, %172 : vector<16x8xf32>
      %c2_128 = arith.constant 2 : index
      %c0_129 = arith.constant 0 : index
      %c0_130 = arith.constant 0 : index
      %174 = vector.load %arg6[%c2_128, %c0_129, %c0_130] : memref<4x32x8xf32, #tpu.memory_space<vmem>>, vector<1x32x8xf32>
      %175 = vector.shape_cast %174 : vector<1x32x8xf32> to vector<32x8xf32>
      %cst_131 = arith.constant dense<0.000000e+00> : vector<16x8xf32>
      %176 = tpu.matmul %126, %175, %cst_131 {dimension_numbers = #tpu.dot_dimension_numbers<[1], [0], [0], [1], [0, 0, 1, 1], [], []>} : vector<16x32xf32>, vector<32x8xf32>, vector<16x8xf32> -> vector<16x8xf32>
      %c2_132 = arith.constant 2 : index
      %c0_133 = arith.constant 0 : index
      %c0_134 = arith.constant 0 : index
      %177 = vector.load %arg9[%c2_132, %c0_133, %c0_134] : memref<4x1x8xf32, #tpu.memory_space<vmem>>, vector<1x1x8xf32>
      %178 = vector.shape_cast %177 : vector<1x1x8xf32> to vector<1x8xf32>
      %179 = vector.broadcast %178 : vector<1x8xf32> to vector<16x8xf32>
      %180 = arith.addf %176, %179 : vector<16x8xf32>
      %c2_135 = arith.constant 2 : index
      %c0_136 = arith.constant 0 : index
      %c0_137 = arith.constant 0 : index
      %181 = vector.load %arg21[%c2_135, %c0_136, %c0_137] : memref<4x16x8xf32, #tpu.memory_space<vmem>>, vector<1x16x8xf32>
      %182 = vector.shape_cast %181 : vector<1x16x8xf32> to vector<16x8xf32>
      %183 = vector.shape_cast %173 : vector<16x8xf32> to vector<1x16x8xf32>
      tpu.vector_store %arg21[%c2_135, %c0_136, %c0_137], %183 {strides = array<i32>} : memref<4x16x8xf32, #tpu.memory_space<vmem>>, vector<1x16x8xf32>,
      %c2_138 = arith.constant 2 : index
      %c0_139 = arith.constant 0 : index
      %c0_140 = arith.constant 0 : index
      %184 = vector.load %arg22[%c2_138, %c0_139, %c0_140] : memref<4x16x8xf32, #tpu.memory_space<vmem>>, vector<1x16x8xf32>
      %185 = vector.shape_cast %184 : vector<1x16x8xf32> to vector<16x8xf32>
      %186 = vector.shape_cast %180 : vector<16x8xf32> to vector<1x16x8xf32>
      tpu.vector_store %arg22[%c2_138, %c0_139, %c0_140], %186 {strides = array<i32>} : memref<4x16x8xf32, #tpu.memory_space<vmem>>, vector<1x16x8xf32>,
      %c3_141 = arith.constant 3 : index
      %c0_142 = arith.constant 0 : index
      %c0_143 = arith.constant 0 : index
      %187 = vector.load %arg5[%c3_141, %c0_142, %c0_143] : memref<4x32x8xf32, #tpu.memory_space<vmem>>, vector<1x32x8xf32>
      %188 = vector.shape_cast %187 : vector<1x32x8xf32> to vector<32x8xf32>
      %cst_144 = arith.constant dense<0.000000e+00> : vector<16x8xf32>
      %189 = tpu.matmul %126, %188, %cst_144 {dimension_numbers = #tpu.dot_dimension_numbers<[1], [0], [0], [1], [0, 0, 1, 1], [], []>} : vector<16x32xf32>, vector<32x8xf32>, vector<16x8xf32> -> vector<16x8xf32>
      %c3_145 = arith.constant 3 : index
      %c0_146 = arith.constant 0 : index
      %c0_147 = arith.constant 0 : index
      %190 = vector.load %arg8[%c3_145, %c0_146, %c0_147] : memref<4x1x8xf32, #tpu.memory_space<vmem>>, vector<1x1x8xf32>
      %191 = vector.shape_cast %190 : vector<1x1x8xf32> to vector<1x8xf32>
      %192 = vector.broadcast %191 : vector<1x8xf32> to vector<16x8xf32>
      %193 = arith.addf %189, %192 : vector<16x8xf32>
      %c3_148 = arith.constant 3 : index
      %c0_149 = arith.constant 0 : index
      %c0_150 = arith.constant 0 : index
      %194 = vector.load %arg6[%c3_148, %c0_149, %c0_150] : memref<4x32x8xf32, #tpu.memory_space<vmem>>, vector<1x32x8xf32>
      %195 = vector.shape_cast %194 : vector<1x32x8xf32> to vector<32x8xf32>
      %cst_151 = arith.constant dense<0.000000e+00> : vector<16x8xf32>
      %196 = tpu.matmul %126, %195, %cst_151 {dimension_numbers = #tpu.dot_dimension_numbers<[1], [0], [0], [1], [0, 0, 1, 1], [], []>} : vector<16x32xf32>, vector<32x8xf32>, vector<16x8xf32> -> vector<16x8xf32>
      %c3_152 = arith.constant 3 : index
      %c0_153 = arith.constant 0 : index
      %c0_154 = arith.constant 0 : index
      %197 = vector.load %arg9[%c3_152, %c0_153, %c0_154] : memref<4x1x8xf32, #tpu.memory_space<vmem>>, vector<1x1x8xf32>
      %198 = vector.shape_cast %197 : vector<1x1x8xf32> to vector<1x8xf32>
      %199 = vector.broadcast %198 : vector<1x8xf32> to vector<16x8xf32>
      %200 = arith.addf %196, %199 : vector<16x8xf32>
      %c3_155 = arith.constant 3 : index
      %c0_156 = arith.constant 0 : index
      %c0_157 = arith.constant 0 : index
      %201 = vector.load %arg21[%c3_155, %c0_156, %c0_157] : memref<4x16x8xf32, #tpu.memory_space<vmem>>, vector<1x16x8xf32>
      %202 = vector.shape_cast %201 : vector<1x16x8xf32> to vector<16x8xf32>
      %203 = vector.shape_cast %193 : vector<16x8xf32> to vector<1x16x8xf32>
      tpu.vector_store %arg21[%c3_155, %c0_156, %c0_157], %203 {strides = array<i32>} : memref<4x16x8xf32, #tpu.memory_space<vmem>>, vector<1x16x8xf32>,
      %c3_158 = arith.constant 3 : index
      %c0_159 = arith.constant 0 : index
      %c0_160 = arith.constant 0 : index
      %204 = vector.load %arg22[%c3_158, %c0_159, %c0_160] : memref<4x16x8xf32, #tpu.memory_space<vmem>>, vector<1x16x8xf32>
      %205 = vector.shape_cast %204 : vector<1x16x8xf32> to vector<16x8xf32>
      %206 = vector.shape_cast %200 : vector<16x8xf32> to vector<1x16x8xf32>
      tpu.vector_store %arg22[%c3_158, %c0_159, %c0_160], %206 {strides = array<i32>} : memref<4x16x8xf32, #tpu.memory_space<vmem>>, vector<1x16x8xf32>,
    } else {
    }
    %c0 = arith.constant 0 : index
    %c0_1 = arith.constant 0 : index
    %c0_2 = arith.constant 0 : index
    %3 = vector.load %arg2[%c0, %c0_1, %c0_2] : memref<1x8x32xf32, #tpu.memory_space<vmem>>, vector<1x8x32xf32>
    %4 = vector.shape_cast %3 : vector<1x8x32xf32> to vector<8x32xf32>
    %c0_3 = arith.constant 0 : index
    %c0_4 = arith.constant 0 : index
    %c0_5 = arith.constant 0 : index
    %5 = vector.load %arg4[%c0_3, %c0_4, %c0_5] : memref<4x32x8xf32, #tpu.memory_space<vmem>>, vector<1x32x8xf32>
    %6 = vector.shape_cast %5 : vector<1x32x8xf32> to vector<32x8xf32>
    %cst = arith.constant dense<0.000000e+00> : vector<8x8xf32>
    %7 = tpu.matmul %4, %6, %cst {dimension_numbers = #tpu.dot_dimension_numbers<[1], [0], [0], [1], [0, 0, 1, 1], [], []>} : vector<8x32xf32>, vector<32x8xf32>, vector<8x8xf32> -> vector<8x8xf32>
    %c0_6 = arith.constant 0 : index
    %c0_7 = arith.constant 0 : index
    %c0_8 = arith.constant 0 : index
    %8 = vector.load %arg7[%c0_6, %c0_7, %c0_8] : memref<4x1x8xf32, #tpu.memory_space<vmem>>, vector<1x1x8xf32>
    %9 = vector.shape_cast %8 : vector<1x1x8xf32> to vector<1x8xf32>
    %10 = vector.broadcast %9 : vector<1x8xf32> to vector<8x8xf32>
    %11 = arith.addf %7, %10 : vector<8x8xf32>
    %c1 = arith.constant 1 : index
    %c0_9 = arith.constant 0 : index
    %c0_10 = arith.constant 0 : index
    %12 = vector.load %arg4[%c1, %c0_9, %c0_10] : memref<4x32x8xf32, #tpu.memory_space<vmem>>, vector<1x32x8xf32>
    %13 = vector.shape_cast %12 : vector<1x32x8xf32> to vector<32x8xf32>
    %cst_11 = arith.constant dense<0.000000e+00> : vector<8x8xf32>
    %14 = tpu.matmul %4, %13, %cst_11 {dimension_numbers = #tpu.dot_dimension_numbers<[1], [0], [0], [1], [0, 0, 1, 1], [], []>} : vector<8x32xf32>, vector<32x8xf32>, vector<8x8xf32> -> vector<8x8xf32>
    %c1_12 = arith.constant 1 : index
    %c0_13 = arith.constant 0 : index
    %c0_14 = arith.constant 0 : index
    %15 = vector.load %arg7[%c1_12, %c0_13, %c0_14] : memref<4x1x8xf32, #tpu.memory_space<vmem>>, vector<1x1x8xf32>
    %16 = vector.shape_cast %15 : vector<1x1x8xf32> to vector<1x8xf32>
    %17 = vector.broadcast %16 : vector<1x8xf32> to vector<8x8xf32>
    %18 = arith.addf %14, %17 : vector<8x8xf32>
    %c2 = arith.constant 2 : index
    %c0_15 = arith.constant 0 : index
    %c0_16 = arith.constant 0 : index
    %19 = vector.load %arg4[%c2, %c0_15, %c0_16] : memref<4x32x8xf32, #tpu.memory_space<vmem>>, vector<1x32x8xf32>
    %20 = vector.shape_cast %19 : vector<1x32x8xf32> to vector<32x8xf32>
    %cst_17 = arith.constant dense<0.000000e+00> : vector<8x8xf32>
    %21 = tpu.matmul %4, %20, %cst_17 {dimension_numbers = #tpu.dot_dimension_numbers<[1], [0], [0], [1], [0, 0, 1, 1], [], []>} : vector<8x32xf32>, vector<32x8xf32>, vector<8x8xf32> -> vector<8x8xf32>
    %c2_18 = arith.constant 2 : index
    %c0_19 = arith.constant 0 : index
    %c0_20 = arith.constant 0 : index
    %22 = vector.load %arg7[%c2_18, %c0_19, %c0_20] : memref<4x1x8xf32, #tpu.memory_space<vmem>>, vector<1x1x8xf32>
    %23 = vector.shape_cast %22 : vector<1x1x8xf32> to vector<1x8xf32>
    %24 = vector.broadcast %23 : vector<1x8xf32> to vector<8x8xf32>
    %25 = arith.addf %21, %24 : vector<8x8xf32>
    %c3 = arith.constant 3 : index
    %c0_21 = arith.constant 0 : index
    %c0_22 = arith.constant 0 : index
    %26 = vector.load %arg4[%c3, %c0_21, %c0_22] : memref<4x32x8xf32, #tpu.memory_space<vmem>>, vector<1x32x8xf32>
    %27 = vector.shape_cast %26 : vector<1x32x8xf32> to vector<32x8xf32>
    %cst_23 = arith.constant dense<0.000000e+00> : vector<8x8xf32>
    %28 = tpu.matmul %4, %27, %cst_23 {dimension_numbers = #tpu.dot_dimension_numbers<[1], [0], [0], [1], [0, 0, 1, 1], [], []>} : vector<8x32xf32>, vector<32x8xf32>, vector<8x8xf32> -> vector<8x8xf32>
    %c3_24 = arith.constant 3 : index
    %c0_25 = arith.constant 0 : index
    %c0_26 = arith.constant 0 : index
    %29 = vector.load %arg7[%c3_24, %c0_25, %c0_26] : memref<4x1x8xf32, #tpu.memory_space<vmem>>, vector<1x1x8xf32>
    %30 = vector.shape_cast %29 : vector<1x1x8xf32> to vector<1x8xf32>
    %31 = vector.broadcast %30 : vector<1x8xf32> to vector<8x8xf32>
    %32 = arith.addf %28, %31 : vector<8x8xf32>
    %33 = vector.shape_cast %11 : vector<8x8xf32> to vector<1x8x8xf32>
    %34 = vector.shape_cast %18 : vector<8x8xf32> to vector<1x8x8xf32>
    %35 = vector.shape_cast %25 : vector<8x8xf32> to vector<1x8x8xf32>
    %36 = vector.shape_cast %32 : vector<8x8xf32> to vector<1x8x8xf32>
    %37 = tpu.concatenate %33, %34, %35, %36 in 0 : vector<1x8x8xf32>, vector<1x8x8xf32>, vector<1x8x8xf32>, vector<1x8x8xf32> -> vector<4x8x8xf32>
    %c0_27 = arith.constant 0 : index
    %c0_28 = arith.constant 0 : index
    %c0_29 = arith.constant 0 : index
    %38 = vector.load %arg21[%c0_27, %c0_28, %c0_29] : memref<4x16x8xf32, #tpu.memory_space<vmem>>, vector<4x16x8xf32>
    %c0_30 = arith.constant 0 : index
    %c0_31 = arith.constant 0 : index
    %c0_32 = arith.constant 0 : index
    %39 = vector.load %arg22[%c0_30, %c0_31, %c0_32] : memref<4x16x8xf32, #tpu.memory_space<vmem>>, vector<4x16x8xf32>
    "tpu.trace_start"() <{level = 10 : i32, message = "hqd,hkd->hqk"}> : () -> ()
    %cst_33 = arith.constant dense<0.000000e+00> : vector<4x8x16xf32>
    %40 = tpu.matmul %37, %38, %cst_33 {dimension_numbers = #tpu.dot_dimension_numbers<[2], [2], [1], [1], [0, 0, 0, 1, 1, 1], [0], [0]>} : vector<4x8x8xf32>, vector<4x16x8xf32>, vector<4x8x16xf32> -> vector<4x8x16xf32>
    "tpu.trace_stop"() : () -> ()
    %cst_34 = arith.constant dense<0xFF800000> : vector<4x8xf32>
    %41 = vector.multi_reduction <maximumf>, %40, %cst_34 [2] : vector<4x8x16xf32> to vector<4x8xf32>
    %42 = vector.shape_cast %41 : vector<4x8xf32> to vector<4x8x1xf32>
    %43 = vector.broadcast %42 : vector<4x8x1xf32> to vector<4x8x16xf32>
    %44 = arith.subf %40, %43 : vector<4x8x16xf32>
    %45 = math.exp %44 : vector<4x8x16xf32>
    %cst_35 = arith.constant dense<0.000000e+00> : vector<4x8xf32>
    %46 = vector.multi_reduction <add>, %45, %cst_35 [2] : vector<4x8x16xf32> to vector<4x8xf32>
    %47 = vector.shape_cast %46 : vector<4x8xf32> to vector<4x8x1xf32>
    %48 = tpu.reciprocal %47 {approx = true} : vector<4x8x1xf32> -> vector<4x8x1xf32>
    %49 = vector.broadcast %48 : vector<4x8x1xf32> to vector<4x8x16xf32>
    %50 = arith.mulf %45, %49 : vector<4x8x16xf32>
    "tpu.trace_start"() <{level = 10 : i32, message = "hqk,hkd->hqd"}> : () -> ()
    %cst_36 = arith.constant dense<0.000000e+00> : vector<4x8x8xf32>
    %51 = tpu.matmul %50, %39, %cst_36 {dimension_numbers = #tpu.dot_dimension_numbers<[2], [1], [1], [2], [0, 0, 0, 1, 1, 2], [0], [0]>} : vector<4x8x16xf32>, vector<4x16x8xf32>, vector<4x8x8xf32> -> vector<4x8x8xf32>
    "tpu.trace_stop"() : () -> ()
    %c0_37 = arith.constant 0 : index
    %c0_38 = arith.constant 0 : index
    %c0_39 = arith.constant 0 : index
    %52 = vector.load %arg10[%c0_37, %c0_38, %c0_39] : memref<4x8x32xf32, #tpu.memory_space<vmem>>, vector<4x8x32xf32>
    "tpu.trace_start"() <{level = 10 : i32, message = "hqd,hdo->hqo"}> : () -> ()
    %cst_40 = arith.constant dense<0.000000e+00> : vector<4x8x32xf32>
    %53 = tpu.matmul %51, %52, %cst_40 {dimension_numbers = #tpu.dot_dimension_numbers<[2], [1], [1], [2], [0, 0, 0, 1, 1, 2], [0], [0]>} : vector<4x8x8xf32>, vector<4x8x32xf32>, vector<4x8x32xf32> -> vector<4x8x32xf32>
    "tpu.trace_stop"() : () -> ()
    %cst_41 = arith.constant dense<0.000000e+00> : vector<8x32xf32>
    %54 = vector.multi_reduction <add>, %53, %cst_41 [0] : vector<4x8x32xf32> to vector<8x32xf32>
    %c0_42 = arith.constant 0 : index
    %c0_43 = arith.constant 0 : index
    %55 = vector.load %arg11[%c0_42, %c0_43] : memref<1x32xf32, #tpu.memory_space<vmem>>, vector<1x32xf32>
    %56 = vector.broadcast %55 : vector<1x32xf32> to vector<8x32xf32>
    %57 = arith.addf %54, %56 : vector<8x32xf32>
    %58 = arith.addf %4, %57 : vector<8x32xf32>
    %cst_44 = arith.constant dense<0.000000e+00> : vector<8xf32>
    %59 = vector.multi_reduction <add>, %58, %cst_44 [1] : vector<8x32xf32> to vector<8xf32>
    %60 = vector.shape_cast %59 : vector<8xf32> to vector<8x1xf32>
    %cst_45 = arith.constant 3.200000e+01 : f32
    %61 = vector.broadcast %cst_45 : f32 to vector<8x1xf32>
    %62 = arith.divf %60, %61 : vector<8x1xf32>
    %63 = vector.broadcast %62 : vector<8x1xf32> to vector<8x32xf32>
    %64 = arith.subf %58, %63 : vector<8x32xf32>
    %65 = arith.mulf %64, %64 : vector<8x32xf32>
    %cst_46 = arith.constant dense<0.000000e+00> : vector<8xf32>
    %66 = vector.multi_reduction <add>, %65, %cst_46 [1] : vector<8x32xf32> to vector<8xf32>
    %67 = vector.shape_cast %66 : vector<8xf32> to vector<8x1xf32>
    %cst_47 = arith.constant 3.200000e+01 : f32
    %68 = vector.broadcast %cst_47 : f32 to vector<8x1xf32>
    %69 = arith.divf %67, %68 : vector<8x1xf32>
    %cst_48 = arith.constant 9.99999974E-6 : f32
    %70 = vector.broadcast %cst_48 : f32 to vector<8x1xf32>
    %71 = arith.addf %69, %70 : vector<8x1xf32>
    %72 = math.rsqrt %71 : vector<8x1xf32>
    %73 = vector.broadcast %72 : vector<8x1xf32> to vector<8x32xf32>
    %74 = arith.mulf %64, %73 : vector<8x32xf32>
    %c0_49 = arith.constant 0 : index
    %c0_50 = arith.constant 0 : index
    %75 = vector.load %arg16[%c0_49, %c0_50] : memref<1x32xf32, #tpu.memory_space<vmem>>, vector<1x32xf32>
    %76 = vector.broadcast %75 : vector<1x32xf32> to vector<8x32xf32>
    %77 = arith.mulf %74, %76 : vector<8x32xf32>
    %c0_51 = arith.constant 0 : index
    %c0_52 = arith.constant 0 : index
    %78 = vector.load %arg17[%c0_51, %c0_52] : memref<1x32xf32, #tpu.memory_space<vmem>>, vector<1x32xf32>
    %79 = vector.broadcast %78 : vector<1x32xf32> to vector<8x32xf32>
    %80 = arith.addf %77, %79 : vector<8x32xf32>
    %c0_53 = arith.constant 0 : index
    %c0_54 = arith.constant 0 : index
    %81 = vector.load %arg12[%c0_53, %c0_54] : memref<32x128xf32, #tpu.memory_space<vmem>>, vector<32x128xf32>
    %cst_55 = arith.constant dense<0.000000e+00> : vector<8x128xf32>
    %82 = tpu.matmul %80, %81, %cst_55 {dimension_numbers = #tpu.dot_dimension_numbers<[1], [0], [0], [1], [0, 0, 1, 1], [], []>} : vector<8x32xf32>, vector<32x128xf32>, vector<8x128xf32> -> vector<8x128xf32>
    %c0_56 = arith.constant 0 : index
    %c0_57 = arith.constant 0 : index
    %83 = vector.load %arg13[%c0_56, %c0_57] : memref<1x128xf32, #tpu.memory_space<vmem>>, vector<1x128xf32>
    %84 = vector.broadcast %83 : vector<1x128xf32> to vector<8x128xf32>
    %85 = arith.addf %82, %84 : vector<8x128xf32>
    %cst_58 = arith.constant 0.000000e+00 : f32
    %86 = vector.broadcast %cst_58 : f32 to vector<8x128xf32>
    %87 = arith.cmpf ogt, %85, %86 : vector<8x128xf32>
    %cst_59 = arith.constant 0.000000e+00 : f32
    %88 = vector.broadcast %cst_59 : f32 to vector<8x128xf32>
    %89 = arith.minimumf %85, %88 : vector<8x128xf32>
    %90 = math.exp %89 : vector<8x128xf32>
    %cst_60 = arith.constant 1.000000e+00 : f32
    %91 = vector.broadcast %cst_60 : f32 to vector<8x128xf32>
    %92 = arith.subf %90, %91 : vector<8x128xf32>
    %93 = arith.select %87, %85, %92 : vector<8x128xi1>, vector<8x128xf32>
    %c0_61 = arith.constant 0 : index
    %c0_62 = arith.constant 0 : index
    %94 = vector.load %arg14[%c0_61, %c0_62] : memref<128x32xf32, #tpu.memory_space<vmem>>, vector<128x32xf32>
    %cst_63 = arith.constant dense<0.000000e+00> : vector<8x32xf32>
    %95 = tpu.matmul %93, %94, %cst_63 {dimension_numbers = #tpu.dot_dimension_numbers<[1], [0], [0], [1], [0, 0, 1, 1], [], []>} : vector<8x128xf32>, vector<128x32xf32>, vector<8x32xf32> -> vector<8x32xf32>
    %c0_64 = arith.constant 0 : index
    %c0_65 = arith.constant 0 : index
    %96 = vector.load %arg15[%c0_64, %c0_65] : memref<1x32xf32, #tpu.memory_space<vmem>>, vector<1x32xf32>
    %97 = vector.broadcast %96 : vector<1x32xf32> to vector<8x32xf32>
    %98 = arith.addf %95, %97 : vector<8x32xf32>
    %99 = arith.addf %80, %98 : vector<8x32xf32>
    %cst_66 = arith.constant dense<0.000000e+00> : vector<8xf32>
    %100 = vector.multi_reduction <add>, %99, %cst_66 [1] : vector<8x32xf32> to vector<8xf32>
    %101 = vector.shape_cast %100 : vector<8xf32> to vector<8x1xf32>
    %cst_67 = arith.constant 3.200000e+01 : f32
    %102 = vector.broadcast %cst_67 : f32 to vector<8x1xf32>
    %103 = arith.divf %101, %102 : vector<8x1xf32>
    %104 = vector.broadcast %103 : vector<8x1xf32> to vector<8x32xf32>
    %105 = arith.subf %99, %104 : vector<8x32xf32>
    %106 = arith.mulf %105, %105 : vector<8x32xf32>
    %cst_68 = arith.constant dense<0.000000e+00> : vector<8xf32>
    %107 = vector.multi_reduction <add>, %106, %cst_68 [1] : vector<8x32xf32> to vector<8xf32>
    %108 = vector.shape_cast %107 : vector<8xf32> to vector<8x1xf32>
    %cst_69 = arith.constant 3.200000e+01 : f32
    %109 = vector.broadcast %cst_69 : f32 to vector<8x1xf32>
    %110 = arith.divf %108, %109 : vector<8x1xf32>
    %cst_70 = arith.constant 9.99999974E-6 : f32
    %111 = vector.broadcast %cst_70 : f32 to vector<8x1xf32>
    %112 = arith.addf %110, %111 : vector<8x1xf32>
    %113 = math.rsqrt %112 : vector<8x1xf32>
    %114 = vector.broadcast %113 : vector<8x1xf32> to vector<8x32xf32>
    %115 = arith.mulf %105, %114 : vector<8x32xf32>
    %c0_71 = arith.constant 0 : index
    %c0_72 = arith.constant 0 : index
    %116 = vector.load %arg18[%c0_71, %c0_72] : memref<1x32xf32, #tpu.memory_space<vmem>>, vector<1x32xf32>
    %117 = vector.broadcast %116 : vector<1x32xf32> to vector<8x32xf32>
    %118 = arith.mulf %115, %117 : vector<8x32xf32>
    %c0_73 = arith.constant 0 : index
    %c0_74 = arith.constant 0 : index
    %119 = vector.load %arg19[%c0_73, %c0_74] : memref<1x32xf32, #tpu.memory_space<vmem>>, vector<1x32xf32>
    %120 = vector.broadcast %119 : vector<1x32xf32> to vector<8x32xf32>
    %121 = arith.addf %118, %120 : vector<8x32xf32>
    %c0_75 = arith.constant 0 : index
    %c0_76 = arith.constant 0 : index
    %c0_77 = arith.constant 0 : index
    %122 = vector.load %arg20[%c0_75, %c0_76, %c0_77] : memref<1x8x32xf32, #tpu.memory_space<vmem>>, vector<1x8x32xf32>
    %123 = vector.shape_cast %122 : vector<1x8x32xf32> to vector<8x32xf32>
    %124 = vector.shape_cast %121 : vector<8x32xf32> to vector<1x8x32xf32>
    tpu.vector_store %arg20[%c0_75, %c0_76, %c0_77], %124 {strides = array<i32>} : memref<1x8x32xf32, #tpu.memory_space<vmem>>, vector<1x8x32xf32>,
    return
  }
  func.func @transform_0(%arg0: i32, %arg1: i32) -> (i32, i32, i32) {
    %c0_i32 = arith.constant 0 : i32
    %c0_i32_0 = arith.constant 0 : i32
    return %arg0, %arg1, %c0_i32 : i32, i32, i32
  }
  func.func @transform_1(%arg0: i32, %arg1: i32) -> (i32, i32, i32) {
    %c0_i32 = arith.constant 0 : i32
    %c0_i32_0 = arith.constant 0 : i32
    %c0_i32_1 = arith.constant 0 : i32
    return %arg0, %c0_i32, %c0_i32_0 : i32, i32, i32
  }
  func.func @transform_2(%arg0: i32, %arg1: i32) -> (i32, i32, i32) {
    %c0_i32 = arith.constant 0 : i32
    %c0_i32_0 = arith.constant 0 : i32
    %c0_i32_1 = arith.constant 0 : i32
    %c0_i32_2 = arith.constant 0 : i32
    return %c0_i32, %c0_i32_0, %c0_i32_1 : i32, i32, i32
  }
  func.func @transform_3(%arg0: i32, %arg1: i32) -> (i32, i32, i32) {
    %c0_i32 = arith.constant 0 : i32
    %c0_i32_0 = arith.constant 0 : i32
    %c0_i32_1 = arith.constant 0 : i32
    %c0_i32_2 = arith.constant 0 : i32
    return %c0_i32, %c0_i32_0, %c0_i32_1 : i32, i32, i32
  }
  func.func @transform_4(%arg0: i32, %arg1: i32) -> (i32, i32, i32) {
    %c0_i32 = arith.constant 0 : i32
    %c0_i32_0 = arith.constant 0 : i32
    %c0_i32_1 = arith.constant 0 : i32
    %c0_i32_2 = arith.constant 0 : i32
    return %c0_i32, %c0_i32_0, %c0_i32_1 : i32, i32, i32
  }
  func.func @transform_5(%arg0: i32, %arg1: i32) -> (i32, i32, i32) {
    %c0_i32 = arith.constant 0 : i32
    %c0_i32_0 = arith.constant 0 : i32
    %c0_i32_1 = arith.constant 0 : i32
    %c0_i32_2 = arith.constant 0 : i32
    return %c0_i32, %c0_i32_0, %c0_i32_1 : i32, i32, i32
  }
  func.func @transform_6(%arg0: i32, %arg1: i32) -> (i32, i32, i32) {
    %c0_i32 = arith.constant 0 : i32
    %c0_i32_0 = arith.constant 0 : i32
    %c0_i32_1 = arith.constant 0 : i32
    %c0_i32_2 = arith.constant 0 : i32
    return %c0_i32, %c0_i32_0, %c0_i32_1 : i32, i32, i32
  }
  func.func @transform_7(%arg0: i32, %arg1: i32) -> (i32, i32, i32) {
    %c0_i32 = arith.constant 0 : i32
    %c0_i32_0 = arith.constant 0 : i32
    %c0_i32_1 = arith.constant 0 : i32
    %c0_i32_2 = arith.constant 0 : i32
    return %c0_i32, %c0_i32_0, %c0_i32_1 : i32, i32, i32
  }
  func.func @transform_8(%arg0: i32, %arg1: i32) -> (i32, i32, i32) {
    %c0_i32 = arith.constant 0 : i32
    %c0_i32_0 = arith.constant 0 : i32
    %c0_i32_1 = arith.constant 0 : i32
    %c0_i32_2 = arith.constant 0 : i32
    return %c0_i32, %c0_i32_0, %c0_i32_1 : i32, i32, i32
  }
  func.func @transform_9(%arg0: i32, %arg1: i32) -> (i32, i32) {
    %c0_i32 = arith.constant 0 : i32
    %c0_i32_0 = arith.constant 0 : i32
    %c0_i32_1 = arith.constant 0 : i32
    return %c0_i32, %c0_i32_0 : i32, i32
  }
  func.func @transform_10(%arg0: i32, %arg1: i32) -> (i32, i32) {
    %c0_i32 = arith.constant 0 : i32
    %c0_i32_0 = arith.constant 0 : i32
    %c0_i32_1 = arith.constant 0 : i32
    return %c0_i32, %c0_i32_0 : i32, i32
  }
  func.func @transform_11(%arg0: i32, %arg1: i32) -> (i32, i32) {
    %c0_i32 = arith.constant 0 : i32
    %c0_i32_0 = arith.constant 0 : i32
    %c0_i32_1 = arith.constant 0 : i32
    return %c0_i32, %c0_i32_0 : i32, i32
  }
  func.func @transform_12(%arg0: i32, %arg1: i32) -> (i32, i32) {
    %c0_i32 = arith.constant 0 : i32
    %c0_i32_0 = arith.constant 0 : i32
    %c0_i32_1 = arith.constant 0 : i32
    return %c0_i32, %c0_i32_0 : i32, i32
  }
  func.func @transform_13(%arg0: i32, %arg1: i32) -> (i32, i32) {
    %c0_i32 = arith.constant 0 : i32
    %c0_i32_0 = arith.constant 0 : i32
    %c0_i32_1 = arith.constant 0 : i32
    return %c0_i32, %c0_i32_0 : i32, i32
  }
  func.func @transform_14(%arg0: i32, %arg1: i32) -> (i32, i32) {
    %c0_i32 = arith.constant 0 : i32
    %c0_i32_0 = arith.constant 0 : i32
    %c0_i32_1 = arith.constant 0 : i32
    return %c0_i32, %c0_i32_0 : i32, i32
  }
  func.func @transform_15(%arg0: i32, %arg1: i32) -> (i32, i32) {
    %c0_i32 = arith.constant 0 : i32
    %c0_i32_0 = arith.constant 0 : i32
    %c0_i32_1 = arith.constant 0 : i32
    return %c0_i32, %c0_i32_0 : i32, i32
  }
  func.func @transform_16(%arg0: i32, %arg1: i32) -> (i32, i32) {
    %c0_i32 = arith.constant 0 : i32
    %c0_i32_0 = arith.constant 0 : i32
    %c0_i32_1 = arith.constant 0 : i32
    return %c0_i32, %c0_i32_0 : i32, i32
  }
  func.func @transform_17(%arg0: i32, %arg1: i32) -> (i32, i32) {
    %c0_i32 = arith.constant 0 : i32
    %c0_i32_0 = arith.constant 0 : i32
    %c0_i32_1 = arith.constant 0 : i32
    return %c0_i32, %c0_i32_0 : i32, i32
  }
  func.func @transform_18(%arg0: i32, %arg1: i32) -> (i32, i32, i32) {
    %c0_i32 = arith.constant 0 : i32
    %c0_i32_0 = arith.constant 0 : i32
    return %arg0, %arg1, %c0_i32 : i32, i32, i32
  }
}

</mosaic_0001>

<bundles_post_ra>
// kernel: tpu_custom_call.1
= control target key start
LH: loop header
LB: loop body
LE: loop exit
PB: predicated region body
PF: predicated region fallthrough
CT: control target
= control target key end

     0   :  { %s4563_s0 = inlined_call_operand.vmem [shape: f32[2,16,32], index: 0, kind: input, shape index: {}]   ;;  %s4564_s1 = inlined_call_operand.vmem [shape: f32[2,16,32], index: 1, kind: input, shape index: {}]   ;;  %s4565_s2 = inlined_call_operand.vmem [shape: f32[4,32,8], index: 2, kind: input, shape index: {}]   ;;  %s4566_s3 = inlined_call_operand.vmem [shape: f32[4,32,8], index: 3, kind: input, shape index: {}]   ;;  %s4567_s4 = inlined_call_operand.vmem [shape: f32[4,32,8], index: 4, kind: input, shape index: {}]   ;;  %s4568_s5 = inlined_call_operand.vmem [shape: f32[4,1,8], index: 5, kind: input, shape index: {}]   ;;  %s4569_s6 = inlined_call_operand.vmem [shape: f32[4,1,8], index: 6, kind: input, shape index: {}]   ;;  %s4570_s7 = inlined_call_operand.vmem [shape: f32[4,1,8], index: 7, kind: input, shape index: {}]   ;;  %s4571_s8 = inlined_call_operand.vmem [shape: f32[4,8,32], index: 8, kind: input, shape index: {}]   ;;  %s4572_s9 = inlined_call_operand.vmem [shape: f32[1,32], index: 9, kind: input, shape index: {}]   ;;  %s4573_s10 = inlined_call_operand.vmem [shape: f32[32,128], index: 10, kind: input, shape index: {}]   ;;  %s4574_s11 = inlined_call_operand.vmem [shape: f32[1,128], index: 11, kind: input, shape index: {}]   ;;  %s4575_s12 = inlined_call_operand.vmem [shape: f32[128,32], index: 12, kind: input, shape index: {}]   ;;  %s4576_s13 = inlined_call_operand.vmem [shape: f32[1,32], index: 13, kind: input, shape index: {}]   ;;  %s4577_s14 = inlined_call_operand.vmem [shape: f32[1,32], index: 14, kind: input, shape index: {}]   ;;  %s4578_s15 = inlined_call_operand.vmem [shape: f32[1,32], index: 15, kind: input, shape index: {}]   ;;  %s4579_s16 = inlined_call_operand.vmem [shape: f32[1,32], index: 16, kind: input, shape index: {}]   ;;  %s4580_s17 = inlined_call_operand.vmem [shape: f32[1,32], index: 17, kind: input, shape index: {}]   ;;  %s4581_s18 = inlined_call_operand.hbm [shape: f32[2,16,32], index: 18, kind: output, shape index: {}]  }
   0x1   :  { %4599 = sst [smem:[#allocation19_spill]] %s4563_s0 }
   0x2   :  { %4600 = sst [smem:[#allocation20_spill]] %s4564_s1 }
   0x3   :  { %4601 = sst [smem:[#allocation21_spill]] %s4565_s2 }
   0x4   :  { %4602 = sst [smem:[#allocation22_spill]] %s4576_s13 }
   0x5   :  { %4603 = sst [smem:[#allocation23_spill]] %s4579_s16 }
   0x6   :  { %4604 = sst [smem:[#allocation24_spill]] %s4580_s17 }
   0x7   :  { %4605 = sst [smem:[#allocation25_spill]] %s4581_s18 }
   0x8   :  { %23 = vsyncpa [#allocation5], 0 }
   0x9   :  { %25 = vsyncpa [#allocation5 + $0x1], 0  ;;  %s3958_s27 = smov 0   ;;  %s3960_s28 = smov 0  }
   0xa   :  { %s3962_s29 = smov 0   ;;  %s3964_s30 = smov 0  }
   0xb   :  { %s3966_s0 = smov 0   ;;  %s3968_s19 = smov 0  }
   0xc   :  { %s3970_s1 = smov 0   ;;  %s3972_s20 = smov 0  }
   0xd LB: > { %4606 = sst [smem:[#allocation7_spill]] %s3829_s27  ;;  %s3022_s21 = sadd.s32 4294967295, %s3857_s20   ;;  %s3857_s20 = sphi %s3972_s20, %s31_s20   ;;  %s3853_s1 = sphi %s3970_s1, %s4642_s1   ;;  %s3849_s19 = sphi %s3968_s19, %s4641_s19   ;;  %s3845_s0 = sphi %s3966_s0, %s4640_s0   ;;  %s3841_s30 = sphi %s3964_s30, %s4639_s30   ;;  %s3837_s29 = sphi %s3962_s29, %s4638_s29   ;;  %s3833_s28 = sphi %s3960_s28, %s4637_s28   ;;  %s3829_s27 = sphi %s3958_s27, %s4636_s27  }
   0xe   : > { %4607 = sst [smem:[#allocation8_spill]] %s3833_s28  ;;  %s3023_s22 = sadd.s32 4294967294, %s3857_s20  }
   0xf   : > { %4608 = sst [smem:[#allocation9_spill]] %s3837_s29  ;;  %s40_s2 = sadd.s32 1, %s3849_s19 }
  0x10   : > { %4609 = sst [smem:[#allocation10_spill]] %s3845_s0  ;;  %p41_p0 = scmp.ge.s32.totalorder %s40_s2, 2 }
  0x11   : > { %4610 = sst [smem:[#allocation11_spill]] %s3849_s19  ;;  %s43_s23 = sadd.s32 1, %s3853_s1 }
  0x12   : > { %4611 = sst [smem:[#allocation12_spill]] %s3853_s1  ;;  %p452_p1 = scmp.ne.s32.totalorder %s3837_s29, %s3833_s28 }
  0x13   : > { %4612 = sst [smem:[#allocation13_spill]] %s3857_s20  ;;  %p453_p2 = scmp.eq.s32.totalorder %s3022_s21, 3 }
  0x14   : > { %s4644_s2 = smov (%p41_p0, %s40_s2), 0  ;;  %s4646_s23 = smov (!%p41_p0, %s43_s23), %s3853_s1 }
  0x15   : > { %4613 = sst [smem:[#allocation14_spill]] %s4644_s2  ;;  %s438_s24 = ssub.s32 %s3849_s19, %s4644_s2 }
  0x16   : > { %p4009_p3 = por %p453_p2, %p452_p1  ;;  %p45_p4 = scmp.ge.s32.totalorder %s4646_s23, 2 }
  0x17   : > { %p458_p5 = scmp.ne.s32.totalorder %s3833_s28, %s3829_s27  ;;  %p459_p6 = scmp.eq.s32.totalorder %s3023_s22, 3 }
  0x18   : > { %s4614_s25 = scalar_select %p4009_p3, 1, 0 }
  0x19   : > { %p3026_p7 = scmp.ge.s32.totalorder %s3857_s20, 1  ;;  %s4648_s23 = smov (%p45_p4, %s4646_s23), 0 }
  0x1a   : > { %4615 = sst [smem:[#allocation15_spill]] %s4614_s25  ;;  %p4018_p8 = por %p459_p6, %p458_p5 }
  0x1b   : > { %4616 = sst [smem:[#allocation16_spill]] %s4648_s23  ;;  %p544_p9 = scmp.lt.s32.totalorder %s3857_s20, 5 }
  0x1c   : > { %s4617_s26 = scalar_select %p4018_p8, 1, 0 }
  0x1d   : > { %s437_s21 = ssub.s32 %s3853_s1, %s4648_s23  ;;  %s442_s18 = sadd.s32 1, %s3837_s29 }
  0x1e   : > { %4618 = sst [smem:[#allocation17_spill]] %s4617_s26  ;;  %s439_s17 = sor.u32 %s438_s24, %s437_s21 }
  0x1f   : > { %p545_p10 = pnand %p3026_p7, %p544_p9  ;;  %p440_p11 = scmp.eq.s32.totalorder %s439_s17, 0 }
  0x20   : > { %s4595_s22 = sand.u32 (!%p545_p10), 1, %s3833_s28   ;;  %p606_p12 = scmp.lt.s32.totalorder (!%p545_p10), %s3845_s0, 1 }
  0x21   : > { %s4027_s2 = scalar_select %p440_p11, %s3837_s29, %s442_s18  }
  0x22   : > { %548 = sbr.rel (%p545_p10) target bundleno = 2590 (0xa1e), region = 92  ;;  %s4033_s19 = sshll.u32 (!%p545_p10), %s4595_s22, 3 }
  0x23   : > { %4619 = sst [smem:[#allocation18_spill]] %s4027_s2  ;;  %p608_p13 = scmp.lt.s32.totalorder (!%p545_p10), %s3841_s30, 1 }
  0x24   : > { %s4620_s29 = sld [smem:[#allocation20_spill]] (!%p545_p10)  ;;  %s4621_s25 = sld [smem:[#allocation19_spill]] (!%p545_p10) }
  0x25   : > { %s605_s22 = scalar_lea.vmem (!%p545_p10), [#allocation4], %s4033_s19  ;;  %p3032_p0 = scmp.ne.s32.totalorder (!%p545_p10), %s3841_s30, 0 }
  0x29   : > { %s607_s23 = scalar_select %p606_p12, %s3845_s0, 1 }
  0x2a   : > { %s609_s24 = scalar_select %p608_p13, %s3841_s30, 1 }
  0x2b   : > { %s3028_s21 = sshll.u32 %s607_s23, 1  ;;  %s3144_s17 = sshll.u32 %s607_s23, 4  ;;  %v625_v0 = vld [vmem:[%s4566_s3] sm:$0xff] (!%p3032_p0)  ;;  %v626_v1 = vld [vmem:[%s4566_s3 + $0x8] sm:$0xff] (!%p3032_p0)  ;;  %vm636_vm0 = vcmask (!%p3032_p0), 261120   ;;  %v627_v5 = vld [vmem:[%s4566_s3 + $0x10] sm:$0xff] (!%p3032_p0) }
  0x2c   : > { %s611_s18 = sadd.s32 %s3028_s21, %s609_s24  ;;  %s4041_s26 = scalar_lea.vmem %s4620_s29, %s3144_s17  ;;  %v718_v2 = vld [vmem:[%s4567_s4] sm:$0xff] (!%p3032_p0)  ;;  %v3521_v3 = vpack.c.bf16 (!%p3032_p0), %v626_v1, %v625_v0  ;;  %v719_v4 = vld [vmem:[%s4567_s4 + $0x8] sm:$0xff] (!%p3032_p0)  ;;  %v628_v6 = vld [vmem:[%s4566_s3 + $0x18] sm:$0xff] (!%p3032_p0)  ;;  %vm804_vm1 = vcmask (!%p3032_p0), 64512  }
  0x2d   : > { %s3029_s27 = sshll.u32 %s611_s18, 3  ;;  %622 = sbr.rel (%p3032_p0) target bundleno = 295 (0x127), region = 96  ;;  %v3529_v7 = vpack.c.bf16 (!%p3032_p0), %v719_v4, %v718_v2  ;;  %v3525_v8 = vpack.c.bf16 (!%p3032_p0), %v628_v6, %v627_v5  ;;  %v720_v9 = vld [vmem:[%s4567_s4 + $0x10] sm:$0xff] (!%p3032_p0)  ;;  %v721_v10 = vld [vmem:[%s4567_s4 + $0x18] sm:$0xff] (!%p3032_p0)  ;;  %v4075_v11 = vld [vmem:[%s4041_s26] sm:$0xff] (!%p3032_p0) }
  0x2e   : > { %s4046_s13 = scalar_lea.vmem %s4621_s25, %s3029_s27  ;;  %3522 = vmatprep.subr.bf16.mxu0 (!%p3032_p0), %v3521_v3  ;;  %v3533_v12 = vpack.c.bf16 (!%p3032_p0), %v721_v10, %v720_v9  ;;  %3275 = vmatprep.mubr.msk.f32.mxu0 (!%p3032_p0), %vm636_vm0, %v4075_v11  ;;  %v3039_v13 = vld [vmem:[%s4566_s3 + $0x20] sm:$0xff] (!%p3032_p0)  ;;  %v3040_v14 = vld [vmem:[%s4566_s3 + $0x28] sm:$0xff] (!%p3032_p0)  ;;  %v3041_v19 = vld [vmem:[%s4566_s3 + $0x30] sm:$0xff] (!%p3032_p0) }
  0x2f   : > { %3530 = vmatprep.subr.bf16.mxu1 (!%p3032_p0), %v3529_v7  ;;  %3524 = vmatpush3.bf16.msra.mxu0 (!%p3032_p0), %v3521_v3  ;;  %v3047_v15 = vld [vmem:[%s4567_s4 + $0x20] sm:$0xff] (!%p3032_p0)  ;;  %v3048_v16 = vld [vmem:[%s4567_s4 + $0x28] sm:$0xff] (!%p3032_p0)  ;;  %v3537_v17 = vpack.c.bf16 (!%p3032_p0), %v3040_v14, %v3039_v13  ;;  %v3042_v20 = vld [vmem:[%s4566_s3 + $0x38] sm:$0xff] (!%p3032_p0) }
  0x30   : > { %3532 = vmatpush3.bf16.msra.mxu1 (!%p3032_p0), %v3529_v7  ;;  %3526 = vmatprep.subr.bf16.mxu0 (!%p3032_p0), %v3525_v8  ;;  %v3545_v18 = vpack.c.bf16 (!%p3032_p0), %v3048_v16, %v3047_v15  ;;  %v3049_v21 = vld [vmem:[%s4567_s4 + $0x30] sm:$0xff] (!%p3032_p0)  ;;  %v3050_v22 = vld [vmem:[%s4567_s4 + $0x38] sm:$0xff] (!%p3032_p0)  ;;  %v4106_v23 = vld [vmem:[%s4041_s26 + $0x8] sm:$0xff] (!%p3032_p0)  ;;  %v3541_v24 = vpack.c.bf16 (!%p3032_p0), %v3042_v20, %v3041_v19 }
  0x31   : > { %3534 = vmatprep.subr.bf16.mxu1 (!%p3032_p0), %v3533_v12  ;;  %3286 = vmatprep.mubr.msk.f32.mxu1 (!%p3032_p0), %vm636_vm0, %v4075_v11  ;;  %v3549_v25 = vpack.c.bf16 (!%p3032_p0), %v3050_v22, %v3049_v21  ;;  %v3055_v26 = vld [vmem:[%s4566_s3 + $0x40] sm:$0xff] (!%p3032_p0)  ;;  %v3056_v27 = vld [vmem:[%s4566_s3 + $0x48] sm:$0xff] (!%p3032_p0)  ;;  %v3057_v32 = vld [vmem:[%s4566_s3 + $0x50] sm:$0xff] (!%p3032_p0) }
  0x32   : > { %v3063_v28 = vld [vmem:[%s4567_s4 + $0x40] sm:$0xff] (!%p3032_p0)  ;;  %v3064_v29 = vld [vmem:[%s4567_s4 + $0x48] sm:$0xff] (!%p3032_p0)  ;;  %v3553_v30 = vpack.c.bf16 (!%p3032_p0), %v3056_v27, %v3055_v26  ;;  %v3058_v33 = vld [vmem:[%s4566_s3 + $0x58] sm:$0xff] (!%p3032_p0) }
  0x33   : > { %3528 = vmatpush3.bf16.msra.mxu0 (!%p3032_p0), %v3525_v8  ;;  %v3561_v31 = vpack.c.bf16 (!%p3032_p0), %v3064_v29, %v3063_v28  ;;  %v3065_v34 = vld [vmem:[%s4567_s4 + $0x50] sm:$0xff] (!%p3032_p0)  ;;  %v3066_v35 = vld [vmem:[%s4567_s4 + $0x58] sm:$0xff] (!%p3032_p0)  ;;  %v3557_v36 = vpack.c.bf16 (!%p3032_p0), %v3058_v33, %v3057_v32  ;;  %v3071_v38 = vld [vmem:[%s4566_s3 + $0x60] sm:$0xff] (!%p3032_p0) }
  0x34   : > { %3536 = vmatpush3.bf16.msra.mxu1 %v3533_v12  ;;  %3538 = vmatprep.subr.bf16.mxu0 %v3537_v17  ;;  %v3565_v37 = vpack.c.bf16 %v3066_v35, %v3065_v34  ;;  %v3072_v39 = vld [vmem:[%s4566_s3 + $0x68] sm:$0xff]  ;;  %v3079_v40 = vld [vmem:[%s4567_s4 + $0x60] sm:$0xff]  ;;  %v3073_v44 = vld [vmem:[%s4566_s3 + $0x70] sm:$0xff] }
  0x35   : > { %3546 = vmatprep.subr.bf16.mxu1 %v3545_v18  ;;  %v3080_v41 = vld [vmem:[%s4567_s4 + $0x68] sm:$0xff]  ;;  %v3569_v42 = vpack.c.bf16 %v3072_v39, %v3071_v38  ;;  %v3074_v45 = vld [vmem:[%s4566_s3 + $0x78] sm:$0xff]  ;;  %v3081_v46 = vld [vmem:[%s4567_s4 + $0x70] sm:$0xff] }
  0x36   : > { %3276 = vmatmul.mubr.msk.f32.vlgmr.msra.gmra.mrb[0].mxu0 %vm636_vm0, %v4106_v23  ;;  %v3577_v43 = vpack.c.bf16 %v3080_v41, %v3079_v40  ;;  %v3082_v47 = vld [vmem:[%s4567_s4 + $0x78] sm:$0xff]  ;;  %v3573_v48 = vpack.c.bf16 %v3074_v45, %v3073_v44  ;;  %v3033_v50 = vld [vmem:[%s4569_s6] ss:$0 sm:$0xff]  ;;  %v3044_v60 = vld [vmem:[%s4569_s6 + $0x1] ss:$0 sm:$0xff] }
  0x37   : > { %3287 = vmatmul.mubr.msk.f32.vlgmr.msra.gmra.mrb[0].mxu1 %vm636_vm0, %v4106_v23  ;;  %3540 = vmatpush3.bf16.msra.mxu0 %v3537_v17  ;;  %v3581_v49 = vpack.c.bf16 %v3082_v47, %v3081_v46  ;;  %v3036_v51 = vld [vmem:[%s4570_s7] ss:$0 sm:$0xff]  ;;  %v3052_v61 = vld [vmem:[%s4570_s7 + $0x1] ss:$0 sm:$0xff]  ;;  %v3060_v6 = vld [vmem:[%s4569_s6 + $0x2] ss:$0 sm:$0xff] }
  0x38   : > { %3548 = vmatpush3.bf16.msra.mxu1 %v3545_v18  ;;  %3542 = vmatprep.subr.bf16.mxu0 %v3541_v24  ;;  %v3068_v7 = vld [vmem:[%s4570_s7 + $0x2] ss:$0 sm:$0xff]  ;;  %v3076_v16 = vld [vmem:[%s4569_s6 + $0x3] ss:$0 sm:$0xff] }
  0x39   : > { %3550 = vmatprep.subr.bf16.mxu1 %v3549_v25  ;;  %3297 = vmatprep.mubr.msk.f32.mxu0 %vm636_vm0, %v4075_v11  ;;  %v3084_v17 = vld [vmem:[%s4570_s7 + $0x3] ss:$0 sm:$0xff] }
  0x3a   : > { %3308 = vmatprep.mubr.msk.f32.mxu1 %vm636_vm0, %v4075_v11 }
  0x3b   : > { %3544 = vmatpush3.bf16.msra.mxu0 %v3541_v24 }
  0x3c   : > { %3552 = vmatpush3.bf16.msra.mxu1 %v3549_v25  ;;  %3554 = vmatprep.subr.bf16.mxu0 %v3553_v30 }
  0x3d   : > { %3562 = vmatprep.subr.bf16.mxu1 %v3561_v31 }
  0x3e   : > { %3298 = vmatmul.mubr.msk.f32.vlgmr.msra.gmra.mrb[2].mxu0 %vm636_vm0, %v4106_v23 }
  0x3f   : > { %3309 = vmatmul.mubr.msk.f32.vlgmr.msra.gmra.mrb[2].mxu1 %vm636_vm0, %v4106_v23  ;;  %3556 = vmatpush3.bf16.msra.mxu0 %v3553_v30 }
  0x40   : > { %3564 = vmatpush3.bf16.msra.mxu1 %v3561_v31  ;;  %3558 = vmatprep.subr.bf16.mxu0 %v3557_v36 }
  0x41   : > { %3566 = vmatprep.subr.bf16.mxu1 %v3565_v37  ;;  %3319 = vmatprep.mubr.msk.f32.mxu0 %vm636_vm0, %v4075_v11 }
  0x42   : > { %3330 = vmatprep.mubr.msk.f32.mxu1 %vm636_vm0, %v4075_v11 }
  0x43   : > { %3560 = vmatpush3.bf16.msra.mxu0 %v3557_v36 }
  0x44   : > { %3568 = vmatpush3.bf16.msra.mxu1 %v3565_v37  ;;  %3570 = vmatprep.subr.bf16.mxu0 %v3569_v42 }
  0x45   : > { %3578 = vmatprep.subr.bf16.mxu1 %v3577_v43 }
  0x46   : > { %3320 = vmatmul.mubr.msk.f32.vlgmr.msra.gmra.mrb[4].mxu0 %vm636_vm0, %v4106_v23 }
  0x47   : > { %3331 = vmatmul.mubr.msk.f32.vlgmr.msra.gmra.mrb[4].mxu1 %vm636_vm0, %v4106_v23  ;;  %3572 = vmatpush3.bf16.msra.mxu0 %v3569_v42 }
  0x48   : > { %3580 = vmatpush3.bf16.msra.mxu1 %v3577_v43  ;;  %3574 = vmatprep.subr.bf16.mxu0 %v3573_v48 }
  0x49   : > { %3582 = vmatprep.subr.bf16.mxu1 %v3581_v49  ;;  %3341 = vmatprep.mubr.msk.f32.mxu0 %vm636_vm0, %v4075_v11 }
  0x4a   : > { %3352 = vmatprep.mubr.msk.f32.mxu1 %vm636_vm0, %v4075_v11 }
  0x4b   : > { %3576 = vmatpush3.bf16.msra.mxu0 %v3573_v48 }
  0x4c   : > { %3584 = vmatpush3.bf16.msra.mxu1 %v3581_v49 }
  0x4e   : > { %3342 = vmatmul.mubr.msk.f32.vlgmr.msra.gmra.mrb[6].mxu0 %vm636_vm0, %v4106_v23 }
  0x4f   : > { %3353 = vmatmul.mubr.msk.f32.vlgmr.msra.gmra.mrb[6].mxu1 %vm636_vm0, %v4106_v23 }
 0x109   : > { %v3277_v52 = vpop.f32.mrb[0].mxu0 }
 0x10a   : > { %v715_v53 = vadd.f32 %v3277_v52, %v3033_v50  ;;  %v3288_v54 = vpop.f32.mrb[0].mxu1  ;;  %v709_v55 = vpop.f32.mrb[1].mxu0 }
 0x10b   : > { %v801_v56 = vadd.f32 %v3288_v54, %v3036_v51  ;;  %v710_v57 = vadd.f32 %v3033_v50, %v709_v55  ;;  %v795_v58 = vpop.f32.mrb[1].mxu1 }
 0x10c   : > { %806 = vst.msk [vmem:[#allocation2 + $0x8] sm:$0xff] %vm804_vm1, %v715_v53  ;;  %v796_v59 = vadd.f32 %v3036_v51, %v795_v58 }
 0x10d   : > { %808 = vst.msk [vmem:[#allocation3 + $0x8] sm:$0xff] %vm804_vm1, %v801_v56  ;;  %805 = vst.msk [vmem:[#allocation2] sm:$0xff] %vm804_vm1, %v710_v57 }
 0x10e   : > { %807 = vst.msk [vmem:[#allocation3] sm:$0xff] %vm804_vm1, %v796_v59 }
 0x111   : > { %v3299_v62 = vpop.f32.mrb[2].mxu0 }
 0x112   : > { %v894_v63 = vadd.f32 %v3299_v62, %v3044_v60  ;;  %v3310_v0 = vpop.f32.mrb[2].mxu1  ;;  %v888_v1 = vpop.f32.mrb[3].mxu0 }
 0x113   : > { %v982_v2 = vadd.f32 %v3310_v0, %v3052_v61  ;;  %v889_v3 = vadd.f32 %v3044_v60, %v888_v1  ;;  %v976_v4 = vpop.f32.mrb[3].mxu1 }
 0x114   : > { %987 = vst.msk [vmem:[#allocation2 + $0x18] sm:$0xff] %vm804_vm1, %v894_v63  ;;  %v977_v5 = vadd.f32 %v3052_v61, %v976_v4 }
 0x115   : > { %990 = vst.msk [vmem:[#allocation3 + $0x18] sm:$0xff] %vm804_vm1, %v982_v2  ;;  %986 = vst.msk [vmem:[#allocation2 + $0x10] sm:$0xff] %vm804_vm1, %v889_v3 }
 0x116   : > { %989 = vst.msk [vmem:[#allocation3 + $0x10] sm:$0xff] %vm804_vm1, %v977_v5 }
 0x119   : > { %v3321_v8 = vpop.f32.mrb[4].mxu0 }
 0x11a   : > { %v1076_v9 = vadd.f32 %v3321_v8, %v3060_v6  ;;  %v3332_v10 = vpop.f32.mrb[4].mxu1  ;;  %v1070_v11 = vpop.f32.mrb[5].mxu0 }
 0x11b   : > { %v1164_v12 = vadd.f32 %v3332_v10, %v3068_v7  ;;  %v1071_v13 = vadd.f32 %v3060_v6, %v1070_v11  ;;  %v1158_v14 = vpop.f32.mrb[5].mxu1 }
 0x11c   : > { %1169 = vst.msk [vmem:[#allocation2 + $0x28] sm:$0xff] %vm804_vm1, %v1076_v9  ;;  %v1159_v15 = vadd.f32 %v3068_v7, %v1158_v14 }
 0x11d   : > { %1172 = vst.msk [vmem:[#allocation3 + $0x28] sm:$0xff] %vm804_vm1, %v1164_v12  ;;  %1168 = vst.msk [vmem:[#allocation2 + $0x20] sm:$0xff] %vm804_vm1, %v1071_v13 }
 0x11e   : > { %1171 = vst.msk [vmem:[#allocation3 + $0x20] sm:$0xff] %vm804_vm1, %v1159_v15 }
 0x121   : > { %v3343_v18 = vpop.f32.mrb[6].mxu0 }
 0x122   : > { %v1258_v19 = vadd.f32 %v3343_v18, %v3076_v16  ;;  %v3354_v20 = vpop.f32.mrb[6].mxu1  ;;  %v1252_v21 = vpop.f32.mrb[7].mxu0 }
 0x123   : > { %v1346_v22 = vadd.f32 %v3354_v20, %v3084_v17  ;;  %v1253_v23 = vadd.f32 %v3076_v16, %v1252_v21  ;;  %v1340_v24 = vpop.f32.mrb[7].mxu1 }
 0x124   : > { %1351 = vst.msk [vmem:[#allocation2 + $0x38] sm:$0xff] %vm804_vm1, %v1258_v19  ;;  %v1341_v25 = vadd.f32 %v3084_v17, %v1340_v24 }
 0x125   : > { %1354 = vst.msk [vmem:[#allocation3 + $0x38] sm:$0xff] %vm804_vm1, %v1346_v22  ;;  %1350 = vst.msk [vmem:[#allocation2 + $0x30] sm:$0xff] %vm804_vm1, %v1253_v23 }
 0x126   : > { %1353 = vst.msk [vmem:[#allocation3 + $0x30] sm:$0xff] %vm804_vm1, %v1341_v25 }
 0x127 PF: > { %s4622_s2 = sld [smem:[#allocation21_spill]]  ;;  %v3859_v29 = vmov 0.0|0.0   ;;  %vm3860_vm2 = vmmov 0   ;;  %v3861_v32 = vmov 0.0   ;;  %v4262_v41 = vld [vmem:[%s4046_s13] sm:$0xff]  ;;  %vm1367_vm3 = vcmask 261120  }
 0x128   : > { %3585 = vmatprep.subr.bf16.mxu0 %v3859_v29  ;;  %3363 = vmatprep.mubr.msk.f32.mxu0 %vm3860_vm2, %v3861_v32  ;;  %v1690_v53 = vld [vmem:[#allocation2] sm:$0xff]  ;;  %v1691_v54 = vld [vmem:[#allocation2 + $0x8] sm:$0xff]  ;;  %vm1706_vm4 = vcmask 64512   ;;  %v1692_v57 = vld [vmem:[#allocation2 + $0x10] sm:$0xff]  ;;  %vm2023_vm6 = vcmask 130048   ;;  %s4625_s23 = sld [smem:[#allocation22_spill]] }
 0x129   : > { %3603 = vmatprep.subr.bf16.mxu1 %v3859_v29  ;;  %3396 = vmatprep.mubr.msk.f32.mxu1 %vm3860_vm2, %v3861_v32  ;;  %v3610_v55 = vpack.c.bf16 %v1691_v54, %v1690_v53  ;;  %vm4307_vm5 = vmpackc.low %vm1706_vm4, %vm1706_vm4  ;;  %v1693_v58 = vld [vmem:[#allocation2 + $0x18] sm:$0xff]  ;;  %v1694_v60 = vld [vmem:[#allocation2 + $0x20] sm:$0xff]  ;;  %s4626_s13 = sld [smem:[#allocation10_spill]]  ;;  %s4629_s26 = sld [smem:[#allocation23_spill]] }
 0x12a   : > { %v3614_v59 = vpack.c.bf16 %v1693_v58, %v1692_v57  ;;  %v1695_v61 = vld [vmem:[#allocation2 + $0x28] sm:$0xff]  ;;  %v3087_v62 = vld [vmem:[%s4568_s5] ss:$0 sm:$0xff]  ;;  %v3094_v6 = vld [vmem:[%s4568_s5 + $0x1] ss:$0 sm:$0xff]  ;;  %s4627_s24 = sld [smem:[#allocation8_spill]] }
 0x12b   : > { %v3618_v0 = vpack.c.bf16 %v1695_v61, %v1694_v60  ;;  %v1697_v4 = vld [vmem:[#allocation2 + $0x38] sm:$0xff]  ;;  %v3108_v12 = vld [vmem:[%s4568_s5 + $0x3] ss:$0 sm:$0xff]  ;;  %v3101_v13 = vld [vmem:[%s4568_s5 + $0x2] ss:$0 sm:$0xff]  ;;  %s4630_s25 = sld [smem:[#allocation24_spill]] }
 0x12c   : > { %v1696_v3 = vld [vmem:[#allocation2 + $0x30] sm:$0xff]  ;;  %v1698_v53 = vld [vmem:[#allocation3] sm:$0xff]  ;;  %v1699_v54 = vld [vmem:[#allocation3 + $0x8] sm:$0xff]  ;;  %s2932_s17 = sshll.u32 %s605_s22, 4  ;;  %s3862_s27 = smov [#allocation4]   ;;  %s4507_s17 = int_to_ptr.vmem [resolvable:$true] %s2932_s17 }
 0x12d   : > { %v1356_v26 = vld [vmem:[%s4622_s2] sm:$0xff]  ;;  %v1357_v27 = vld [vmem:[%s4622_s2 + $0x8] sm:$0xff]  ;;  %v1358_v28 = vld [vmem:[%s4622_s2 + $0x10] sm:$0xff]  ;;  %v3622_v9 = vpack.c.bf16 %v1697_v4, %v1696_v3  ;;  %s3767_s20 = sshll.u32 %s3862_s27, 4  ;;  %s3768_s20 = int_to_ptr.vmem [resolvable:$false] %s3767_s20 }
 0x12e   : > { %v3586_v30 = vpack.c.bf16 %v1357_v27, %v1356_v26  ;;  %v1359_v31 = vld [vmem:[%s4622_s2 + $0x18] sm:$0xff]  ;;  %v3103_v34 = vld [vmem:[%s4622_s2 + $0x60] sm:$0xff]  ;;  %v3090_v36 = vld [vmem:[%s4622_s2 + $0x28] sm:$0xff]  ;;  %p3770_p5 = scmp.lt.s32.totalorder %s4507_s17, %s3768_s20 }
 0x12f   : > { %v3589_v33 = vpack.c.bf16 %v1359_v31, %v1358_v28  ;;  %v3089_v35 = vld [vmem:[%s4622_s2 + $0x20] sm:$0xff]  ;;  %v3104_v37 = vld [vmem:[%s4622_s2 + $0x68] sm:$0xff]  ;;  %v3105_v39 = vld [vmem:[%s4622_s2 + $0x70] sm:$0xff]  ;;  %s3140_s29 = sshll.u32 %s4626_s13, 1  ;;  %s4631_s13 = sld [smem:[#allocation25_spill]] }
 0x130   : > { %3587 = vmatpush3.bf16.msra.mxu0 %v3586_v30  ;;  %v3604_v38 = vpack.c.bf16 %v3104_v37, %v3103_v34  ;;  %v3106_v40 = vld [vmem:[%s4622_s2 + $0x78] sm:$0xff]  ;;  %v3592_v42 = vpack.c.bf16 %v3090_v36, %v3089_v35  ;;  %v3091_v43 = vld [vmem:[%s4622_s2 + $0x30] sm:$0xff]  ;;  %v3096_v47 = vld [vmem:[%s4622_s2 + $0x40] sm:$0xff]  ;;  %s2928_s16 = sadd.s32 %s3841_s30, %s3140_s29  ;;  %s4632_s30 = sand.u32 1, %s4627_s24  }
 0x131   : > { %3588 = vmatprep.subr.bf16.mxu0 %v3859_v29  ;;  %v3092_v44 = vld [vmem:[%s4622_s2 + $0x38] sm:$0xff]  ;;  %v3607_v45 = vpack.c.bf16 %v3106_v40, %v3105_v39  ;;  %v3097_v48 = vld [vmem:[%s4622_s2 + $0x48] sm:$0xff]  ;;  %v3098_v50 = vld [vmem:[%s4622_s2 + $0x50] sm:$0xff]  ;;  %s3141_s21 = sshll.u32 %s2928_s16, 7  ;;  %s2917_s29 = scalar_lea.sflag [#allocation5], %s4632_s30 }
 0x132   : > { %3605 = vmatpush3.bf16.msra.mxu1 %v3604_v38  ;;  %v3595_v46 = vpack.c.bf16 %v3092_v44, %v3091_v43  ;;  %v3598_v49 = vpack.c.bf16 %v3097_v48, %v3096_v47  ;;  %v3099_v51 = vld [vmem:[%s4622_s2 + $0x58] sm:$0xff]  ;;  %v1704_v56 = vld [vmem:[#allocation3 + $0x30] sm:$0xff]  ;;  %v1702_v3 = vld [vmem:[#allocation3 + $0x20] sm:$0xff]  ;;  %s3763_s16 = scalar_lea.vmem %s4507_s17, 128 }
 0x133   : > { %3606 = vmatprep.subr.bf16.mxu1 %v3859_v29  ;;  %v3601_v52 = vpack.c.bf16 %v3099_v51, %v3098_v50  ;;  %v1705_v57 = vld [vmem:[#allocation3 + $0x38] sm:$0xff]  ;;  %v1700_v61 = vld [vmem:[#allocation3 + $0x10] sm:$0xff]  ;;  %v1703_v4 = vld [vmem:[#allocation3 + $0x28] sm:$0xff]  ;;  %p3764_p1 = scmp.ne.s32.totalorder %s4507_s17, %s3763_s16 }
 0x134   : > { %3590 = vmatpush3.bf16.msra.mxu0 %v3589_v33  ;;  %v3635_v58 = vpack.c.bf16 %v1705_v57, %v1704_v56  ;;  %v2792_v56 = vld [vmem:[%s4575_s12] sm:$0xff]  ;;  %v2793_v57 = vld [vmem:[%s4575_s12 + $0x8] sm:$0xff] }
 0x135   : > { %3591 = vmatprep.subr.bf16.mxu0 %v3859_v29  ;;  %s4505_s2 = scalar_lea.hbm %s4631_s13, %s3141_s21  ;;  %p3765_p2 = pnand %p3764_p1, %p4009_p3 }
 0x136   : > { %3608 = vmatpush3.bf16.msra.mxu1 %v3607_v45 }
 0x137   : > { %3364 = vmatmul.mubr.msk.f32.vlgmr.msra.gmra.mrb[0].mxu0 %vm1367_vm3, %v4262_v41  ;;  %3613 = vmatprep.subr.bf16.mxu1 %v3859_v29  ;;  %p3766_p4 = pneg %p3765_p2 }
 0x138   : > { %3593 = vmatpush3.bf16.msra.mxu0 %v3592_v42  ;;  %3374 = vmatprep.mubr.msk.f32.mxu0 %vm3860_vm2, %v3861_v32 }
 0x139   : > { %3594 = vmatprep.subr.bf16.mxu0 %v3859_v29  ;;  %3397 = vmatmul.mubr.msk.f32.vlgmr.msra.gmra.mrb[0].mxu1 %vm1367_vm3, %v4262_v41 }
 0x13a   : > { %3410 = vmatprep.mubr.msk.f32.mxu1 %vm3860_vm2, %v3861_v32 }
 0x13c   : > { %3596 = vmatpush3.bf16.msra.mxu0 %v3595_v46 }
 0x13d   : > { %3597 = vmatprep.subr.bf16.mxu0 %v3859_v29 }
 0x13f   : > { %3375 = vmatmul.mubr.msk.f32.vlgmr.msra.gmra.mrb[2].mxu0 %vm1367_vm3, %v4262_v41  ;;  %3616 = vmatpush3.bf16.xpose.msk.msra.mxu1 %vm4307_vm5, %v3614_v59 }
 0x140   : > { %3599 = vmatpush3.bf16.msra.mxu0 %v3598_v49  ;;  %3385 = vmatprep.mubr.msk.f32.mxu0 %vm3860_vm2, %v3861_v32 }
 0x141   : > { %3600 = vmatprep.subr.bf16.mxu0 %v3859_v29  ;;  %3621 = vmatprep.subr.bf16.mxu1 %v3859_v29 }
 0x144   : > { %3602 = vmatpush3.bf16.msra.mxu0 %v3601_v52 }
 0x145   : > { %3609 = vmatprep.subr.bf16.mxu0 %v3859_v29 }
 0x147   : > { %3386 = vmatmul.mubr.msk.f32.vlgmr.msra.gmra.mrb[4].mxu0 %vm1367_vm3, %v4262_v41 }
 0x148   : > { %3403 = vmatprep.mubr.msk.f32.mxu0 %vm3860_vm2, %v3861_v32 }
 0x14d   : > { %3612 = vmatpush3.bf16.xpose.msk.msra.mxu0 %vm4307_vm5, %v3610_v55  ;;  %v3626_v55 = vpack.c.bf16 %v1699_v54, %v1698_v53  ;;  %v2705_v54 = vld [vmem:[%s4573_s10 + $0x18] sm:$0xff] }
 0x14e   : > { %3617 = vmatprep.subr.bf16.mxu0 %v3859_v29 }
 0x20a   : > { %v1437_v63 = vpop.f32.mrb[0].mxu0 }
 0x20b   : > { %v1438_v1 = vadd.f32 %v3087_v62, %v1437_v63  ;;  %v3365_v2 = vpop.f32.mrb[1].mxu0  ;;  %v1701_v62 = vld [vmem:[#allocation3 + $0x18] sm:$0xff] }
 0x20c   : > { %v1686_v5 = vpop.f32.mrb[0].mxu1 }
 0x20d   : > { %3404 = vmatmul.mubr.msk.f32.vlgmr.msra.gmra.mrb[6].mxu0 %vm1706_vm4, %v1438_v1  ;;  %v3398_v7 = vpop.f32.mrb[1].mxu1  ;;  %v1687_v14 = vadd.f32 %v3108_v12, %v1686_v5 }
 0x20e   : > { %3620 = vmatpush3.bf16.xpose.msk.msra.mxu0 %vm4307_vm5, %v3618_v0  ;;  %3417 = vmatprep.mubr.msk.f32.mxu0 %vm3860_vm2, %v3861_v32  ;;  %v3629_v0 = vpack.c.bf16 %v1701_v62, %v1700_v61  ;;  %v2796_v62 = vld [vmem:[%s4575_s12 + $0x20] sm:$0xff] }
 0x20f   : > { %3625 = vmatprep.subr.bf16.mxu0 %v3859_v29 }
 0x212   : > { %v1520_v8 = vpop.f32.mrb[2].mxu0 }
 0x213   : > { %v1521_v10 = vadd.f32 %v3094_v6, %v1520_v8  ;;  %v3376_v11 = vpop.f32.mrb[3].mxu0  ;;  %v3632_v6 = vpack.c.bf16 %v1703_v4, %v1702_v3 }
 0x215   : > { %3411 = vmatmul.mubr.msk.f32.vlgmr.msra.gmra.mrb[2].mxu1 %vm1706_vm4, %v1521_v10 }
 0x216   : > { %3624 = vmatpush3.bf16.xpose.msk.msra.mxu1 %vm4307_vm5, %v3622_v9  ;;  %3424 = vmatprep.mubr.msk.f32.mxu1 %vm3860_vm2, %v3861_v32 }
 0x217   : > { %3634 = vmatprep.subr.bf16.mxu1 %v3859_v29 }
 0x21a   : > { %v1603_v15 = vpop.f32.mrb[4].mxu0 }
 0x21b   : > { %v1604_v16 = vadd.f32 %v3101_v13, %v1603_v15  ;;  %v3387_v17 = vpop.f32.mrb[5].mxu0  ;;  %v2360_v13 = vld [vmem:[%s4571_s8] sm:$0xff]  ;;  %v2362_v15 = vld [vmem:[%s4571_s8 + $0x10] sm:$0xff] }
 0x21d   : > { %3418 = vmatmul.mubr.msk.f32.vlgmr.msra.gmra.mrb[8].mxu0 %vm1706_vm4, %v1604_v16  ;;  %3425 = vmatmul.mubr.msk.f32.vlgmr.msra.gmra.mrb[4].mxu1 %vm1706_vm4, %v1687_v14  ;;  %v2361_v14 = vld [vmem:[%s4571_s8 + $0x8] sm:$0xff] }
 0x21e   : > { %3431 = vmatprep.mubr.msk.f32.mxu0 %vm3860_vm2, %v3861_v32  ;;  %3452 = vmatprep.mubr.msk.f32.mxu1 %vm3860_vm2, %v3861_v32 }
 0x21f   : > { %3627 = vmatpush3.bf16.msra.mxu0 %v3626_v55  ;;  %3636 = vmatpush3.bf16.msra.mxu1 %v3635_v58  ;;  %v2794_v58 = vld [vmem:[%s4575_s12 + $0x10] sm:$0xff] }
 0x220   : > { %3628 = vmatprep.subr.bf16.mxu0 %v3859_v29  ;;  %3460 = vmatprep.subr.mxu1 %v3861_v32 }
 0x2e0   : > { %v1782_v18 = vpop.f32.mrb[6].mxu0 }
 0x2e1   : > { %v3405_v19 = vpop.f32.mrb[7].mxu0  ;;  %v2024_v20 = vsel %vm2023_vm6, %v1782_v18, -inf }
 0x2e2   : > { %2025 = vmax.xlane.f32.xlu0 %v2024_v20 }
 0x2e8   : > { %v1861_v21 = vpop.f32.mrb[2].mxu1 }
 0x2e9   : > { %v3412_v22 = vpop.f32.mrb[3].mxu1  ;;  %v2027_v23 = vsel %vm2023_vm6, %v1861_v21, -inf }
 0x2ea   : > { %2028 = vmax.xlane.f32.xlu0 %v2027_v23 }
 0x2f0   : > { %v1940_v24 = vpop.f32.mrb[8].mxu0  ;;  %v2019_v25 = vpop.f32.mrb[4].mxu1 }
 0x2f1   : > { %v3419_v26 = vpop.f32.mrb[9].mxu0  ;;  %v2030_v27 = vsel %vm2023_vm6, %v1940_v24, -inf  ;;  %v3426_v28 = vpop.f32.mrb[5].mxu1  ;;  %v2033_v30 = vsel %vm2023_vm6, %v2019_v25, -inf }
 0x2f2   : > { %2031 = vmax.xlane.f32.xlu1 %v2030_v27 }
 0x2f6   : > { %2034 = vmax.xlane.f32.xlu1 %v2033_v30 }
 0x36f   : > { %v2026_v31 = vpop.xlane.xlu0 %2025 }
 0x370   : > { %v2036_v33 = vsub.f32 %v1782_v18, %v2026_v31  ;;  %v2363_v18 = vld [vmem:[%s4571_s8 + $0x18] sm:$0xff] }
 0x372   : > { %v2040_v34 = vmul.f32 1.442695, %v2036_v33 }
 0x374   : > { %3741 = vpow2.f32 %v2040_v34 }
 0x377   : > { %v2029_v35 = vpop.xlane.xlu0 %2028 }
 0x378   : > { %v2037_v36 = vsub.f32 %v1861_v21, %v2029_v35 }
 0x37a   : > { %v2042_v37 = vmul.f32 1.442695, %v2037_v36 }
 0x37c   : > { %3743 = vpow2.f32 %v2042_v37 }
 0x37e   : > { %v3742_v38 = vpop.eup %3741 }
 0x37f   : > { %v2032_v39 = vpop.xlane.xlu1 %2031  ;;  %v2048_v40 = vsel %vm2023_vm6, %v3742_v38, 0.0 }
 0x380   : > { %v2038_v42 = vsub.f32 %v1940_v24, %v2032_v39  ;;  %2049 = vadd.xlane.f32.xlu0 %v2048_v40 }
 0x382   : > { %v2044_v43 = vmul.f32 1.442695, %v2038_v42 }
 0x383   : > { %v2035_v44 = vpop.xlane.xlu1 %2034 }
 0x384   : > { %3745 = vpow2.f32 %v2044_v43  ;;  %v2039_v45 = vsub.f32 %v2019_v25, %v2035_v44 }
 0x386   : > { %v3744_v46 = vpop.eup %3743  ;;  %v2046_v47 = vmul.f32 1.442695, %v2039_v45 }
 0x387   : > { %v2051_v48 = vsel %vm2023_vm6, %v3744_v46, 0.0 }
 0x388   : > { %3747 = vpow2.f32 %v2046_v47  ;;  %2052 = vadd.xlane.f32.xlu1 %v2051_v48 }
 0x38e   : > { %v3746_v49 = vpop.eup %3745 }
 0x38f   : > { %v2054_v50 = vsel %vm2023_vm6, %v3746_v49, 0.0 }
 0x390   : > { %2055 = vadd.xlane.f32.xlu0 %v2054_v50 }
 0x392   : > { %v3748_v51 = vpop.eup %3747 }
 0x393   : > { %v2057_v52 = vsel %vm2023_vm6, %v3748_v51, 0.0 }
 0x394   : > { %2058 = vadd.xlane.f32.xlu1 %v2057_v52  ;;  %v2703_v52 = vld [vmem:[%s4573_s10 + $0x8] sm:$0xff] }
 0x40d   : > { %v2050_v59 = vpop.xlane.xlu0 %2049 }
 0x40e   : > { %3749 = vrcp.f32 %v2050_v59  ;;  %v3644_v59 = vpack.c.bf16 %v2793_v57, %v2792_v56 }
 0x415   : > { %v2053_v60 = vpop.xlane.xlu1 %2052 }
 0x416   : > { %3751 = vrcp.f32 %v2053_v60  ;;  %v2795_v60 = vld [vmem:[%s4575_s12 + $0x18] sm:$0xff] }
 0x417   : > { %v3647_v61 = vpack.c.bf16 %v2795_v60, %v2794_v58 }
 0x418   : > { %v3750_v63 = vpop.eup %3749 }
 0x419   : > { %v2064_v1 = vmul.f32 %v3750_v63, %v3742_v38  ;;  %v2797_v63 = vld [vmem:[%s4575_s12 + $0x28] sm:$0xff] }
 0x41b   : > { %3432 = vmatmul.mubr.msk.f32.vlgmr.msra.gmra.mrb[10].mxu0 %vm2023_vm6, %v2064_v1 }
 0x41c   : > { %3630 = vmatpush3.bf16.msra.mxu0 %v3629_v0  ;;  %3438 = vmatprep.mubr.msk.f32.mxu0 %vm3860_vm2, %v3861_v32  ;;  %v3650_v0 = vpack.c.bf16 %v2797_v63, %v2796_v62 }
 0x41d   : > { %v2056_v2 = vpop.xlane.xlu0 %2055  ;;  %3631 = vmatprep.subr.bf16.mxu0 %v3859_v29 }
 0x41e   : > { %3753 = vrcp.f32 %v2056_v2 }
 0x420   : > { %v3752_v5 = vpop.eup %3751 }
 0x421   : > { %v2065_v7 = vmul.f32 %v3752_v5, %v3744_v46  ;;  %v2059_v8 = vpop.xlane.xlu1 %2058  ;;  %v3131_v5 = vld [vmem:[%s4577_s14] ss:$0 sm:$0xff] }
 0x422   : > { %3755 = vrcp.f32 %v2059_v8 }
 0x423   : > { %3439 = vmatmul.mubr.msk.f32.vlgmr.msra.gmra.mrb[12].mxu0 %vm2023_vm6, %v2065_v7  ;;  %v3132_v7 = vld [vmem:[%s4578_s15] ss:$0 sm:$0xff] }
 0x424   : > { %3633 = vmatpush3.bf16.msra.mxu0 %v3632_v6  ;;  %3445 = vmatprep.mubr.msk.f32.mxu0 %vm3860_vm2, %v3861_v32 }
 0x425   : > { %3455 = vmatprep.subr.mxu0 %v3861_v32 }
 0x428   : > { %v3754_v9 = vpop.eup %3753 }
 0x429   : > { %v2066_v10 = vmul.f32 %v3754_v9, %v3746_v49 }
 0x42b   : > { %3446 = vmatmul.mubr.msk.f32.vlgmr.msra.gmra.mrb[14].mxu0 %vm2023_vm6, %v2066_v10  ;;  %v2798_v10 = vld [vmem:[%s4575_s12 + $0x30] sm:$0xff] }
 0x42c   : > { %v3756_v11 = vpop.eup %3755  ;;  %3457 = vmatprep.mubr.msk.f32.mxu0 %vm3860_vm2, %v3861_v32  ;;  %3456 = vmatpush3.msra.mxu0 %v2360_v13  ;;  %v2800_v13 = vld [vmem:[%s4575_s12 + $0x40] sm:$0xff] }
 0x42d   : > { %v2067_v12 = vmul.f32 %v3756_v11, %v3748_v51  ;;  %3465 = vmatprep.subr.mxu0 %v3861_v32  ;;  %v2702_v51 = vld [vmem:[%s4573_s10] sm:$0xff]  ;;  %v2799_v11 = vld [vmem:[%s4575_s12 + $0x38] sm:$0xff] }
 0x42e   : > { %v3638_v53 = vpack.c.bf16 %v2703_v52, %v2702_v51  ;;  %v3138_v52 = vld [vmem:[%s4630_s25] ss:$0 sm:$0xff] }
 0x42f   : > { %3453 = vmatmul.mubr.msk.f32.vlgmr.msra.gmra.mrb[6].mxu1 %vm2023_vm6, %v2067_v12  ;;  %v3653_v12 = vpack.c.bf16 %v2799_v11, %v2798_v10 }
 0x430   : > { %3462 = vmatprep.mubr.msk.f32.mxu1 %vm3860_vm2, %v3861_v32  ;;  %3461 = vmatpush3.msra.mxu1 %v2361_v14  ;;  %v2801_v14 = vld [vmem:[%s4575_s12 + $0x48] sm:$0xff] }
 0x431   : > { %3470 = vmatprep.subr.mxu1 %v3861_v32 }
 0x4ee   : > { %v2137_v16 = vpop.f32.mrb[10].mxu0 }
 0x4ef   : > { %v3433_v17 = vpop.f32.mrb[11].mxu0  ;;  %3458 = vmatmul.mubr.msk.f32.vlgmr.msra.gmra.mrb[16].mxu0 %vm1706_vm4, %v2137_v16  ;;  %v2802_v16 = vld [vmem:[%s4575_s12 + $0x50] sm:$0xff] }
 0x4f0   : > { %3466 = vmatpush3.msra.mxu0 %v2362_v15  ;;  %3467 = vmatprep.mubr.msk.f32.mxu0 %vm3860_vm2, %v3861_v32  ;;  %v3656_v15 = vpack.c.bf16 %v2801_v14, %v2800_v13  ;;  %v2803_v17 = vld [vmem:[%s4575_s12 + $0x58] sm:$0xff] }
 0x4f1   : > { %3637 = vmatprep.subr.bf16.mxu0 %v3859_v29 }
 0x4f6   : > { %v2210_v19 = vpop.f32.mrb[12].mxu0 }
 0x4f7   : > { %v3440_v20 = vpop.f32.mrb[13].mxu0  ;;  %3463 = vmatmul.mubr.msk.f32.vlgmr.msra.gmra.mrb[8].mxu1 %vm1706_vm4, %v2210_v19  ;;  %v3659_v19 = vpack.c.bf16 %v2803_v17, %v2802_v16 }
 0x4f8   : > { %3471 = vmatpush3.msra.mxu1 %v2363_v18  ;;  %3472 = vmatprep.mubr.msk.f32.mxu1 %vm3860_vm2, %v3861_v32  ;;  %v2804_v18 = vld [vmem:[%s4575_s12 + $0x60] sm:$0xff]  ;;  %v2805_v20 = vld [vmem:[%s4575_s12 + $0x68] sm:$0xff] }
 0x4f9   : > { %3643 = vmatprep.subr.bf16.mxu1 %v3859_v29 }
 0x4fe   : > { %v2283_v21 = vpop.f32.mrb[14].mxu0 }
 0x4ff   : > { %v3447_v22 = vpop.f32.mrb[15].mxu0  ;;  %3468 = vmatmul.mubr.msk.f32.vlgmr.msra.gmra.mrb[18].mxu0 %vm1706_vm4, %v2283_v21  ;;  %v3662_v21 = vpack.c.bf16 %v2805_v20, %v2804_v18 }
 0x500   : > { %3483 = vmatprep.mubr.msk.f32.mxu0 %vm3860_vm2, %v3861_v32  ;;  %3639 = vmatpush3.bf16.msra.mxu0 %v3638_v53  ;;  %v2806_v22 = vld [vmem:[%s4575_s12 + $0x70] sm:$0xff] }
 0x501   : > { %3640 = vmatprep.subr.bf16.mxu0 %v3859_v29 }
 0x502   : > { %v2356_v23 = vpop.f32.mrb[6].mxu1 }
 0x503   : > { %v3454_v24 = vpop.f32.mrb[7].mxu1  ;;  %3473 = vmatmul.mubr.msk.f32.vlgmr.msra.gmra.mrb[10].mxu1 %vm1706_vm4, %v2356_v23  ;;  %v2807_v23 = vld [vmem:[%s4575_s12 + $0x78] sm:$0xff] }
 0x504   : > { %3518 = vmatprep.mubr.msk.f32.mxu1 %vm3860_vm2, %v3861_v32  ;;  %v3130_v32 = vld [vmem:[%s4572_s9] ss:$0 sm:$0xff]  ;;  %3645 = vmatpush3.bf16.msra.mxu1 %v3644_v59  ;;  %v3665_v24 = vpack.c.bf16 %v2807_v23, %v2806_v22 }
 0x505   : > { %3646 = vmatprep.subr.bf16.mxu1 %v3859_v29 }
 0x508   : > { %3648 = vmatpush3.bf16.msra.mxu1 %v3647_v61 }
 0x509   : > { %3649 = vmatprep.subr.bf16.mxu1 %v3859_v29 }
 0x50c   : > { %3651 = vmatpush3.bf16.msra.mxu1 %v3650_v0 }
 0x50d   : > { %3652 = vmatprep.subr.bf16.mxu1 %v3859_v29 }
 0x510   : > { %3654 = vmatpush3.bf16.msra.mxu1 %v3653_v12 }
 0x511   : > { %3655 = vmatprep.subr.bf16.mxu1 %v3859_v29 }
 0x514   : > { %3657 = vmatpush3.bf16.msra.mxu1 %v3656_v15 }
 0x515   : > { %3658 = vmatprep.subr.bf16.mxu1 %v3859_v29 }
 0x518   : > { %3660 = vmatpush3.bf16.msra.mxu1 %v3659_v19 }
 0x519   : > { %3661 = vmatprep.subr.bf16.mxu1 %v3859_v29 }
 0x51c   : > { %3663 = vmatpush3.bf16.msra.mxu1 %v3662_v21 }
 0x51d   : > { %3664 = vmatprep.subr.bf16.mxu1 %v3859_v29  ;;  %v3136_v29 = vld [vmem:[%s4625_s23] ss:$0 sm:$0xff] }
 0x520   : > { %3666 = vmatpush3.bf16.msra.mxu1 %v3665_v24 }
 0x5c2   : > { %v2433_v25 = vpop.f32.mrb[16].mxu0 }
 0x5c3   : > { %v3459_v26 = vpop.f32.mrb[17].mxu0  ;;  %v2656_v28 = vsel %vm1367_vm3, %v2433_v25, 0.0  ;;  %v3133_v25 = vld [vmem:[%s4574_s11] ss:$0 sm:$0xff] }
 0x5ca   : > { %v2506_v27 = vpop.f32.mrb[8].mxu1 }
 0x5cb   : > { %v2657_v30 = vsel %vm1367_vm3, %v2506_v27, 0.0  ;;  %v3464_v31 = vpop.f32.mrb[9].mxu1 }
 0x5cc   : > { %v2658_v33 = vadd.f32 %v2657_v30, %v2656_v28 }
 0x5d2   : > { %v2579_v34 = vpop.f32.mrb[18].mxu0 }
 0x5d3   : > { %v2659_v35 = vsel %vm1367_vm3, %v2579_v34, 0.0  ;;  %v3469_v36 = vpop.f32.mrb[19].mxu0 }
 0x5d4   : > { %v2660_v37 = vadd.f32 %v2659_v35, %v2658_v33 }
 0x5d6   : > { %v2652_v38 = vpop.f32.mrb[10].mxu1 }
 0x5d7   : > { %v2661_v39 = vsel %vm1367_vm3, %v2652_v38, 0.0  ;;  %v3474_v40 = vpop.f32.mrb[11].mxu1 }
 0x5d8   : > { %v2662_v42 = vadd.f32 %v2661_v39, %v2660_v37 }
 0x5da   : > { %v2670_v43 = vadd.f32 %v3130_v32, %v2662_v42 }
 0x5dc   : > { %v2671_v44 = vadd.f32 %v2670_v43, %v4262_v41  ;;  %v2704_v41 = vld [vmem:[%s4573_s10 + $0x10] sm:$0xff] }
 0x5dd   : > { %v3641_v55 = vpack.c.bf16 %v2705_v54, %v2704_v41 }
 0x5de   : > { %v2672_v45 = vsel %vm1367_vm3, %v2671_v44, 0.0 }
 0x5df   : > { %2673 = vadd.xlane.f32.xlu0 %v2672_v45  ;;  %3642 = vmatpush3.bf16.msra.mxu0 %v3641_v55 }
 0x66c   : > { %v2674_v46 = vpop.xlane.xlu0 %2673 }
 0x66d   : > { %v2676_v47 = vmul.f32 0.03125, %v2674_v46 }
 0x66f   : > { %v2677_v48 = vsub.f32 %v2671_v44, %v2676_v47 }
 0x671   : > { %v2678_v49 = vmul.f32 %v2677_v48, %v2677_v48 }
 0x673   : > { %v2679_v50 = vsel %vm1367_vm3, %v2678_v49, 0.0 }
 0x674   : > { %2680 = vadd.xlane.f32.xlu1 %v2679_v50  ;;  %v3137_v50 = vld [vmem:[%s4629_s26] ss:$0 sm:$0xff]  ;;  %s3769_s26 = scalar_lea.vmem %s3768_s20, 256 }
 0x675   : > { %p3771_p6 = scmp.lt.s32.totalorder %s3769_s26, %s3763_s16 }
 0x677   : > { %p3772_p7 = por %p3771_p6, %p3770_p5 }
 0x679   : > { %p3773_p9 = pnand %p3772_p7, %p3766_p4 }
 0x701   : > { %v2681_v1 = vpop.xlane.xlu1 %2680 }
 0x702   : > { %v2682_v2 = vmul.f32 0.03125, %v2681_v1 }
 0x704   : > { %v2683_v3 = vadd.f32 1e-05, %v2682_v2 }
 0x706   : > { %3757 = vrsqrt.f32 %v2683_v3 }
 0x710   : > { %v3758_v4 = vpop.eup %3757 }
 0x711   : > { %v2685_v6 = vmul.f32 %v3758_v4, %v2677_v48 }
 0x713   : > { %v2693_v8 = vmul.f32 %v3131_v5, %v2685_v6 }
 0x715   : > { %v2701_v9 = vadd.f32 %v3132_v7, %v2693_v8 }
 0x717   : > { %3484 = vmatmul.mubr.msk.f32.vlgmr.msra.gmra.mrb[20].mxu0 %vm1367_vm3, %v2701_v9 }
 0x7ea   : > { %v2782_v26 = vpop.f32.mrb[20].mxu0 }
 0x7eb   : > { %v2783_v27 = vadd.f32 %v3133_v25, %v2782_v26  ;;  %v3485_v28 = vpop.f32.mrb[21].mxu0 }
 0x7ed   : > { %v2787_v30 = vmin.f32 %v2783_v27, 0.0  ;;  %vm2786_vm7 = vcmp.gt.f32.partialorder %v2783_v27, 0.0 }
 0x7ef   : > { %v2788_v31 = vmul.f32 1.442695, %v2787_v30 }
 0x7f1   : > { %3759 = vpow2.f32 %v2788_v31 }
 0x7fb   : > { %v3760_v33 = vpop.eup %3759 }
 0x7fc   : > { %v3135_v34 = vadd.f32 -1.0, %v3760_v33 }
 0x7fe   : > { %v2791_v35 = vsel %vm2786_vm7, %v2783_v27, %v3135_v34 }
 0x7ff   : > { %3519 = vmatmul.mubr.f32.vlgmr.msra.gmra.mrb[12].mxu1 %v2791_v35 }
 0x8d2   : > { %v2881_v36 = vpop.f32.mrb[12].mxu1 }
 0x8d3   : > { %v2882_v37 = vadd.f32 %v3136_v29, %v2881_v36  ;;  %v3520_v38 = vpop.f32.mrb[13].mxu1 }
 0x8d5   : > { %v2885_v39 = vadd.f32 %v2882_v37, %v2701_v9 }
 0x8d7   : > { %v2886_v32 = vsel %vm1367_vm3, %v2885_v39, 0.0 }
 0x8d8   : > { %2887 = vadd.xlane.f32.xlu0 %v2886_v32 }
 0x965   : > { %v2888_v40 = vpop.xlane.xlu0 %2887 }
 0x966   : > { %v2889_v42 = vmul.f32 0.03125, %v2888_v40 }
 0x968   : > { %v2890_v43 = vsub.f32 %v2885_v39, %v2889_v42 }
 0x96a   : > { %v2891_v44 = vmul.f32 %v2890_v43, %v2890_v43 }
 0x96c   : > { %v2892_v45 = vsel %vm1367_vm3, %v2891_v44, 0.0 }
 0x96d   : > { %2893 = vadd.xlane.f32.xlu1 %v2892_v45 }
 0x9fa   : > { %v2894_v46 = vpop.xlane.xlu1 %2893 }
 0x9fb   : > { %v2895_v47 = vmul.f32 0.03125, %v2894_v46 }
 0x9fd   : > { %v2896_v48 = vadd.f32 1e-05, %v2895_v47 }
 0x9ff   : > { %3761 = vrsqrt.f32 %v2896_v48 }
 0xa09   : > { %v3762_v49 = vpop.eup %3761 }
 0xa0a   : > { %v2898_v51 = vmul.f32 %v3762_v49, %v2890_v43 }
 0xa0c   : > { %v2906_v53 = vmul.f32 %v3137_v50, %v2898_v51 }
 0xa0e   : > { %v2914_v41 = vadd.f32 %v3138_v52, %v2906_v53 }
 0xa10   : > { %2915 = vst.msk [vmem:[%s605_s22] sm:$0xff] %vm1367_vm3, %v2914_v41 }
 0xa11   : > { %3776 = shalt.err (!%p3773_p9)
}
 0xa12   : > { %s3777_s19 = scalar_lea.hbm %s4505_s2, 128  ;;  %s3781_s28 = scalar_lea.hbm %s4631_s13, 512 }
 0xa13   : > { %p3778_p10 = scmp.ne.s32.totalorder %s4505_s2, %s3777_s19  ;;  %p3782_p13 = scmp.lt.u32.totalorder %s4505_s2, %s4631_s13 }
 0xa14   : > { %p3783_p0 = scmp.lt.u32.totalorder %s3781_s28, %s3777_s19  ;;  %p3785_p2 = scmp.lt.u32.totalorder %s3777_s19, %s4505_s2 }
 0xa15   : > { %p3779_p11 = pnand %p3778_p10, %p4009_p3 }
 0xa16   : > { %p3784_p1 = por %p3783_p0, %p3782_p13 }
 0xa17   : > { %p3780_p12 = pneg %p3779_p11 }
 0xa18   : > { %p3786_p4 = por %p3785_p2, %p3784_p1 }
 0xa1a   : > { %p3787_p5 = pnand %p3786_p4, %p3780_p12 }
 0xa1c   : > { %3790 = shalt.err (!%p3787_p5)
}
 0xa1d   : > { %3667 = dma.vmem_to_hbm [thread:$0]  (%p4009_p3), %s4507_s17, 128, %s4505_s2, %s2917_s29  }
 0xa1e PF: > { %s4633_s21 = sld [smem:[#allocation13_spill]]  ;;  %s4634_s18 = sld [smem:[#allocation7_spill]] }
 0xa24   : > { %p3673_p6 = scmp.ge.s32.totalorder %s4633_s21, 2  ;;  %s2944_s30 = sand.u32 1, %s4634_s18  }
 0xa25   : > { %s2945_s16 = scalar_lea.sflag [#allocation5], %s2944_s30 }
 0xa26   : > { %p3670_p7 = pnand %p3673_p6, %p4018_p8 }
 0xa28   : > { %3824 = dma.done.wait (!%p3670_p7), %s2945_s16, 128  }
 0xa29   : > { %3826 = vsyncadd (!%p3670_p7), %s2945_s16, 4294967168  ;;  %s31_s20 = sadd.s32 1, %s4633_s21   ;;  %s4636_s27 = sld [smem:[#allocation8_spill]] }
 0xa2a   : > { %p28_p9 = scmp.ge.s32.totalorder %s31_s20, 6   ;;  %s4637_s28 = sld [smem:[#allocation9_spill]] }
 0xa2b   : > { %s4638_s29 = sld [smem:[#allocation18_spill]]  ;;  %s4639_s30 = sld [smem:[#allocation11_spill]] }
 0xa2c   : > { %s4640_s0 = sld [smem:[#allocation12_spill]]  ;;  %s4641_s19 = sld [smem:[#allocation14_spill]] }
 0xa2d   : > { %s4642_s1 = sld [smem:[#allocation16_spill]]  ;;  %30 = sbr.rel (!%p28_p9) target bundleno = 13 (0xd), region = 158 }
 0xa34   :  { %2950 = vsyncpa [#allocation5], 1 }
 0xa35   :  { %2952 = vsyncpa [#allocation5 + $0x1], 1 }

// kernel: tpu_custom_call.1
= control target key start
LH: loop header
LB: loop body
LE: loop exit
PB: predicated region body
PF: predicated region fallthrough
CT: control target
= control target key end

     0   :  { %s4563_s0 = inlined_call_operand.vmem [shape: f32[2,16,32], index: 0, kind: input, shape index: {}]   ;;  %s4564_s1 = inlined_call_operand.vmem [shape: f32[2,16,32], index: 1, kind: input, shape index: {}]   ;;  %s4565_s2 = inlined_call_operand.vmem [shape: f32[4,32,8], index: 2, kind: input, shape index: {}]   ;;  %s4566_s3 = inlined_call_operand.vmem [shape: f32[4,32,8], index: 3, kind: input, shape index: {}]   ;;  %s4567_s4 = inlined_call_operand.vmem [shape: f32[4,32,8], index: 4, kind: input, shape index: {}]   ;;  %s4568_s5 = inlined_call_operand.vmem [shape: f32[4,1,8], index: 5, kind: input, shape index: {}]   ;;  %s4569_s6 = inlined_call_operand.vmem [shape: f32[4,1,8], index: 6, kind: input, shape index: {}]   ;;  %s4570_s7 = inlined_call_operand.vmem [shape: f32[4,1,8], index: 7, kind: input, shape index: {}]   ;;  %s4571_s8 = inlined_call_operand.vmem [shape: f32[4,8,32], index: 8, kind: input, shape index: {}]   ;;  %s4572_s9 = inlined_call_operand.vmem [shape: f32[1,32], index: 9, kind: input, shape index: {}]   ;;  %s4573_s10 = inlined_call_operand.vmem [shape: f32[32,128], index: 10, kind: input, shape index: {}]   ;;  %s4574_s11 = inlined_call_operand.vmem [shape: f32[1,128], index: 11, kind: input, shape index: {}]   ;;  %s4575_s12 = inlined_call_operand.vmem [shape: f32[128,32], index: 12, kind: input, shape index: {}]   ;;  %s4576_s13 = inlined_call_operand.vmem [shape: f32[1,32], index: 13, kind: input, shape index: {}]   ;;  %s4577_s14 = inlined_call_operand.vmem [shape: f32[1,32], index: 14, kind: input, shape index: {}]   ;;  %s4578_s15 = inlined_call_operand.vmem [shape: f32[1,32], index: 15, kind: input, shape index: {}]   ;;  %s4579_s16 = inlined_call_operand.vmem [shape: f32[1,32], index: 16, kind: input, shape index: {}]   ;;  %s4580_s17 = inlined_call_operand.vmem [shape: f32[1,32], index: 17, kind: input, shape index: {}]   ;;  %s4581_s18 = inlined_call_operand.hbm [shape: f32[2,16,32], index: 18, kind: output, shape index: {}]  }
   0x1   :  { %4599 = sst [smem:[#allocation19_spill]] %s4563_s0 }
   0x2   :  { %4600 = sst [smem:[#allocation20_spill]] %s4564_s1 }
   0x3   :  { %4601 = sst [smem:[#allocation21_spill]] %s4565_s2 }
   0x4   :  { %4602 = sst [smem:[#allocation22_spill]] %s4576_s13 }
   0x5   :  { %4603 = sst [smem:[#allocation23_spill]] %s4579_s16 }
   0x6   :  { %4604 = sst [smem:[#allocation24_spill]] %s4580_s17 }
   0x7   :  { %4605 = sst [smem:[#allocation25_spill]] %s4581_s18 }
   0x8   :  { %23 = vsyncpa [#allocation5], 0 }
   0x9   :  { %25 = vsyncpa [#allocation5 + $0x1], 0  ;;  %s3958_s27 = smov 0   ;;  %s3960_s28 = smov 0  }
   0xa   :  { %s3962_s29 = smov 0   ;;  %s3964_s30 = smov 0  }
   0xb   :  { %s3966_s0 = smov 0   ;;  %s3968_s19 = smov 0  }
   0xc   :  { %s3970_s1 = smov 0   ;;  %s3972_s20 = smov 0  }
   0xd LB: > { %4606 = sst [smem:[#allocation7_spill]] %s3829_s27  ;;  %s3022_s21 = sadd.s32 4294967295, %s3857_s20   ;;  %s3857_s20 = sphi %s3972_s20, %s31_s20   ;;  %s3853_s1 = sphi %s3970_s1, %s4642_s1   ;;  %s3849_s19 = sphi %s3968_s19, %s4641_s19   ;;  %s3845_s0 = sphi %s3966_s0, %s4640_s0   ;;  %s3841_s30 = sphi %s3964_s30, %s4639_s30   ;;  %s3837_s29 = sphi %s3962_s29, %s4638_s29   ;;  %s3833_s28 = sphi %s3960_s28, %s4637_s28   ;;  %s3829_s27 = sphi %s3958_s27, %s4636_s27  }
   0xe   : > { %4607 = sst [smem:[#allocation8_spill]] %s3833_s28  ;;  %s3023_s22 = sadd.s32 4294967294, %s3857_s20  }
   0xf   : > { %4608 = sst [smem:[#allocation9_spill]] %s3837_s29  ;;  %s40_s2 = sadd.s32 1, %s3849_s19 }
  0x10   : > { %4609 = sst [smem:[#allocation10_spill]] %s3845_s0  ;;  %p41_p0 = scmp.ge.s32.totalorder %s40_s2, 2 }
  0x11   : > { %4610 = sst [smem:[#allocation11_spill]] %s3849_s19  ;;  %s43_s23 = sadd.s32 1, %s3853_s1 }
  0x12   : > { %4611 = sst [smem:[#allocation12_spill]] %s3853_s1  ;;  %p452_p1 = scmp.ne.s32.totalorder %s3837_s29, %s3833_s28 }
  0x13   : > { %4612 = sst [smem:[#allocation13_spill]] %s3857_s20  ;;  %p453_p2 = scmp.eq.s32.totalorder %s3022_s21, 3 }
  0x14   : > { %s4644_s2 = smov (%p41_p0, %s40_s2), 0  ;;  %s4646_s23 = smov (!%p41_p0, %s43_s23), %s3853_s1 }
  0x15   : > { %4613 = sst [smem:[#allocation14_spill]] %s4644_s2  ;;  %s438_s24 = ssub.s32 %s3849_s19, %s4644_s2 }
  0x16   : > { %p4009_p3 = por %p453_p2, %p452_p1  ;;  %p45_p4 = scmp.ge.s32.totalorder %s4646_s23, 2 }
  0x17   : > { %p458_p5 = scmp.ne.s32.totalorder %s3833_s28, %s3829_s27  ;;  %p459_p6 = scmp.eq.s32.totalorder %s3023_s22, 3 }
  0x18   : > { %s4614_s25 = scalar_select %p4009_p3, 1, 0 }
  0x19   : > { %p3026_p7 = scmp.ge.s32.totalorder %s3857_s20, 1  ;;  %s4648_s23 = smov (%p45_p4, %s4646_s23), 0 }
  0x1a   : > { %4615 = sst [smem:[#allocation15_spill]] %s4614_s25  ;;  %p4018_p8 = por %p459_p6, %p458_p5 }
  0x1b   : > { %4616 = sst [smem:[#allocation16_spill]] %s4648_s23  ;;  %p544_p9 = scmp.lt.s32.totalorder %s3857_s20, 5 }
  0x1c   : > { %s4617_s26 = scalar_select %p4018_p8, 1, 0 }
  0x1d   : > { %s437_s21 = ssub.s32 %s3853_s1, %s4648_s23  ;;  %s442_s18 = sadd.s32 1, %s3837_s29 }
  0x1e   : > { %4618 = sst [smem:[#allocation17_spill]] %s4617_s26  ;;  %s439_s17 = sor.u32 %s438_s24, %s437_s21 }
  0x1f   : > { %p545_p10 = pnand %p3026_p7, %p544_p9  ;;  %p440_p11 = scmp.eq.s32.totalorder %s439_s17, 0 }
  0x20   : > { %s4595_s22 = sand.u32 (!%p545_p10), 1, %s3833_s28   ;;  %p606_p12 = scmp.lt.s32.totalorder (!%p545_p10), %s3845_s0, 1 }
  0x21   : > { %s4027_s2 = scalar_select %p440_p11, %s3837_s29, %s442_s18  }
  0x22   : > { %548 = sbr.rel (%p545_p10) target bundleno = 2590 (0xa1e), region = 92  ;;  %s4033_s19 = sshll.u32 (!%p545_p10), %s4595_s22, 3 }
  0x23   : > { %4619 = sst [smem:[#allocation18_spill]] %s4027_s2  ;;  %p608_p13 = scmp.lt.s32.totalorder (!%p545_p10), %s3841_s30, 1 }
  0x24   : > { %s4620_s29 = sld [smem:[#allocation20_spill]] (!%p545_p10)  ;;  %s4621_s25 = sld [smem:[#allocation19_spill]] (!%p545_p10) }
  0x25   : > { %s605_s22 = scalar_lea.vmem (!%p545_p10), [#allocation4], %s4033_s19  ;;  %p3032_p0 = scmp.ne.s32.totalorder (!%p545_p10), %s3841_s30, 0 }
  0x29   : > { %s607_s23 = scalar_select %p606_p12, %s3845_s0, 1 }
  0x2a   : > { %s609_s24 = scalar_select %p608_p13, %s3841_s30, 1 }
  0x2b   : > { %s3028_s21 = sshll.u32 %s607_s23, 1  ;;  %s3144_s17 = sshll.u32 %s607_s23, 4  ;;  %v625_v0 = vld [vmem:[%s4566_s3] sm:$0xff] (!%p3032_p0)  ;;  %v626_v1 = vld [vmem:[%s4566_s3 + $0x8] sm:$0xff] (!%p3032_p0)  ;;  %vm636_vm0 = vcmask (!%p3032_p0), 261120   ;;  %v627_v5 = vld [vmem:[%s4566_s3 + $0x10] sm:$0xff] (!%p3032_p0) }
  0x2c   : > { %s611_s18 = sadd.s32 %s3028_s21, %s609_s24  ;;  %s4041_s26 = scalar_lea.vmem %s4620_s29, %s3144_s17  ;;  %v718_v2 = vld [vmem:[%s4567_s4] sm:$0xff] (!%p3032_p0)  ;;  %v3521_v3 = vpack.c.bf16 (!%p3032_p0), %v626_v1, %v625_v0  ;;  %v719_v4 = vld [vmem:[%s4567_s4 + $0x8] sm:$0xff] (!%p3032_p0)  ;;  %v628_v6 = vld [vmem:[%s4566_s3 + $0x18] sm:$0xff] (!%p3032_p0)  ;;  %vm804_vm1 = vcmask (!%p3032_p0), 64512  }
  0x2d   : > { %s3029_s27 = sshll.u32 %s611_s18, 3  ;;  %622 = sbr.rel (%p3032_p0) target bundleno = 295 (0x127), region = 96  ;;  %v3529_v7 = vpack.c.bf16 (!%p3032_p0), %v719_v4, %v718_v2  ;;  %v3525_v8 = vpack.c.bf16 (!%p3032_p0), %v628_v6, %v627_v5  ;;  %v720_v9 = vld [vmem:[%s4567_s4 + $0x10] sm:$0xff] (!%p3032_p0)  ;;  %v721_v10 = vld [vmem:[%s4567_s4 + $0x18] sm:$0xff] (!%p3032_p0)  ;;  %v4075_v11 = vld [vmem:[%s4041_s26] sm:$0xff] (!%p3032_p0) }
  0x2e   : > { %s4046_s13 = scalar_lea.vmem %s4621_s25, %s3029_s27  ;;  %3522 = vmatprep.subr.bf16.mxu0 (!%p3032_p0), %v3521_v3  ;;  %v3533_v12 = vpack.c.bf16 (!%p3032_p0), %v721_v10, %v720_v9  ;;  %3275 = vmatprep.mubr.msk.f32.mxu0 (!%p3032_p0), %vm636_vm0, %v4075_v11  ;;  %v3039_v13 = vld [vmem:[%s4566_s3 + $0x20] sm:$0xff] (!%p3032_p0)  ;;  %v3040_v14 = vld [vmem:[%s4566_s3 + $0x28] sm:$0xff] (!%p3032_p0)  ;;  %v3041_v19 = vld [vmem:[%s4566_s3 + $0x30] sm:$0xff] (!%p3032_p0) }
  0x2f   : > { %3530 = vmatprep.subr.bf16.mxu1 (!%p3032_p0), %v3529_v7  ;;  %3524 = vmatpush3.bf16.msra.mxu0 (!%p3032_p0), %v3521_v3  ;;  %v3047_v15 = vld [vmem:[%s4567_s4 + $0x20] sm:$0xff] (!%p3032_p0)  ;;  %v3048_v16 = vld [vmem:[%s4567_s4 + $0x28] sm:$0xff] (!%p3032_p0)  ;;  %v3537_v17 = vpack.c.bf16 (!%p3032_p0), %v3040_v14, %v3039_v13  ;;  %v3042_v20 = vld [vmem:[%s4566_s3 + $0x38] sm:$0xff] (!%p3032_p0) }
  0x30   : > { %3532 = vmatpush3.bf16.msra.mxu1 (!%p3032_p0), %v3529_v7  ;;  %3526 = vmatprep.subr.bf16.mxu0 (!%p3032_p0), %v3525_v8  ;;  %v3545_v18 = vpack.c.bf16 (!%p3032_p0), %v3048_v16, %v3047_v15  ;;  %v3049_v21 = vld [vmem:[%s4567_s4 + $0x30] sm:$0xff] (!%p3032_p0)  ;;  %v3050_v22 = vld [vmem:[%s4567_s4 + $0x38] sm:$0xff] (!%p3032_p0)  ;;  %v4106_v23 = vld [vmem:[%s4041_s26 + $0x8] sm:$0xff] (!%p3032_p0)  ;;  %v3541_v24 = vpack.c.bf16 (!%p3032_p0), %v3042_v20, %v3041_v19 }
  0x31   : > { %3534 = vmatprep.subr.bf16.mxu1 (!%p3032_p0), %v3533_v12  ;;  %3286 = vmatprep.mubr.msk.f32.mxu1 (!%p3032_p0), %vm636_vm0, %v4075_v11  ;;  %v3549_v25 = vpack.c.bf16 (!%p3032_p0), %v3050_v22, %v3049_v21  ;;  %v3055_v26 = vld [vmem:[%s4566_s3 + $0x40] sm:$0xff] (!%p3032_p0)  ;;  %v3056_v27 = vld [vmem:[%s4566_s3 + $0x48] sm:$0xff] (!%p3032_p0)  ;;  %v3057_v32 = vld [vmem:[%s4566_s3 + $0x50] sm:$0xff] (!%p3032_p0) }
  0x32   : > { %v3063_v28 = vld [vmem:[%s4567_s4 + $0x40] sm:$0xff] (!%p3032_p0)  ;;  %v3064_v29 = vld [vmem:[%s4567_s4 + $0x48] sm:$0xff] (!%p3032_p0)  ;;  %v3553_v30 = vpack.c.bf16 (!%p3032_p0), %v3056_v27, %v3055_v26  ;;  %v3058_v33 = vld [vmem:[%s4566_s3 + $0x58] sm:$0xff] (!%p3032_p0) }
  0x33   : > { %3528 = vmatpush3.bf16.msra.mxu0 (!%p3032_p0), %v3525_v8  ;;  %v3561_v31 = vpack.c.bf16 (!%p3032_p0), %v3064_v29, %v3063_v28  ;;  %v3065_v34 = vld [vmem:[%s4567_s4 + $0x50] sm:$0xff] (!%p3032_p0)  ;;  %v3066_v35 = vld [vmem:[%s4567_s4 + $0x58] sm:$0xff] (!%p3032_p0)  ;;  %v3557_v36 = vpack.c.bf16 (!%p3032_p0), %v3058_v33, %v3057_v32  ;;  %v3071_v38 = vld [vmem:[%s4566_s3 + $0x60] sm:$0xff] (!%p3032_p0) }
  0x34   : > { %3536 = vmatpush3.bf16.msra.mxu1 %v3533_v12  ;;  %3538 = vmatprep.subr.bf16.mxu0 %v3537_v17  ;;  %v3565_v37 = vpack.c.bf16 %v3066_v35, %v3065_v34  ;;  %v3072_v39 = vld [vmem:[%s4566_s3 + $0x68] sm:$0xff]  ;;  %v3079_v40 = vld [vmem:[%s4567_s4 + $0x60] sm:$0xff]  ;;  %v3073_v44 = vld [vmem:[%s4566_s3 + $0x70] sm:$0xff] }
  0x35   : > { %3546 = vmatprep.subr.bf16.mxu1 %v3545_v18  ;;  %v3080_v41 = vld [vmem:[%s4567_s4 + $0x68] sm:$0xff]  ;;  %v3569_v42 = vpack.c.bf16 %v3072_v39, %v3071_v38  ;;  %v3074_v45 = vld [vmem:[%s4566_s3 + $0x78] sm:$0xff]  ;;  %v3081_v46 = vld [vmem:[%s4567_s4 + $0x70] sm:$0xff] }
  0x36   : > { %3276 = vmatmul.mubr.msk.f32.vlgmr.msra.gmra.mrb[0].mxu0 %vm636_vm0, %v4106_v23  ;;  %v3577_v43 = vpack.c.bf16 %v3080_v41, %v3079_v40  ;;  %v3082_v47 = vld [vmem:[%s4567_s4 + $0x78] sm:$0xff]  ;;  %v3573_v48 = vpack.c.bf16 %v3074_v45, %v3073_v44  ;;  %v3033_v50 = vld [vmem:[%s4569_s6] ss:$0 sm:$0xff]  ;;  %v3044_v60 = vld [vmem:[%s4569_s6 + $0x1] ss:$0 sm:$0xff] }
  0x37   : > { %3287 = vmatmul.mubr.msk.f32.vlgmr.msra.gmra.mrb[0].mxu1 %vm636_vm0, %v4106_v23  ;;  %3540 = vmatpush3.bf16.msra.mxu0 %v3537_v17  ;;  %v3581_v49 = vpack.c.bf16 %v3082_v47, %v3081_v46  ;;  %v3036_v51 = vld [vmem:[%s4570_s7] ss:$0 sm:$0xff]  ;;  %v3052_v61 = vld [vmem:[%s4570_s7 + $0x1] ss:$0 sm:$0xff]  ;;  %v3060_v6 = vld [vmem:[%s4569_s6 + $0x2] ss:$0 sm:$0xff] }
  0x38   : > { %3548 = vmatpush3.bf16.msra.mxu1 %v3545_v18  ;;  %3542 = vmatprep.subr.bf16.mxu0 %v3541_v24  ;;  %v3068_v7 = vld [vmem:[%s4570_s7 + $0x2] ss:$0 sm:$0xff]  ;;  %v3076_v16 = vld [vmem:[%s4569_s6 + $0x3] ss:$0 sm:$0xff] }
  0x39   : > { %3550 = vmatprep.subr.bf16.mxu1 %v3549_v25  ;;  %3297 = vmatprep.mubr.msk.f32.mxu0 %vm636_vm0, %v4075_v11  ;;  %v3084_v17 = vld [vmem:[%s4570_s7 + $0x3] ss:$0 sm:$0xff] }
  0x3a   : > { %3308 = vmatprep.mubr.msk.f32.mxu1 %vm636_vm0, %v4075_v11 }
  0x3b   : > { %3544 = vmatpush3.bf16.msra.mxu0 %v3541_v24 }
  0x3c   : > { %3552 = vmatpush3.bf16.msra.mxu1 %v3549_v25  ;;  %3554 = vmatprep.subr.bf16.mxu0 %v3553_v30 }
  0x3d   : > { %3562 = vmatprep.subr.bf16.mxu1 %v3561_v31 }
  0x3e   : > { %3298 = vmatmul.mubr.msk.f32.vlgmr.msra.gmra.mrb[2].mxu0 %vm636_vm0, %v4106_v23 }
  0x3f   : > { %3309 = vmatmul.mubr.msk.f32.vlgmr.msra.gmra.mrb[2].mxu1 %vm636_vm0, %v4106_v23  ;;  %3556 = vmatpush3.bf16.msra.mxu0 %v3553_v30 }
  0x40   : > { %3564 = vmatpush3.bf16.msra.mxu1 %v3561_v31  ;;  %3558 = vmatprep.subr.bf16.mxu0 %v3557_v36 }
  0x41   : > { %3566 = vmatprep.subr.bf16.mxu1 %v3565_v37  ;;  %3319 = vmatprep.mubr.msk.f32.mxu0 %vm636_vm0, %v4075_v11 }
  0x42   : > { %3330 = vmatprep.mubr.msk.f32.mxu1 %vm636_vm0, %v4075_v11 }
  0x43   : > { %3560 = vmatpush3.bf16.msra.mxu0 %v3557_v36 }
  0x44   : > { %3568 = vmatpush3.bf16.msra.mxu1 %v3565_v37  ;;  %3570 = vmatprep.subr.bf16.mxu0 %v3569_v42 }
  0x45   : > { %3578 = vmatprep.subr.bf16.mxu1 %v3577_v43 }
  0x46   : > { %3320 = vmatmul.mubr.msk.f32.vlgmr.msra.gmra.mrb[4].mxu0 %vm636_vm0, %v4106_v23 }
  0x47   : > { %3331 = vmatmul.mubr.msk.f32.vlgmr.msra.gmra.mrb[4].mxu1 %vm636_vm0, %v4106_v23  ;;  %3572 = vmatpush3.bf16.msra.mxu0 %v3569_v42 }
  0x48   : > { %3580 = vmatpush3.bf16.msra.mxu1 %v3577_v43  ;;  %3574 = vmatprep.subr.bf16.mxu0 %v3573_v48 }
  0x49   : > { %3582 = vmatprep.subr.bf16.mxu1 %v3581_v49  ;;  %3341 = vmatprep.mubr.msk.f32.mxu0 %vm636_vm0, %v4075_v11 }
  0x4a   : > { %3352 = vmatprep.mubr.msk.f32.mxu1 %vm636_vm0, %v4075_v11 }
  0x4b   : > { %3576 = vmatpush3.bf16.msra.mxu0 %v3573_v48 }
  0x4c   : > { %3584 = vmatpush3.bf16.msra.mxu1 %v3581_v49 }
  0x4e   : > { %3342 = vmatmul.mubr.msk.f32.vlgmr.msra.gmra.mrb[6].mxu0 %vm636_vm0, %v4106_v23 }
  0x4f   : > { %3353 = vmatmul.mubr.msk.f32.vlgmr.msra.gmra.mrb[6].mxu1 %vm636_vm0, %v4106_v23 }
 0x109   : > { %v3277_v52 = vpop.f32.mrb[0].mxu0 }
 0x10a   : > { %v715_v53 = vadd.f32 %v3277_v52, %v3033_v50  ;;  %v3288_v54 = vpop.f32.mrb[0].mxu1  ;;  %v709_v55 = vpop.f32.mrb[1].mxu0 }
 0x10b   : > { %v801_v56 = vadd.f32 %v3288_v54, %v3036_v51  ;;  %v710_v57 = vadd.f32 %v3033_v50, %v709_v55  ;;  %v795_v58 = vpop.f32.mrb[1].mxu1 }
 0x10c   : > { %806 = vst.msk [vmem:[#allocation2 + $0x8] sm:$0xff] %vm804_vm1, %v715_v53  ;;  %v796_v59 = vadd.f32 %v3036_v51, %v795_v58 }
 0x10d   : > { %808 = vst.msk [vmem:[#allocation3 + $0x8] sm:$0xff] %vm804_vm1, %v801_v56  ;;  %805 = vst.msk [vmem:[#allocation2] sm:$0xff] %vm804_vm1, %v710_v57 }
 0x10e   : > { %807 = vst.msk [vmem:[#allocation3] sm:$0xff] %vm804_vm1, %v796_v59 }
 0x111   : > { %v3299_v62 = vpop.f32.mrb[2].mxu0 }
 0x112   : > { %v894_v63 = vadd.f32 %v3299_v62, %v3044_v60  ;;  %v3310_v0 = vpop.f32.mrb[2].mxu1  ;;  %v888_v1 = vpop.f32.mrb[3].mxu0 }
 0x113   : > { %v982_v2 = vadd.f32 %v3310_v0, %v3052_v61  ;;  %v889_v3 = vadd.f32 %v3044_v60, %v888_v1  ;;  %v976_v4 = vpop.f32.mrb[3].mxu1 }
 0x114   : > { %987 = vst.msk [vmem:[#allocation2 + $0x18] sm:$0xff] %vm804_vm1, %v894_v63  ;;  %v977_v5 = vadd.f32 %v3052_v61, %v976_v4 }
 0x115   : > { %990 = vst.msk [vmem:[#allocation3 + $0x18] sm:$0xff] %vm804_vm1, %v982_v2  ;;  %986 = vst.msk [vmem:[#allocation2 + $0x10] sm:$0xff] %vm804_vm1, %v889_v3 }
 0x116   : > { %989 = vst.msk [vmem:[#allocation3 + $0x10] sm:$0xff] %vm804_vm1, %v977_v5 }
 0x119   : > { %v3321_v8 = vpop.f32.mrb[4].mxu0 }
 0x11a   : > { %v1076_v9 = vadd.f32 %v3321_v8, %v3060_v6  ;;  %v3332_v10 = vpop.f32.mrb[4].mxu1  ;;  %v1070_v11 = vpop.f32.mrb[5].mxu0 }
 0x11b   : > { %v1164_v12 = vadd.f32 %v3332_v10, %v3068_v7  ;;  %v1071_v13 = vadd.f32 %v3060_v6, %v1070_v11  ;;  %v1158_v14 = vpop.f32.mrb[5].mxu1 }
 0x11c   : > { %1169 = vst.msk [vmem:[#allocation2 + $0x28] sm:$0xff] %vm804_vm1, %v1076_v9  ;;  %v1159_v15 = vadd.f32 %v3068_v7, %v1158_v14 }
 0x11d   : > { %1172 = vst.msk [vmem:[#allocation3 + $0x28] sm:$0xff] %vm804_vm1, %v1164_v12  ;;  %1168 = vst.msk [vmem:[#allocation2 + $0x20] sm:$0xff] %vm804_vm1, %v1071_v13 }
 0x11e   : > { %1171 = vst.msk [vmem:[#allocation3 + $0x20] sm:$0xff] %vm804_vm1, %v1159_v15 }
 0x121   : > { %v3343_v18 = vpop.f32.mrb[6].mxu0 }
 0x122   : > { %v1258_v19 = vadd.f32 %v3343_v18, %v3076_v16  ;;  %v3354_v20 = vpop.f32.mrb[6].mxu1  ;;  %v1252_v21 = vpop.f32.mrb[7].mxu0 }
 0x123   : > { %v1346_v22 = vadd.f32 %v3354_v20, %v3084_v17  ;;  %v1253_v23 = vadd.f32 %v3076_v16, %v1252_v21  ;;  %v1340_v24 = vpop.f32.mrb[7].mxu1 }
 0x124   : > { %1351 = vst.msk [vmem:[#allocation2 + $0x38] sm:$0xff] %vm804_vm1, %v1258_v19  ;;  %v1341_v25 = vadd.f32 %v3084_v17, %v1340_v24 }
 0x125   : > { %1354 = vst.msk [vmem:[#allocation3 + $0x38] sm:$0xff] %vm804_vm1, %v1346_v22  ;;  %1350 = vst.msk [vmem:[#allocation2 + $0x30] sm:$0xff] %vm804_vm1, %v1253_v23 }
 0x126   : > { %1353 = vst.msk [vmem:[#allocation3 + $0x30] sm:$0xff] %vm804_vm1, %v1341_v25 }
 0x127 PF: > { %s4622_s2 = sld [smem:[#allocation21_spill]]  ;;  %v3859_v29 = vmov 0.0|0.0   ;;  %vm3860_vm2 = vmmov 0   ;;  %v3861_v32 = vmov 0.0   ;;  %v4262_v41 = vld [vmem:[%s4046_s13] sm:$0xff]  ;;  %vm1367_vm3 = vcmask 261120  }
 0x128   : > { %3585 = vmatprep.subr.bf16.mxu0 %v3859_v29  ;;  %3363 = vmatprep.mubr.msk.f32.mxu0 %vm3860_vm2, %v3861_v32  ;;  %v1690_v53 = vld [vmem:[#allocation2] sm:$0xff]  ;;  %v1691_v54 = vld [vmem:[#allocation2 + $0x8] sm:$0xff]  ;;  %vm1706_vm4 = vcmask 64512   ;;  %v1692_v57 = vld [vmem:[#allocation2 + $0x10] sm:$0xff]  ;;  %vm2023_vm6 = vcmask 130048   ;;  %s4625_s23 = sld [smem:[#allocation22_spill]] }
 0x129   : > { %3603 = vmatprep.subr.bf16.mxu1 %v3859_v29  ;;  %3396 = vmatprep.mubr.msk.f32.mxu1 %vm3860_vm2, %v3861_v32  ;;  %v3610_v55 = vpack.c.bf16 %v1691_v54, %v1690_v53  ;;  %vm4307_vm5 = vmpackc.low %vm1706_vm4, %vm1706_vm4  ;;  %v1693_v58 = vld [vmem:[#allocation2 + $0x18] sm:$0xff]  ;;  %v1694_v60 = vld [vmem:[#allocation2 + $0x20] sm:$0xff]  ;;  %s4626_s13 = sld [smem:[#allocation10_spill]]  ;;  %s4629_s26 = sld [smem:[#allocation23_spill]] }
 0x12a   : > { %v3614_v59 = vpack.c.bf16 %v1693_v58, %v1692_v57  ;;  %v1695_v61 = vld [vmem:[#allocation2 + $0x28] sm:$0xff]  ;;  %v3087_v62 = vld [vmem:[%s4568_s5] ss:$0 sm:$0xff]  ;;  %v3094_v6 = vld [vmem:[%s4568_s5 + $0x1] ss:$0 sm:$0xff]  ;;  %s4627_s24 = sld [smem:[#allocation8_spill]] }
 0x12b   : > { %v3618_v0 = vpack.c.bf16 %v1695_v61, %v1694_v60  ;;  %v1697_v4 = vld [vmem:[#allocation2 + $0x38] sm:$0xff]  ;;  %v3108_v12 = vld [vmem:[%s4568_s5 + $0x3] ss:$0 sm:$0xff]  ;;  %v3101_v13 = vld [vmem:[%s4568_s5 + $0x2] ss:$0 sm:$0xff]  ;;  %s4630_s25 = sld [smem:[#allocation24_spill]] }
 0x12c   : > { %v1696_v3 = vld [vmem:[#allocation2 + $0x30] sm:$0xff]  ;;  %v1698_v53 = vld [vmem:[#allocation3] sm:$0xff]  ;;  %v1699_v54 = vld [vmem:[#allocation3 + $0x8] sm:$0xff]  ;;  %s2932_s17 = sshll.u32 %s605_s22, 4  ;;  %s3862_s27 = smov [#allocation4]   ;;  %s4507_s17 = int_to_ptr.vmem [resolvable:$true] %s2932_s17 }
 0x12d   : > { %v1356_v26 = vld [vmem:[%s4622_s2] sm:$0xff]  ;;  %v1357_v27 = vld [vmem:[%s4622_s2 + $0x8] sm:$0xff]  ;;  %v1358_v28 = vld [vmem:[%s4622_s2 + $0x10] sm:$0xff]  ;;  %v3622_v9 = vpack.c.bf16 %v1697_v4, %v1696_v3  ;;  %s3767_s20 = sshll.u32 %s3862_s27, 4  ;;  %s3768_s20 = int_to_ptr.vmem [resolvable:$false] %s3767_s20 }
 0x12e   : > { %v3586_v30 = vpack.c.bf16 %v1357_v27, %v1356_v26  ;;  %v1359_v31 = vld [vmem:[%s4622_s2 + $0x18] sm:$0xff]  ;;  %v3103_v34 = vld [vmem:[%s4622_s2 + $0x60] sm:$0xff]  ;;  %v3090_v36 = vld [vmem:[%s4622_s2 + $0x28] sm:$0xff]  ;;  %p3770_p5 = scmp.lt.s32.totalorder %s4507_s17, %s3768_s20 }
 0x12f   : > { %v3589_v33 = vpack.c.bf16 %v1359_v31, %v1358_v28  ;;  %v3089_v35 = vld [vmem:[%s4622_s2 + $0x20] sm:$0xff]  ;;  %v3104_v37 = vld [vmem:[%s4622_s2 + $0x68] sm:$0xff]  ;;  %v3105_v39 = vld [vmem:[%s4622_s2 + $0x70] sm:$0xff]  ;;  %s3140_s29 = sshll.u32 %s4626_s13, 1  ;;  %s4631_s13 = sld [smem:[#allocation25_spill]] }
 0x130   : > { %3587 = vmatpush3.bf16.msra.mxu0 %v3586_v30  ;;  %v3604_v38 = vpack.c.bf16 %v3104_v37, %v3103_v34  ;;  %v3106_v40 = vld [vmem:[%s4622_s2 + $0x78] sm:$0xff]  ;;  %v3592_v42 = vpack.c.bf16 %v3090_v36, %v3089_v35  ;;  %v3091_v43 = vld [vmem:[%s4622_s2 + $0x30] sm:$0xff]  ;;  %v3096_v47 = vld [vmem:[%s4622_s2 + $0x40] sm:$0xff]  ;;  %s2928_s16 = sadd.s32 %s3841_s30, %s3140_s29  ;;  %s4632_s30 = sand.u32 1, %s4627_s24  }
 0x131   : > { %3588 = vmatprep.subr.bf16.mxu0 %v3859_v29  ;;  %v3092_v44 = vld [vmem:[%s4622_s2 + $0x38] sm:$0xff]  ;;  %v3607_v45 = vpack.c.bf16 %v3106_v40, %v3105_v39  ;;  %v3097_v48 = vld [vmem:[%s4622_s2 + $0x48] sm:$0xff]  ;;  %v3098_v50 = vld [vmem:[%s4622_s2 + $0x50] sm:$0xff]  ;;  %s3141_s21 = sshll.u32 %s2928_s16, 7  ;;  %s2917_s29 = scalar_lea.sflag [#allocation5], %s4632_s30 }
 0x132   : > { %3605 = vmatpush3.bf16.msra.mxu1 %v3604_v38  ;;  %v3595_v46 = vpack.c.bf16 %v3092_v44, %v3091_v43  ;;  %v3598_v49 = vpack.c.bf16 %v3097_v48, %v3096_v47  ;;  %v3099_v51 = vld [vmem:[%s4622_s2 + $0x58] sm:$0xff]  ;;  %v1704_v56 = vld [vmem:[#allocation3 + $0x30] sm:$0xff]  ;;  %v1702_v3 = vld [vmem:[#allocation3 + $0x20] sm:$0xff]  ;;  %s3763_s16 = scalar_lea.vmem %s4507_s17, 128 }
 0x133   : > { %3606 = vmatprep.subr.bf16.mxu1 %v3859_v29  ;;  %v3601_v52 = vpack.c.bf16 %v3099_v51, %v3098_v50  ;;  %v1705_v57 = vld [vmem:[#allocation3 + $0x38] sm:$0xff]  ;;  %v1700_v61 = vld [vmem:[#allocation3 + $0x10] sm:$0xff]  ;;  %v1703_v4 = vld [vmem:[#allocation3 + $0x28] sm:$0xff]  ;;  %p3764_p1 = scmp.ne.s32.totalorder %s4507_s17, %s3763_s16 }
 0x134   : > { %3590 = vmatpush3.bf16.msra.mxu0 %v3589_v33  ;;  %v3635_v58 = vpack.c.bf16 %v1705_v57, %v1704_v56  ;;  %v2792_v56 = vld [vmem:[%s4575_s12] sm:$0xff]  ;;  %v2793_v57 = vld [vmem:[%s4575_s12 + $0x8] sm:$0xff] }
 0x135   : > { %3591 = vmatprep.subr.bf16.mxu0 %v3859_v29  ;;  %s4505_s2 = scalar_lea.hbm %s4631_s13, %s3141_s21  ;;  %p3765_p2 = pnand %p3764_p1, %p4009_p3 }
 0x136   : > { %3608 = vmatpush3.bf16.msra.mxu1 %v3607_v45 }
 0x137   : > { %3364 = vmatmul.mubr.msk.f32.vlgmr.msra.gmra.mrb[0].mxu0 %vm1367_vm3, %v4262_v41  ;;  %3613 = vmatprep.subr.bf16.mxu1 %v3859_v29  ;;  %p3766_p4 = pneg %p3765_p2 }
 0x138   : > { %3593 = vmatpush3.bf16.msra.mxu0 %v3592_v42  ;;  %3374 = vmatprep.mubr.msk.f32.mxu0 %vm3860_vm2, %v3861_v32 }
 0x139   : > { %3594 = vmatprep.subr.bf16.mxu0 %v3859_v29  ;;  %3397 = vmatmul.mubr.msk.f32.vlgmr.msra.gmra.mrb[0].mxu1 %vm1367_vm3, %v4262_v41 }
 0x13a   : > { %3410 = vmatprep.mubr.msk.f32.mxu1 %vm3860_vm2, %v3861_v32 }
 0x13c   : > { %3596 = vmatpush3.bf16.msra.mxu0 %v3595_v46 }
 0x13d   : > { %3597 = vmatprep.subr.bf16.mxu0 %v3859_v29 }
 0x13f   : > { %3375 = vmatmul.mubr.msk.f32.vlgmr.msra.gmra.mrb[2].mxu0 %vm1367_vm3, %v4262_v41  ;;  %3616 = vmatpush3.bf16.xpose.msk.msra.mxu1 %vm4307_vm5, %v3614_v59 }
 0x140   : > { %3599 = vmatpush3.bf16.msra.mxu0 %v3598_v49  ;;  %3385 = vmatprep.mubr.msk.f32.mxu0 %vm3860_vm2, %v3861_v32 }
 0x141   : > { %3600 = vmatprep.subr.bf16.mxu0 %v3859_v29  ;;  %3621 = vmatprep.subr.bf16.mxu1 %v3859_v29 }
 0x144   : > { %3602 = vmatpush3.bf16.msra.mxu0 %v3601_v52 }
 0x145   : > { %3609 = vmatprep.subr.bf16.mxu0 %v3859_v29 }
 0x147   : > { %3386 = vmatmul.mubr.msk.f32.vlgmr.msra.gmra.mrb[4].mxu0 %vm1367_vm3, %v4262_v41 }
 0x148   : > { %3403 = vmatprep.mubr.msk.f32.mxu0 %vm3860_vm2, %v3861_v32 }
 0x14d   : > { %3612 = vmatpush3.bf16.xpose.msk.msra.mxu0 %vm4307_vm5, %v3610_v55  ;;  %v3626_v55 = vpack.c.bf16 %v1699_v54, %v1698_v53  ;;  %v2705_v54 = vld [vmem:[%s4573_s10 + $0x18] sm:$0xff] }
 0x14e   : > { %3617 = vmatprep.subr.bf16.mxu0 %v3859_v29 }
 0x20a   : > { %v1437_v63 = vpop.f32.mrb[0].mxu0 }
 0x20b   : > { %v1438_v1 = vadd.f32 %v3087_v62, %v1437_v63  ;;  %v3365_v2 = vpop.f32.mrb[1].mxu0  ;;  %v1701_v62 = vld [vmem:[#allocation3 + $0x18] sm:$0xff] }
 0x20c   : > { %v1686_v5 = vpop.f32.mrb[0].mxu1 }
 0x20d   : > { %3404 = vmatmul.mubr.msk.f32.vlgmr.msra.gmra.mrb[6].mxu0 %vm1706_vm4, %v1438_v1  ;;  %v3398_v7 = vpop.f32.mrb[1].mxu1  ;;  %v1687_v14 = vadd.f32 %v3108_v12, %v1686_v5 }
 0x20e   : > { %3620 = vmatpush3.bf16.xpose.msk.msra.mxu0 %vm4307_vm5, %v3618_v0  ;;  %3417 = vmatprep.mubr.msk.f32.mxu0 %vm3860_vm2, %v3861_v32  ;;  %v3629_v0 = vpack.c.bf16 %v1701_v62, %v1700_v61  ;;  %v2796_v62 = vld [vmem:[%s4575_s12 + $0x20] sm:$0xff] }
 0x20f   : > { %3625 = vmatprep.subr.bf16.mxu0 %v3859_v29 }
 0x212   : > { %v1520_v8 = vpop.f32.mrb[2].mxu0 }
 0x213   : > { %v1521_v10 = vadd.f32 %v3094_v6, %v1520_v8  ;;  %v3376_v11 = vpop.f32.mrb[3].mxu0  ;;  %v3632_v6 = vpack.c.bf16 %v1703_v4, %v1702_v3 }
 0x215   : > { %3411 = vmatmul.mubr.msk.f32.vlgmr.msra.gmra.mrb[2].mxu1 %vm1706_vm4, %v1521_v10 }
 0x216   : > { %3624 = vmatpush3.bf16.xpose.msk.msra.mxu1 %vm4307_vm5, %v3622_v9  ;;  %3424 = vmatprep.mubr.msk.f32.mxu1 %vm3860_vm2, %v3861_v32 }
 0x217   : > { %3634 = vmatprep.subr.bf16.mxu1 %v3859_v29 }
 0x21a   : > { %v1603_v15 = vpop.f32.mrb[4].mxu0 }
 0x21b   : > { %v1604_v16 = vadd.f32 %v3101_v13, %v1603_v15  ;;  %v3387_v17 = vpop.f32.mrb[5].mxu0  ;;  %v2360_v13 = vld [vmem:[%s4571_s8] sm:$0xff]  ;;  %v2362_v15 = vld [vmem:[%s4571_s8 + $0x10] sm:$0xff] }
 0x21d   : > { %3418 = vmatmul.mubr.msk.f32.vlgmr.msra.gmra.mrb[8].mxu0 %vm1706_vm4, %v1604_v16  ;;  %3425 = vmatmul.mubr.msk.f32.vlgmr.msra.gmra.mrb[4].mxu1 %vm1706_vm4, %v1687_v14  ;;  %v2361_v14 = vld [vmem:[%s4571_s8 + $0x8] sm:$0xff] }
 0x21e   : > { %3431 = vmatprep.mubr.msk.f32.mxu0 %vm3860_vm2, %v3861_v32  ;;  %3452 = vmatprep.mubr.msk.f32.mxu1 %vm3860_vm2, %v3861_v32 }
 0x21f   : > { %3627 = vmatpush3.bf16.msra.mxu0 %v3626_v55  ;;  %3636 = vmatpush3.bf16.msra.mxu1 %v3635_v58  ;;  %v2794_v58 = vld [vmem:[%s4575_s12 + $0x10] sm:$0xff] }
 0x220   : > { %3628 = vmatprep.subr.bf16.mxu0 %v3859_v29  ;;  %3460 = vmatprep.subr.mxu1 %v3861_v32 }
 0x2e0   : > { %v1782_v18 = vpop.f32.mrb[6].mxu0 }
 0x2e1   : > { %v3405_v19 = vpop.f32.mrb[7].mxu0  ;;  %v2024_v20 = vsel %vm2023_vm6, %v1782_v18, -inf }
 0x2e2   : > { %2025 = vmax.xlane.f32.xlu0 %v2024_v20 }
 0x2e8   : > { %v1861_v21 = vpop.f32.mrb[2].mxu1 }
 0x2e9   : > { %v3412_v22 = vpop.f32.mrb[3].mxu1  ;;  %v2027_v23 = vsel %vm2023_vm6, %v1861_v21, -inf }
 0x2ea   : > { %2028 = vmax.xlane.f32.xlu0 %v2027_v23 }
 0x2f0   : > { %v1940_v24 = vpop.f32.mrb[8].mxu0  ;;  %v2019_v25 = vpop.f32.mrb[4].mxu1 }
 0x2f1   : > { %v3419_v26 = vpop.f32.mrb[9].mxu0  ;;  %v2030_v27 = vsel %vm2023_vm6, %v1940_v24, -inf  ;;  %v3426_v28 = vpop.f32.mrb[5].mxu1  ;;  %v2033_v30 = vsel %vm2023_vm6, %v2019_v25, -inf }
 0x2f2   : > { %2031 = vmax.xlane.f32.xlu1 %v2030_v27 }
 0x2f6   : > { %2034 = vmax.xlane.f32.xlu1 %v2033_v30 }
 0x36f   : > { %v2026_v31 = vpop.xlane.xlu0 %2025 }
 0x370   : > { %v2036_v33 = vsub.f32 %v1782_v18, %v2026_v31  ;;  %v2363_v18 = vld [vmem:[%s4571_s8 + $0x18] sm:$0xff] }
 0x372   : > { %v2040_v34 = vmul.f32 1.442695, %v2036_v33 }
 0x374   : > { %3741 = vpow2.f32 %v2040_v34 }
 0x377   : > { %v2029_v35 = vpop.xlane.xlu0 %2028 }
 0x378   : > { %v2037_v36 = vsub.f32 %v1861_v21, %v2029_v35 }
 0x37a   : > { %v2042_v37 = vmul.f32 1.442695, %v2037_v36 }
 0x37c   : > { %3743 = vpow2.f32 %v2042_v37 }
 0x37e   : > { %v3742_v38 = vpop.eup %3741 }
 0x37f   : > { %v2032_v39 = vpop.xlane.xlu1 %2031  ;;  %v2048_v40 = vsel %vm2023_vm6, %v3742_v38, 0.0 }
 0x380   : > { %v2038_v42 = vsub.f32 %v1940_v24, %v2032_v39  ;;  %2049 = vadd.xlane.f32.xlu0 %v2048_v40 }
 0x382   : > { %v2044_v43 = vmul.f32 1.442695, %v2038_v42 }
 0x383   : > { %v2035_v44 = vpop.xlane.xlu1 %2034 }
 0x384   : > { %3745 = vpow2.f32 %v2044_v43  ;;  %v2039_v45 = vsub.f32 %v2019_v25, %v2035_v44 }
 0x386   : > { %v3744_v46 = vpop.eup %3743  ;;  %v2046_v47 = vmul.f32 1.442695, %v2039_v45 }
 0x387   : > { %v2051_v48 = vsel %vm2023_vm6, %v3744_v46, 0.0 }
 0x388   : > { %3747 = vpow2.f32 %v2046_v47  ;;  %2052 = vadd.xlane.f32.xlu1 %v2051_v48 }
 0x38e   : > { %v3746_v49 = vpop.eup %3745 }
 0x38f   : > { %v2054_v50 = vsel %vm2023_vm6, %v3746_v49, 0.0 }
 0x390   : > { %2055 = vadd.xlane.f32.xlu0 %v2054_v50 }
 0x392   : > { %v3748_v51 = vpop.eup %3747 }
 0x393   : > { %v2057_v52 = vsel %vm2023_vm6, %v3748_v51, 0.0 }
 0x394   : > { %2058 = vadd.xlane.f32.xlu1 %v2057_v52  ;;  %v2703_v52 = vld [vmem:[%s4573_s10 + $0x8] sm:$0xff] }
 0x40d   : > { %v2050_v59 = vpop.xlane.xlu0 %2049 }
 0x40e   : > { %3749 = vrcp.f32 %v2050_v59  ;;  %v3644_v59 = vpack.c.bf16 %v2793_v57, %v2792_v56 }
 0x415   : > { %v2053_v60 = vpop.xlane.xlu1 %2052 }
 0x416   : > { %3751 = vrcp.f32 %v2053_v60  ;;  %v2795_v60 = vld [vmem:[%s4575_s12 + $0x18] sm:$0xff] }
 0x417   : > { %v3647_v61 = vpack.c.bf16 %v2795_v60, %v2794_v58 }
 0x418   : > { %v3750_v63 = vpop.eup %3749 }
 0x419   : > { %v2064_v1 = vmul.f32 %v3750_v63, %v3742_v38  ;;  %v2797_v63 = vld [vmem:[%s4575_s12 + $0x28] sm:$0xff] }
 0x41b   : > { %3432 = vmatmul.mubr.msk.f32.vlgmr.msra.gmra.mrb[10].mxu0 %vm2023_vm6, %v2064_v1 }
 0x41c   : > { %3630 = vmatpush3.bf16.msra.mxu0 %v3629_v0  ;;  %3438 = vmatprep.mubr.msk.f32.mxu0 %vm3860_vm2, %v3861_v32  ;;  %v3650_v0 = vpack.c.bf16 %v2797_v63, %v2796_v62 }
 0x41d   : > { %v2056_v2 = vpop.xlane.xlu0 %2055  ;;  %3631 = vmatprep.subr.bf16.mxu0 %v3859_v29 }
 0x41e   : > { %3753 = vrcp.f32 %v2056_v2 }
 0x420   : > { %v3752_v5 = vpop.eup %3751 }
 0x421   : > { %v2065_v7 = vmul.f32 %v3752_v5, %v3744_v46  ;;  %v2059_v8 = vpop.xlane.xlu1 %2058  ;;  %v3131_v5 = vld [vmem:[%s4577_s14] ss:$0 sm:$0xff] }
 0x422   : > { %3755 = vrcp.f32 %v2059_v8 }
 0x423   : > { %3439 = vmatmul.mubr.msk.f32.vlgmr.msra.gmra.mrb[12].mxu0 %vm2023_vm6, %v2065_v7  ;;  %v3132_v7 = vld [vmem:[%s4578_s15] ss:$0 sm:$0xff] }
 0x424   : > { %3633 = vmatpush3.bf16.msra.mxu0 %v3632_v6  ;;  %3445 = vmatprep.mubr.msk.f32.mxu0 %vm3860_vm2, %v3861_v32 }
 0x425   : > { %3455 = vmatprep.subr.mxu0 %v3861_v32 }
 0x428   : > { %v3754_v9 = vpop.eup %3753 }
 0x429   : > { %v2066_v10 = vmul.f32 %v3754_v9, %v3746_v49 }
 0x42b   : > { %3446 = vmatmul.mubr.msk.f32.vlgmr.msra.gmra.mrb[14].mxu0 %vm2023_vm6, %v2066_v10  ;;  %v2798_v10 = vld [vmem:[%s4575_s12 + $0x30] sm:$0xff] }
 0x42c   : > { %v3756_v11 = vpop.eup %3755  ;;  %3457 = vmatprep.mubr.msk.f32.mxu0 %vm3860_vm2, %v3861_v32  ;;  %3456 = vmatpush3.msra.mxu0 %v2360_v13  ;;  %v2800_v13 = vld [vmem:[%s4575_s12 + $0x40] sm:$0xff] }
 0x42d   : > { %v2067_v12 = vmul.f32 %v3756_v11, %v3748_v51  ;;  %3465 = vmatprep.subr.mxu0 %v3861_v32  ;;  %v2702_v51 = vld [vmem:[%s4573_s10] sm:$0xff]  ;;  %v2799_v11 = vld [vmem:[%s4575_s12 + $0x38] sm:$0xff] }
 0x42e   : > { %v3638_v53 = vpack.c.bf16 %v2703_v52, %v2702_v51  ;;  %v3138_v52 = vld [vmem:[%s4630_s25] ss:$0 sm:$0xff] }
 0x42f   : > { %3453 = vmatmul.mubr.msk.f32.vlgmr.msra.gmra.mrb[6].mxu1 %vm2023_vm6, %v2067_v12  ;;  %v3653_v12 = vpack.c.bf16 %v2799_v11, %v2798_v10 }
 0x430   : > { %3462 = vmatprep.mubr.msk.f32.mxu1 %vm3860_vm2, %v3861_v32  ;;  %3461 = vmatpush3.msra.mxu1 %v2361_v14  ;;  %v2801_v14 = vld [vmem:[%s4575_s12 + $0x48] sm:$0xff] }
 0x431   : > { %3470 = vmatprep.subr.mxu1 %v3861_v32 }
 0x4ee   : > { %v2137_v16 = vpop.f32.mrb[10].mxu0 }
 0x4ef   : > { %v3433_v17 = vpop.f32.mrb[11].mxu0  ;;  %3458 = vmatmul.mubr.msk.f32.vlgmr.msra.gmra.mrb[16].mxu0 %vm1706_vm4, %v2137_v16  ;;  %v2802_v16 = vld [vmem:[%s4575_s12 + $0x50] sm:$0xff] }
 0x4f0   : > { %3466 = vmatpush3.msra.mxu0 %v2362_v15  ;;  %3467 = vmatprep.mubr.msk.f32.mxu0 %vm3860_vm2, %v3861_v32  ;;  %v3656_v15 = vpack.c.bf16 %v2801_v14, %v2800_v13  ;;  %v2803_v17 = vld [vmem:[%s4575_s12 + $0x58] sm:$0xff] }
 0x4f1   : > { %3637 = vmatprep.subr.bf16.mxu0 %v3859_v29 }
 0x4f6   : > { %v2210_v19 = vpop.f32.mrb[12].mxu0 }
 0x4f7   : > { %v3440_v20 = vpop.f32.mrb[13].mxu0  ;;  %3463 = vmatmul.mubr.msk.f32.vlgmr.msra.gmra.mrb[8].mxu1 %vm1706_vm4, %v2210_v19  ;;  %v3659_v19 = vpack.c.bf16 %v2803_v17, %v2802_v16 }
 0x4f8   : > { %3471 = vmatpush3.msra.mxu1 %v2363_v18  ;;  %3472 = vmatprep.mubr.msk.f32.mxu1 %vm3860_vm2, %v3861_v32  ;;  %v2804_v18 = vld [vmem:[%s4575_s12 + $0x60] sm:$0xff]  ;;  %v2805_v20 = vld [vmem:[%s4575_s12 + $0x68] sm:$0xff] }
 0x4f9   : > { %3643 = vmatprep.subr.bf16.mxu1 %v3859_v29 }
 0x4fe   : > { %v2283_v21 = vpop.f32.mrb[14].mxu0 }
 0x4ff   : > { %v3447_v22 = vpop.f32.mrb[15].mxu0  ;;  %3468 = vmatmul.mubr.msk.f32.vlgmr.msra.gmra.mrb[18].mxu0 %vm1706_vm4, %v2283_v21  ;;  %v3662_v21 = vpack.c.bf16 %v2805_v20, %v2804_v18 }
 0x500   : > { %3483 = vmatprep.mubr.msk.f32.mxu0 %vm3860_vm2, %v3861_v32  ;;  %3639 = vmatpush3.bf16.msra.mxu0 %v3638_v53  ;;  %v2806_v22 = vld [vmem:[%s4575_s12 + $0x70] sm:$0xff] }
 0x501   : > { %3640 = vmatprep.subr.bf16.mxu0 %v3859_v29 }
 0x502   : > { %v2356_v23 = vpop.f32.mrb[6].mxu1 }
 0x503   : > { %v3454_v24 = vpop.f32.mrb[7].mxu1  ;;  %3473 = vmatmul.mubr.msk.f32.vlgmr.msra.gmra.mrb[10].mxu1 %vm1706_vm4, %v2356_v23  ;;  %v2807_v23 = vld [vmem:[%s4575_s12 + $0x78] sm:$0xff] }
 0x504   : > { %3518 = vmatprep.mubr.msk.f32.mxu1 %vm3860_vm2, %v3861_v32  ;;  %v3130_v32 = vld [vmem:[%s4572_s9] ss:$0 sm:$0xff]  ;;  %3645 = vmatpush3.bf16.msra.mxu1 %v3644_v59  ;;  %v3665_v24 = vpack.c.bf16 %v2807_v23, %v2806_v22 }
 0x505   : > { %3646 = vmatprep.subr.bf16.mxu1 %v3859_v29 }
 0x508   : > { %3648 = vmatpush3.bf16.msra.mxu1 %v3647_v61 }
 0x509   : > { %3649 = vmatprep.subr.bf16.mxu1 %v3859_v29 }
 0x50c   : > { %3651 = vmatpush3.bf16.msra.mxu1 %v3650_v0 }
 0x50d   : > { %3652 = vmatprep.subr.bf16.mxu1 %v3859_v29 }
 0x510   : > { %3654 = vmatpush3.bf16.msra.mxu1 %v3653_v12 }
 0x511   : > { %3655 = vmatprep.subr.bf16.mxu1 %v3859_v29 }
 0x514   : > { %3657 = vmatpush3.bf16.msra.mxu1 %v3656_v15 }
 0x515   : > { %3658 = vmatprep.subr.bf16.mxu1 %v3859_v29 }
 0x518   : > { %3660 = vmatpush3.bf16.msra.mxu1 %v3659_v19 }
 0x519   : > { %3661 = vmatprep.subr.bf16.mxu1 %v3859_v29 }
 0x51c   : > { %3663 = vmatpush3.bf16.msra.mxu1 %v3662_v21 }
 0x51d   : > { %3664 = vmatprep.subr.bf16.mxu1 %v3859_v29  ;;  %v3136_v29 = vld [vmem:[%s4625_s23] ss:$0 sm:$0xff] }
 0x520   : > { %3666 = vmatpush3.bf16.msra.mxu1 %v3665_v24 }
 0x5c2   : > { %v2433_v25 = vpop.f32.mrb[16].mxu0 }
 0x5c3   : > { %v3459_v26 = vpop.f32.mrb[17].mxu0  ;;  %v2656_v28 = vsel %vm1367_vm3, %v2433_v25, 0.0  ;;  %v3133_v25 = vld [vmem:[%s4574_s11] ss:$0 sm:$0xff] }
 0x5ca   : > { %v2506_v27 = vpop.f32.mrb[8].mxu1 }
 0x5cb   : > { %v2657_v30 = vsel %vm1367_vm3, %v2506_v27, 0.0  ;;  %v3464_v31 = vpop.f32.mrb[9].mxu1 }
 0x5cc   : > { %v2658_v33 = vadd.f32 %v2657_v30, %v2656_v28 }
 0x5d2   : > { %v2579_v34 = vpop.f32.mrb[18].mxu0 }
 0x5d3   : > { %v2659_v35 = vsel %vm1367_vm3, %v2579_v34, 0.0  ;;  %v3469_v36 = vpop.f32.mrb[19].mxu0 }
 0x5d4   : > { %v2660_v37 = vadd.f32 %v2659_v35, %v2658_v33 }
 0x5d6   : > { %v2652_v38 = vpop.f32.mrb[10].mxu1 }
 0x5d7   : > { %v2661_v39 = vsel %vm1367_vm3, %v2652_v38, 0.0  ;;  %v3474_v40 = vpop.f32.mrb[11].mxu1 }
 0x5d8   : > { %v2662_v42 = vadd.f32 %v2661_v39, %v2660_v37 }
 0x5da   : > { %v2670_v43 = vadd.f32 %v3130_v32, %v2662_v42 }
 0x5dc   : > { %v2671_v44 = vadd.f32 %v2670_v43, %v4262_v41  ;;  %v2704_v41 = vld [vmem:[%s4573_s10 + $0x10] sm:$0xff] }
 0x5dd   : > { %v3641_v55 = vpack.c.bf16 %v2705_v54, %v2704_v41 }
 0x5de   : > { %v2672_v45 = vsel %vm1367_vm3, %v2671_v44, 0.0 }
 0x5df   : > { %2673 = vadd.xlane.f32.xlu0 %v2672_v45  ;;  %3642 = vmatpush3.bf16.msra.mxu0 %v3641_v55 }
 0x66c   : > { %v2674_v46 = vpop.xlane.xlu0 %2673 }
 0x66d   : > { %v2676_v47 = vmul.f32 0.03125, %v2674_v46 }
 0x66f   : > { %v2677_v48 = vsub.f32 %v2671_v44, %v2676_v47 }
 0x671   : > { %v2678_v49 = vmul.f32 %v2677_v48, %v2677_v48 }
 0x673   : > { %v2679_v50 = vsel %vm1367_vm3, %v2678_v49, 0.0 }
 0x674   : > { %2680 = vadd.xlane.f32.xlu1 %v2679_v50  ;;  %v3137_v50 = vld [vmem:[%s4629_s26] ss:$0 sm:$0xff]  ;;  %s3769_s26 = scalar_lea.vmem %s3768_s20, 256 }
 0x675   : > { %p3771_p6 = scmp.lt.s32.totalorder %s3769_s26, %s3763_s16 }
 0x677   : > { %p3772_p7 = por %p3771_p6, %p3770_p5 }
 0x679   : > { %p3773_p9 = pnand %p3772_p7, %p3766_p4 }
 0x701   : > { %v2681_v1 = vpop.xlane.xlu1 %2680 }
 0x702   : > { %v2682_v2 = vmul.f32 0.03125, %v2681_v1 }
 0x704   : > { %v2683_v3 = vadd.f32 1e-05, %v2682_v2 }
 0x706   : > { %3757 = vrsqrt.f32 %v2683_v3 }
 0x710   : > { %v3758_v4 = vpop.eup %3757 }
 0x711   : > { %v2685_v6 = vmul.f32 %v3758_v4, %v2677_v48 }
 0x713   : > { %v2693_v8 = vmul.f32 %v3131_v5, %v2685_v6 }
 0x715   : > { %v2701_v9 = vadd.f32 %v3132_v7, %v2693_v8 }
 0x717   : > { %3484 = vmatmul.mubr.msk.f32.vlgmr.msra.gmra.mrb[20].mxu0 %vm1367_vm3, %v2701_v9 }
 0x7ea   : > { %v2782_v26 = vpop.f32.mrb[20].mxu0 }
 0x7eb   : > { %v2783_v27 = vadd.f32 %v3133_v25, %v2782_v26  ;;  %v3485_v28 = vpop.f32.mrb[21].mxu0 }
 0x7ed   : > { %v2787_v30 = vmin.f32 %v2783_v27, 0.0  ;;  %vm2786_vm7 = vcmp.gt.f32.partialorder %v2783_v27, 0.0 }
 0x7ef   : > { %v2788_v31 = vmul.f32 1.442695, %v2787_v30 }
 0x7f1   : > { %3759 = vpow2.f32 %v2788_v31 }
 0x7fb   : > { %v3760_v33 = vpop.eup %3759 }
 0x7fc   : > { %v3135_v34 = vadd.f32 -1.0, %v3760_v33 }
 0x7fe   : > { %v2791_v35 = vsel %vm2786_vm7, %v2783_v27, %v3135_v34 }
 0x7ff   : > { %3519 = vmatmul.mubr.f32.vlgmr.msra.gmra.mrb[12].mxu1 %v2791_v35 }
 0x8d2   : > { %v2881_v36 = vpop.f32.mrb[12].mxu1 }
 0x8d3   : > { %v2882_v37 = vadd.f32 %v3136_v29, %v2881_v36  ;;  %v3520_v38 = vpop.f32.mrb[13].mxu1 }
 0x8d5   : > { %v2885_v39 = vadd.f32 %v2882_v37, %v2701_v9 }
 0x8d7   : > { %v2886_v32 = vsel %vm1367_vm3, %v2885_v39, 0.0 }
 0x8d8   : > { %2887 = vadd.xlane.f32.xlu0 %v2886_v32 }
 0x965   : > { %v2888_v40 = vpop.xlane.xlu0 %2887 }
 0x966   : > { %v2889_v42 = vmul.f32 0.03125, %v2888_v40 }
 0x968   : > { %v2890_v43 = vsub.f32 %v2885_v39, %v2889_v42 }
 0x96a   : > { %v2891_v44 = vmul.f32 %v2890_v43, %v2890_v43 }
 0x96c   : > { %v2892_v45 = vsel %vm1367_vm3, %v2891_v44, 0.0 }
 0x96d   : > { %2893 = vadd.xlane.f32.xlu1 %v2892_v45 }
 0x9fa   : > { %v2894_v46 = vpop.xlane.xlu1 %2893 }
 0x9fb   : > { %v2895_v47 = vmul.f32 0.03125, %v2894_v46 }
 0x9fd   : > { %v2896_v48 = vadd.f32 1e-05, %v2895_v47 }
 0x9ff   : > { %3761 = vrsqrt.f32 %v2896_v48 }
 0xa09   : > { %v3762_v49 = vpop.eup %3761 }
 0xa0a   : > { %v2898_v51 = vmul.f32 %v3762_v49, %v2890_v43 }
 0xa0c   : > { %v2906_v53 = vmul.f32 %v3137_v50, %v2898_v51 }
 0xa0e   : > { %v2914_v41 = vadd.f32 %v3138_v52, %v2906_v53 }
 0xa10   : > { %2915 = vst.msk [vmem:[%s605_s22] sm:$0xff] %vm1367_vm3, %v2914_v41 }
 0xa11   : > { %3776 = shalt.err (!%p3773_p9)
}
 0xa12   : > { %s3777_s19 = scalar_lea.hbm %s4505_s2, 128  ;;  %s3781_s28 = scalar_lea.hbm %s4631_s13, 512 }
 0xa13   : > { %p3778_p10 = scmp.ne.s32.totalorder %s4505_s2, %s3777_s19  ;;  %p3782_p13 = scmp.lt.u32.totalorder %s4505_s2, %s4631_s13 }
 0xa14   : > { %p3783_p0 = scmp.lt.u32.totalorder %s3781_s28, %s3777_s19  ;;  %p3785_p2 = scmp.lt.u32.totalorder %s3777_s19, %s4505_s2 }
 0xa15   : > { %p3779_p11 = pnand %p3778_p10, %p4009_p3 }
 0xa16   : > { %p3784_p1 = por %p3783_p0, %p3782_p13 }
 0xa17   : > { %p3780_p12 = pneg %p3779_p11 }
 0xa18   : > { %p3786_p4 = por %p3785_p2, %p3784_p1 }
 0xa1a   : > { %p3787_p5 = pnand %p3786_p4, %p3780_p12 }
 0xa1c   : > { %3790 = shalt.err (!%p3787_p5)
}
 0xa1d   : > { %3667 = dma.vmem_to_hbm [thread:$0]  (%p4009_p3), %s4507_s17, 128, %s4505_s2, %s2917_s29  }
 0xa1e PF: > { %s4633_s21 = sld [smem:[#allocation13_spill]]  ;;  %s4634_s18 = sld [smem:[#allocation7_spill]] }
 0xa24   : > { %p3673_p6 = scmp.ge.s32.totalorder %s4633_s21, 2  ;;  %s2944_s30 = sand.u32 1, %s4634_s18  }
 0xa25   : > { %s2945_s16 = scalar_lea.sflag [#allocation5], %s2944_s30 }
 0xa26   : > { %p3670_p7 = pnand %p3673_p6, %p4018_p8 }
 0xa28   : > { %3824 = dma.done.wait (!%p3670_p7), %s2945_s16, 128  }
 0xa29   : > { %3826 = vsyncadd (!%p3670_p7), %s2945_s16, 4294967168  ;;  %s31_s20 = sadd.s32 1, %s4633_s21   ;;  %s4636_s27 = sld [smem:[#allocation8_spill]] }
 0xa2a   : > { %p28_p9 = scmp.ge.s32.totalorder %s31_s20, 6   ;;  %s4637_s28 = sld [smem:[#allocation9_spill]] }
 0xa2b   : > { %s4638_s29 = sld [smem:[#allocation18_spill]]  ;;  %s4639_s30 = sld [smem:[#allocation11_spill]] }
 0xa2c   : > { %s4640_s0 = sld [smem:[#allocation12_spill]]  ;;  %s4641_s19 = sld [smem:[#allocation14_spill]] }
 0xa2d   : > { %s4642_s1 = sld [smem:[#allocation16_spill]]  ;;  %30 = sbr.rel (!%p28_p9) target bundleno = 13 (0xd), region = 158 }
 0xa34   :  { %2950 = vsyncpa [#allocation5], 1 }
 0xa35   :  { %2952 = vsyncpa [#allocation5 + $0x1], 1 }

</bundles_post_ra>
